<compile_context>
chip_gen: v6e
topology: v6e:2x2x1
jax: 0.10.0
libtpu: 0.0.40
codegen_flags: <defaults>
</compile_context>

<pallas_src>
import functools
import math

import jax
import jax.numpy as jnp
from jax.experimental import pallas as pl
from jax.experimental.pallas import tpu as pltpu


def _round_up(x, m):
    return (x + m - 1) // m * m


def _sigmoid(x):
    # One tanh push on the EUP instead of exp + reciprocal.
    return 0.5 * jnp.tanh(0.5 * x) + 0.5


# ----------------------------------------------------------------------------
# Kernel
# ----------------------------------------------------------------------------
def _lstm_kernel(n_layers, t_blk, hp, *refs):
    """One grid step == `t_blk` time steps of the multilayer LSTM."""
    if n_layers > 1:
        (x_ref, h0_ref, c0_ref, w0_ref, wr_ref, b_ref,
         out_ref, h_ref, c_ref) = refs
    else:
        (x_ref, h0_ref, c0_ref, w0_ref, b_ref,
         out_ref, h_ref, c_ref) = refs
        wr_ref = None

    # Load the initial state into the resident h/c output blocks at the first
    # time block of every batch shard (h/c BlockSpecs are constant along the
    # time axis, so they stay VMEM-resident across the whole recurrence).
    @pl.when(pl.program_id(1) == 0)
    def _():
        h_ref[...] = h0_ref[...]
        c_ref[...] = c0_ref[...]

    for tt in range(t_blk):                       # static, fully unrolled
        inp = x_ref[tt]                           # [TB, I]  f32
        for layer in range(n_layers):             # static layer loop
            h = h_ref[layer]                      # [TB, Hp] f32
            c = c_ref[layer]                      # [TB, Hp] f32
            w = w0_ref[...] if layer == 0 else wr_ref[layer - 1]   # bf16
            # Single fused MXU matmul: [h | x] @ [Wh^T ; Wx^T]  (f32 accum).
            cat = jnp.concatenate([h, inp], axis=-1).astype(w.dtype)
            ifgo = jnp.dot(cat, w, preferred_element_type=jnp.float32)
            ifgo = ifgo + b_ref[layer]            # bias (f32), broadcast [1,4Hp]
            # Lane-aligned gate slices (hp is a multiple of 128).
            i_g = ifgo[:, 0 * hp:1 * hp]
            f_g = ifgo[:, 1 * hp:2 * hp]
            g_g = ifgo[:, 2 * hp:3 * hp]
            o_g = ifgo[:, 3 * hp:4 * hp]
            c_next = _sigmoid(f_g) * c + _sigmoid(i_g) * jnp.tanh(g_g)
            h_next = _sigmoid(o_g) * jnp.tanh(c_next)
            h_ref[layer] = h_next
            c_ref[layer] = c_next
            inp = h_next
        out_ref[tt] = inp                         # last layer's h at this step


# ----------------------------------------------------------------------------
# Parameter init (mirrors nn.Linear U(-1/sqrt(fan_in), 1/sqrt(fan_in))) and
# kernel-side packing (fused / gate-padded / bf16 weights).
# ----------------------------------------------------------------------------
def init_lstm_params(key, input_size, hidden_size, n_layers):
    H = hidden_size
    keys = jax.random.split(key, 3 * n_layers)
    wx_list, wh_list, bh_list = [], [], []
    for layer in range(n_layers):
        in_feat = input_size if layer == 0 else H
        k_wh, k_bh, k_wx = keys[3 * layer:3 * layer + 3]
        bound_h = 1.0 / jnp.sqrt(H)
        bound_x = 1.0 / jnp.sqrt(in_feat)
        # hidden_lin: Linear(H, 4H) with bias
        wh_list.append(jax.random.uniform(k_wh, (4 * H, H), jnp.float32,
                                          -bound_h, bound_h))
        bh_list.append(jax.random.uniform(k_bh, (4 * H,), jnp.float32,
                                          -bound_h, bound_h))
        # input_lin: Linear(in_feat, 4H, bias=False)
        wx_list.append(jax.random.uniform(k_wx, (4 * H, in_feat), jnp.float32,
                                          -bound_x, bound_x))
    return wx_list, wh_list, bh_list


def pack_lstm_params(wx_list, wh_list, bh_list, *, hidden_size,
                     matmul_dtype=jnp.bfloat16, lane=128):
    """Pack raw (PyTorch-layout) params into fused, gate-padded, bf16 weights."""
    H = hidden_size
    Hp = _round_up(H, lane)
    n_layers = len(wh_list)

    def gate_pad_cols(w_t):                       # [K, 4H] -> [K, 4Hp]
        K = w_t.shape[0]
        w4 = w_t.reshape(K, 4, H)
        w4 = jnp.pad(w4, ((0, 0), (0, 0), (0, Hp - H)))
        return w4.reshape(K, 4 * Hp)

    def pad_rows(w, rows):                        # zero-pad dim 0 up to `rows`
        return jnp.pad(w, ((0, rows - w.shape[0]), (0, 0)))

    fused = []
    for layer in range(n_layers):
        wh_t = pad_rows(gate_pad_cols(wh_list[layer].T), Hp)     # [Hp, 4Hp]
        wx_t = gate_pad_cols(wx_list[layer].T)                   # [in, 4Hp]
        if layer > 0:
            wx_t = pad_rows(wx_t, Hp)                            # [Hp, 4Hp]
        fused.append(jnp.concatenate([wh_t, wx_t], axis=0).astype(matmul_dtype))

    w0 = fused[0]                                                # [Hp+I, 4Hp]
    wr = jnp.stack(fused[1:]) if n_layers > 1 else None          # [L-1,2Hp,4Hp]

    def gate_pad_bias(bv):                                       # [4H] -> [4Hp]
        b4 = bv.reshape(4, H)
        b4 = jnp.pad(b4, ((0, 0), (0, Hp - H)))
        return b4.reshape(4 * Hp)

    b = jnp.stack([gate_pad_bias(bh) for bh in bh_list])[:, None, :]  # [L,1,4Hp]
    return {"w0": w0, "wr": wr, "b": b.astype(jnp.float32), "hp": Hp}


# ----------------------------------------------------------------------------
# Forward wrapper
# ----------------------------------------------------------------------------
def lstm_forward(x, packed, *, n_layers, hidden_size, state=None,
                 time_block=None, batch_block=None):
    """Pallas equivalent of LSTM.forward.

    x: [n_steps, batch, input_size] f32
    state: optional (h, c), each [n_layers, batch, hidden_size]
    returns (out [T,B,H], (h [L,B,H], c [L,B,H]))
    """
    n_steps, batch, input_size = x.shape
    H = hidden_size
    Hp = packed["hp"]
    w0, wr, b = packed["w0"], packed["wr"], packed["b"]

    # Time block: amortize grid-step overhead (must divide n_steps).
    if time_block is None:
        time_block = next(c for c in (16, 8, 4, 2, 1) if n_steps % c == 0)
    # Batch block: leading "parallel" grid axis (megacore sharding).
    if batch_block is None:
        batch_block = next((c for c in (256, 128, 64, 32, 16, 8)
                            if batch % c == 0), batch)
    assert n_steps % time_block == 0 and batch % batch_block == 0

    if state is None:
        h0 = jnp.zeros((n_layers, batch, Hp), jnp.float32)
        c0 = jnp.zeros((n_layers, batch, Hp), jnp.float32)
    else:
        h0, c0 = state
        pad = ((0, 0), (0, 0), (0, Hp - H))
        h0 = jnp.pad(h0.astype(jnp.float32), pad)
        c0 = jnp.pad(c0.astype(jnp.float32), pad)

    tblk, tbat = time_block, batch_block
    grid = (batch // tbat, n_steps // tblk)

    in_specs = [
        pl.BlockSpec((tblk, tbat, input_size), lambda bi, ti: (ti, bi, 0)),  # x
        pl.BlockSpec((n_layers, tbat, Hp), lambda bi, ti: (0, bi, 0)),       # h0
        pl.BlockSpec((n_layers, tbat, Hp), lambda bi, ti: (0, bi, 0)),       # c0
        pl.BlockSpec(w0.shape, lambda bi, ti: (0, 0)),                       # W layer0
    ]
    inputs = [x, h0, c0, w0]
    if n_layers > 1:
        in_specs.append(pl.BlockSpec(wr.shape, lambda bi, ti: (0, 0, 0)))    # W rest
        inputs.append(wr)
    in_specs.append(pl.BlockSpec(b.shape, lambda bi, ti: (0, 0, 0)))         # bias
    inputs.append(b)

    out_specs = [
        pl.BlockSpec((tblk, tbat, Hp), lambda bi, ti: (ti, bi, 0)),          # out
        pl.BlockSpec((n_layers, tbat, Hp), lambda bi, ti: (0, bi, 0)),       # h (resident)
        pl.BlockSpec((n_layers, tbat, Hp), lambda bi, ti: (0, bi, 0)),       # c (resident)
    ]
    out_shape = [
        jax.ShapeDtypeStruct((n_steps, batch, Hp), jnp.float32),
        jax.ShapeDtypeStruct((n_layers, batch, Hp), jnp.float32),
        jax.ShapeDtypeStruct((n_layers, batch, Hp), jnp.float32),
    ]

    # Explicit scoped-VMEM budget: double-buffer every block, 2x margin,
    # clamped to [32 MiB, 64 MiB] so it is safe on v5e/v6e (128 MiB) and
    # v7x (64 MiB).
    def nbytes(shape, dt):
        return math.prod(shape) * jnp.dtype(dt).itemsize
    est = 2 * (nbytes((tblk, tbat, input_size), jnp.float32)
               + nbytes((tblk, tbat, Hp), jnp.float32)
               + 4 * nbytes((n_layers, tbat, Hp), jnp.float32)
               + nbytes(w0.shape, w0.dtype)
               + (nbytes(wr.shape, wr.dtype) if n_layers > 1 else 0)
               + nbytes(b.shape, b.dtype))
    vmem_limit = int(min(max(2 * est, 32 << 20), 64 << 20))

    kernel = functools.partial(_lstm_kernel, n_layers, tblk, Hp)
    out, h, c = pl.pallas_call(
        kernel,
        grid=grid,
        in_specs=in_specs,
        out_specs=out_specs,
        out_shape=out_shape,
        compiler_params=pltpu.CompilerParams(
            dimension_semantics=("parallel", "arbitrary"),
            vmem_limit_bytes=vmem_limit,
        ),
    )(*inputs)

    # Strip the lane padding back to the logical hidden size.
    return out[:, :, :H], (h[:, :, :H], c[:, :, :H])


# ----------------------------------------------------------------------------
# Pure-JAX reference of the PyTorch forward (optionally with the same bf16
# matmul-operand rounding the kernel uses).
# ----------------------------------------------------------------------------
def lstm_reference(x, raw_params, n_layers, hidden_size, state=None,
                   matmul_dtype=jnp.float32):
    wx_list, wh_list, bh_list = raw_params
    n_steps, batch, _ = x.shape
    H = hidden_size
    if state is None:
        h = [jnp.zeros((batch, H), jnp.float32) for _ in range(n_layers)]
        c = [jnp.zeros((batch, H), jnp.float32) for _ in range(n_layers)]
    else:
        h, c = list(state[0]), list(state[1])

    wcat = [jnp.concatenate([wh_list[l].T, wx_list[l].T], axis=0)
            .astype(matmul_dtype) for l in range(n_layers)]

    outs = []
    for t in range(n_steps):
        inp = x[t]
        for layer in range(n_layers):
            cat = jnp.concatenate([h[layer], inp], axis=-1).astype(matmul_dtype)
            ifgo = jnp.dot(cat, wcat[layer],
                           preferred_element_type=jnp.float32) + bh_list[layer]
            i_g, f_g, g_g, o_g = jnp.split(ifgo, 4, axis=-1)
            c[layer] = _sigmoid(f_g) * c[layer] + _sigmoid(i_g) * jnp.tanh(g_g)
            h[layer] = _sigmoid(o_g) * jnp.tanh(c[layer])
            inp = h[layer]
        outs.append(h[-1])
    return jnp.stack(outs), (jnp.stack(h), jnp.stack(c))


if __name__ == "__main__":
    n_steps, batch, input_size, hidden_size, n_layers = 8, 8, 16, 32, 2

    key = jax.random.PRNGKey(0)
    k_x, k_p = jax.random.split(key)
    x = jax.random.normal(k_x, (n_steps, batch, input_size), jnp.float32)

    raw = init_lstm_params(k_p, input_size, hidden_size, n_layers)
    packed = pack_lstm_params(*raw, hidden_size=hidden_size)

    out, (h, c) = lstm_forward(x, packed, n_layers=n_layers,
                               hidden_size=hidden_size, state=None)
    out = jax.block_until_ready(out)
    h = jax.block_until_ready(h)
    c = jax.block_until_ready(c)

    assert out.shape == (n_steps, batch, hidden_size)
    assert h.shape == (n_layers, batch, hidden_size)
    assert c.shape == (n_layers, batch, hidden_size)

    # Tight check against a reference using the same bf16 matmul-operand
    # rounding (f32 accumulation) as the kernel.
    out_r, (h_r, c_r) = lstm_reference(x, raw, n_layers, hidden_size,
                                       matmul_dtype=jnp.bfloat16)
    assert jnp.allclose(out, out_r, atol=1e-4, rtol=1e-4)
    assert jnp.allclose(h, h_r, atol=1e-4, rtol=1e-4)
    assert jnp.allclose(c, c_r, atol=1e-4, rtol=1e-4)

    # Loose check against full-f32 PyTorch-exact math (bf16 rounding only).
    out_f, (h_f, c_f) = lstm_reference(x, raw, n_layers, hidden_size,
                                       matmul_dtype=jnp.float32)
    assert jnp.allclose(out, out_f, atol=1e-1, rtol=1e-1)
    assert jnp.allclose(h, h_f, atol=1e-1, rtol=1e-1)
    assert jnp.allclose(c, c_f, atol=1e-1, rtol=1e-1)

    print("KERNEL_OK")
</pallas_src>

<mosaic_0001>
module attributes {stable_mosaic.version = 11 : i64} {
  func.func @_lstm_kernel(%arg0: i32, %arg1: i32, %arg2: memref<8x8x16xf32, #tpu.memory_space<vmem>>, %arg3: memref<2x8x128xf32, #tpu.memory_space<vmem>>, %arg4: memref<2x8x128xf32, #tpu.memory_space<vmem>>, %arg5: memref<144x512xbf16, #tpu.memory_space<vmem>>, %arg6: memref<1x256x512xbf16, #tpu.memory_space<vmem>>, %arg7: memref<2x1x512xf32, #tpu.memory_space<vmem>>, %arg8: memref<8x8x128xf32, #tpu.memory_space<vmem>>, %arg9: memref<2x8x128xf32, #tpu.memory_space<vmem>>, %arg10: memref<2x8x128xf32, #tpu.memory_space<vmem>>) attributes {dimension_semantics = [#tpu.dimension_semantics<parallel>, #tpu.dimension_semantics<arbitrary>], iteration_bounds = array<i64: 1, 1>, scalar_prefetch = 0 : i64, scratch_operands = 0 : i64, tpu.core_type = #tpu.core_type<tc>, window_params = [{transform_indices = @transform_0, window_bounds = array<i64: 8, 8, 16>}, {transform_indices = @transform_1, window_bounds = array<i64: 2, 8, 128>}, {transform_indices = @transform_2, window_bounds = array<i64: 2, 8, 128>}, {pipeline_mode = #tpu.pipeline_mode<synchronous>, transform_indices = @transform_3, window_bounds = array<i64: 144, 512>}, {pipeline_mode = #tpu.pipeline_mode<synchronous>, transform_indices = @transform_4, window_bounds = array<i64: 1, 256, 512>}, {pipeline_mode = #tpu.pipeline_mode<synchronous>, transform_indices = @transform_5, window_bounds = array<i64: 2, 1, 512>}, {transform_indices = @transform_6, window_bounds = array<i64: 8, 8, 128>}, {transform_indices = @transform_7, window_bounds = array<i64: 2, 8, 128>}, {transform_indices = @transform_8, window_bounds = array<i64: 2, 8, 128>}]} {
    %c0_i32 = arith.constant 0 : i32
    %0 = arith.cmpi eq, %arg1, %c0_i32 : i32
    %1 = arith.extui %0 : i1 to i32
    %c0_i32_0 = arith.constant 0 : i32
    %2 = arith.cmpi ne, %1, %c0_i32_0 : i32
    scf.if %2 {
      %c0_480 = arith.constant 0 : index
      %c0_481 = arith.constant 0 : index
      %c0_482 = arith.constant 0 : index
      %835 = vector.load %arg3[%c0_480, %c0_481, %c0_482] : memref<2x8x128xf32, #tpu.memory_space<vmem>>, vector<2x8x128xf32>
      %c0_483 = arith.constant 0 : index
      %c0_484 = arith.constant 0 : index
      %c0_485 = arith.constant 0 : index
      %836 = vector.load %arg9[%c0_483, %c0_484, %c0_485] : memref<2x8x128xf32, #tpu.memory_space<vmem>>, vector<2x8x128xf32>
      tpu.vector_store %arg9[%c0_483, %c0_484, %c0_485], %835 {strides = array<i32>} : memref<2x8x128xf32, #tpu.memory_space<vmem>>, vector<2x8x128xf32>,
      %c0_486 = arith.constant 0 : index
      %c0_487 = arith.constant 0 : index
      %c0_488 = arith.constant 0 : index
      %837 = vector.load %arg4[%c0_486, %c0_487, %c0_488] : memref<2x8x128xf32, #tpu.memory_space<vmem>>, vector<2x8x128xf32>
      %c0_489 = arith.constant 0 : index
      %c0_490 = arith.constant 0 : index
      %c0_491 = arith.constant 0 : index
      %838 = vector.load %arg10[%c0_489, %c0_490, %c0_491] : memref<2x8x128xf32, #tpu.memory_space<vmem>>, vector<2x8x128xf32>
      tpu.vector_store %arg10[%c0_489, %c0_490, %c0_491], %837 {strides = array<i32>} : memref<2x8x128xf32, #tpu.memory_space<vmem>>, vector<2x8x128xf32>,
    } else {
    }
    %c0 = arith.constant 0 : index
    %c0_1 = arith.constant 0 : index
    %c0_2 = arith.constant 0 : index
    %3 = vector.load %arg2[%c0, %c0_1, %c0_2] : memref<8x8x16xf32, #tpu.memory_space<vmem>>, vector<1x8x16xf32>
    %4 = vector.shape_cast %3 : vector<1x8x16xf32> to vector<8x16xf32>
    %c0_3 = arith.constant 0 : index
    %c0_4 = arith.constant 0 : index
    %c0_5 = arith.constant 0 : index
    %5 = vector.load %arg9[%c0_3, %c0_4, %c0_5] : memref<2x8x128xf32, #tpu.memory_space<vmem>>, vector<1x8x128xf32>
    %6 = vector.shape_cast %5 : vector<1x8x128xf32> to vector<8x128xf32>
    %c0_6 = arith.constant 0 : index
    %c0_7 = arith.constant 0 : index
    %c0_8 = arith.constant 0 : index
    %7 = vector.load %arg10[%c0_6, %c0_7, %c0_8] : memref<2x8x128xf32, #tpu.memory_space<vmem>>, vector<1x8x128xf32>
    %8 = vector.shape_cast %7 : vector<1x8x128xf32> to vector<8x128xf32>
    %c0_9 = arith.constant 0 : index
    %c0_10 = arith.constant 0 : index
    %9 = vector.load %arg5[%c0_9, %c0_10] : memref<144x512xbf16, #tpu.memory_space<vmem>>, vector<144x512xbf16>
    %10 = tpu.concatenate %6, %4 in 1 : vector<8x128xf32>, vector<8x16xf32> -> vector<8x144xf32>
    %11 = arith.truncf %10 : vector<8x144xf32> to vector<8x144xbf16>
    %cst = arith.constant dense<0.000000e+00> : vector<8x512xf32>
    %12 = tpu.matmul %11, %9, %cst {dimension_numbers = #tpu.dot_dimension_numbers<[1], [0], [0], [1], [0, 0, 1, 1], [], []>} : vector<8x144xbf16>, vector<144x512xbf16>, vector<8x512xf32> -> vector<8x512xf32>
    %c0_11 = arith.constant 0 : index
    %c0_12 = arith.constant 0 : index
    %c0_13 = arith.constant 0 : index
    %13 = vector.load %arg7[%c0_11, %c0_12, %c0_13] : memref<2x1x512xf32, #tpu.memory_space<vmem>>, vector<1x1x512xf32>
    %14 = vector.shape_cast %13 : vector<1x1x512xf32> to vector<1x512xf32>
    %15 = vector.broadcast %14 : vector<1x512xf32> to vector<8x512xf32>
    %16 = arith.addf %12, %15 : vector<8x512xf32>
    %17 = vector.extract_strided_slice %16 {offsets = [0, 0], sizes = [8, 128], strides = [1, 1]} : vector<8x512xf32> to vector<8x128xf32>
    %18 = vector.extract_strided_slice %16 {offsets = [0, 128], sizes = [8, 128], strides = [1, 1]} : vector<8x512xf32> to vector<8x128xf32>
    %19 = vector.extract_strided_slice %16 {offsets = [0, 256], sizes = [8, 128], strides = [1, 1]} : vector<8x512xf32> to vector<8x128xf32>
    %20 = vector.extract_strided_slice %16 {offsets = [0, 384], sizes = [8, 128], strides = [1, 1]} : vector<8x512xf32> to vector<8x128xf32>
    %cst_14 = arith.constant 5.000000e-01 : f32
    %21 = vector.broadcast %cst_14 : f32 to vector<8x128xf32>
    %22 = arith.mulf %21, %18 : vector<8x128xf32>
    %23 = math.tanh %22 : vector<8x128xf32>
    %cst_15 = arith.constant 5.000000e-01 : f32
    %24 = vector.broadcast %cst_15 : f32 to vector<8x128xf32>
    %25 = arith.mulf %24, %23 : vector<8x128xf32>
    %cst_16 = arith.constant 5.000000e-01 : f32
    %26 = vector.broadcast %cst_16 : f32 to vector<8x128xf32>
    %27 = arith.addf %25, %26 : vector<8x128xf32>
    %28 = arith.mulf %27, %8 : vector<8x128xf32>
    %cst_17 = arith.constant 5.000000e-01 : f32
    %29 = vector.broadcast %cst_17 : f32 to vector<8x128xf32>
    %30 = arith.mulf %29, %17 : vector<8x128xf32>
    %31 = math.tanh %30 : vector<8x128xf32>
    %cst_18 = arith.constant 5.000000e-01 : f32
    %32 = vector.broadcast %cst_18 : f32 to vector<8x128xf32>
    %33 = arith.mulf %32, %31 : vector<8x128xf32>
    %cst_19 = arith.constant 5.000000e-01 : f32
    %34 = vector.broadcast %cst_19 : f32 to vector<8x128xf32>
    %35 = arith.addf %33, %34 : vector<8x128xf32>
    %36 = math.tanh %19 : vector<8x128xf32>
    %37 = arith.mulf %35, %36 : vector<8x128xf32>
    %38 = arith.addf %28, %37 : vector<8x128xf32>
    %cst_20 = arith.constant 5.000000e-01 : f32
    %39 = vector.broadcast %cst_20 : f32 to vector<8x128xf32>
    %40 = arith.mulf %39, %20 : vector<8x128xf32>
    %41 = math.tanh %40 : vector<8x128xf32>
    %cst_21 = arith.constant 5.000000e-01 : f32
    %42 = vector.broadcast %cst_21 : f32 to vector<8x128xf32>
    %43 = arith.mulf %42, %41 : vector<8x128xf32>
    %cst_22 = arith.constant 5.000000e-01 : f32
    %44 = vector.broadcast %cst_22 : f32 to vector<8x128xf32>
    %45 = arith.addf %43, %44 : vector<8x128xf32>
    %46 = math.tanh %38 : vector<8x128xf32>
    %47 = arith.mulf %45, %46 : vector<8x128xf32>
    %c0_23 = arith.constant 0 : index
    %c0_24 = arith.constant 0 : index
    %c0_25 = arith.constant 0 : index
    %48 = vector.load %arg9[%c0_23, %c0_24, %c0_25] : memref<2x8x128xf32, #tpu.memory_space<vmem>>, vector<1x8x128xf32>
    %49 = vector.shape_cast %48 : vector<1x8x128xf32> to vector<8x128xf32>
    %50 = vector.shape_cast %47 : vector<8x128xf32> to vector<1x8x128xf32>
    tpu.vector_store %arg9[%c0_23, %c0_24, %c0_25], %50 {strides = array<i32>} : memref<2x8x128xf32, #tpu.memory_space<vmem>>, vector<1x8x128xf32>,
    %c0_26 = arith.constant 0 : index
    %c0_27 = arith.constant 0 : index
    %c0_28 = arith.constant 0 : index
    %51 = vector.load %arg10[%c0_26, %c0_27, %c0_28] : memref<2x8x128xf32, #tpu.memory_space<vmem>>, vector<1x8x128xf32>
    %52 = vector.shape_cast %51 : vector<1x8x128xf32> to vector<8x128xf32>
    %53 = vector.shape_cast %38 : vector<8x128xf32> to vector<1x8x128xf32>
    tpu.vector_store %arg10[%c0_26, %c0_27, %c0_28], %53 {strides = array<i32>} : memref<2x8x128xf32, #tpu.memory_space<vmem>>, vector<1x8x128xf32>,
    %c1 = arith.constant 1 : index
    %c0_29 = arith.constant 0 : index
    %c0_30 = arith.constant 0 : index
    %54 = vector.load %arg9[%c1, %c0_29, %c0_30] : memref<2x8x128xf32, #tpu.memory_space<vmem>>, vector<1x8x128xf32>
    %55 = vector.shape_cast %54 : vector<1x8x128xf32> to vector<8x128xf32>
    %c1_31 = arith.constant 1 : index
    %c0_32 = arith.constant 0 : index
    %c0_33 = arith.constant 0 : index
    %56 = vector.load %arg10[%c1_31, %c0_32, %c0_33] : memref<2x8x128xf32, #tpu.memory_space<vmem>>, vector<1x8x128xf32>
    %57 = vector.shape_cast %56 : vector<1x8x128xf32> to vector<8x128xf32>
    %c0_34 = arith.constant 0 : index
    %c0_35 = arith.constant 0 : index
    %c0_36 = arith.constant 0 : index
    %58 = vector.load %arg6[%c0_34, %c0_35, %c0_36] : memref<1x256x512xbf16, #tpu.memory_space<vmem>>, vector<1x256x512xbf16>
    %59 = vector.shape_cast %58 : vector<1x256x512xbf16> to vector<256x512xbf16>
    %60 = tpu.concatenate %55, %47 in 1 : vector<8x128xf32>, vector<8x128xf32> -> vector<8x256xf32>
    %61 = arith.truncf %60 : vector<8x256xf32> to vector<8x256xbf16>
    %cst_37 = arith.constant dense<0.000000e+00> : vector<8x512xf32>
    %62 = tpu.matmul %61, %59, %cst_37 {dimension_numbers = #tpu.dot_dimension_numbers<[1], [0], [0], [1], [0, 0, 1, 1], [], []>} : vector<8x256xbf16>, vector<256x512xbf16>, vector<8x512xf32> -> vector<8x512xf32>
    %c1_38 = arith.constant 1 : index
    %c0_39 = arith.constant 0 : index
    %c0_40 = arith.constant 0 : index
    %63 = vector.load %arg7[%c1_38, %c0_39, %c0_40] : memref<2x1x512xf32, #tpu.memory_space<vmem>>, vector<1x1x512xf32>
    %64 = vector.shape_cast %63 : vector<1x1x512xf32> to vector<1x512xf32>
    %65 = vector.broadcast %64 : vector<1x512xf32> to vector<8x512xf32>
    %66 = arith.addf %62, %65 : vector<8x512xf32>
    %67 = vector.extract_strided_slice %66 {offsets = [0, 0], sizes = [8, 128], strides = [1, 1]} : vector<8x512xf32> to vector<8x128xf32>
    %68 = vector.extract_strided_slice %66 {offsets = [0, 128], sizes = [8, 128], strides = [1, 1]} : vector<8x512xf32> to vector<8x128xf32>
    %69 = vector.extract_strided_slice %66 {offsets = [0, 256], sizes = [8, 128], strides = [1, 1]} : vector<8x512xf32> to vector<8x128xf32>
    %70 = vector.extract_strided_slice %66 {offsets = [0, 384], sizes = [8, 128], strides = [1, 1]} : vector<8x512xf32> to vector<8x128xf32>
    %cst_41 = arith.constant 5.000000e-01 : f32
    %71 = vector.broadcast %cst_41 : f32 to vector<8x128xf32>
    %72 = arith.mulf %71, %68 : vector<8x128xf32>
    %73 = math.tanh %72 : vector<8x128xf32>
    %cst_42 = arith.constant 5.000000e-01 : f32
    %74 = vector.broadcast %cst_42 : f32 to vector<8x128xf32>
    %75 = arith.mulf %74, %73 : vector<8x128xf32>
    %cst_43 = arith.constant 5.000000e-01 : f32
    %76 = vector.broadcast %cst_43 : f32 to vector<8x128xf32>
    %77 = arith.addf %75, %76 : vector<8x128xf32>
    %78 = arith.mulf %77, %57 : vector<8x128xf32>
    %cst_44 = arith.constant 5.000000e-01 : f32
    %79 = vector.broadcast %cst_44 : f32 to vector<8x128xf32>
    %80 = arith.mulf %79, %67 : vector<8x128xf32>
    %81 = math.tanh %80 : vector<8x128xf32>
    %cst_45 = arith.constant 5.000000e-01 : f32
    %82 = vector.broadcast %cst_45 : f32 to vector<8x128xf32>
    %83 = arith.mulf %82, %81 : vector<8x128xf32>
    %cst_46 = arith.constant 5.000000e-01 : f32
    %84 = vector.broadcast %cst_46 : f32 to vector<8x128xf32>
    %85 = arith.addf %83, %84 : vector<8x128xf32>
    %86 = math.tanh %69 : vector<8x128xf32>
    %87 = arith.mulf %85, %86 : vector<8x128xf32>
    %88 = arith.addf %78, %87 : vector<8x128xf32>
    %cst_47 = arith.constant 5.000000e-01 : f32
    %89 = vector.broadcast %cst_47 : f32 to vector<8x128xf32>
    %90 = arith.mulf %89, %70 : vector<8x128xf32>
    %91 = math.tanh %90 : vector<8x128xf32>
    %cst_48 = arith.constant 5.000000e-01 : f32
    %92 = vector.broadcast %cst_48 : f32 to vector<8x128xf32>
    %93 = arith.mulf %92, %91 : vector<8x128xf32>
    %cst_49 = arith.constant 5.000000e-01 : f32
    %94 = vector.broadcast %cst_49 : f32 to vector<8x128xf32>
    %95 = arith.addf %93, %94 : vector<8x128xf32>
    %96 = math.tanh %88 : vector<8x128xf32>
    %97 = arith.mulf %95, %96 : vector<8x128xf32>
    %c1_50 = arith.constant 1 : index
    %c0_51 = arith.constant 0 : index
    %c0_52 = arith.constant 0 : index
    %98 = vector.load %arg9[%c1_50, %c0_51, %c0_52] : memref<2x8x128xf32, #tpu.memory_space<vmem>>, vector<1x8x128xf32>
    %99 = vector.shape_cast %98 : vector<1x8x128xf32> to vector<8x128xf32>
    %100 = vector.shape_cast %97 : vector<8x128xf32> to vector<1x8x128xf32>
    tpu.vector_store %arg9[%c1_50, %c0_51, %c0_52], %100 {strides = array<i32>} : memref<2x8x128xf32, #tpu.memory_space<vmem>>, vector<1x8x128xf32>,
    %c1_53 = arith.constant 1 : index
    %c0_54 = arith.constant 0 : index
    %c0_55 = arith.constant 0 : index
    %101 = vector.load %arg10[%c1_53, %c0_54, %c0_55] : memref<2x8x128xf32, #tpu.memory_space<vmem>>, vector<1x8x128xf32>
    %102 = vector.shape_cast %101 : vector<1x8x128xf32> to vector<8x128xf32>
    %103 = vector.shape_cast %88 : vector<8x128xf32> to vector<1x8x128xf32>
    tpu.vector_store %arg10[%c1_53, %c0_54, %c0_55], %103 {strides = array<i32>} : memref<2x8x128xf32, #tpu.memory_space<vmem>>, vector<1x8x128xf32>,
    %c0_56 = arith.constant 0 : index
    %c0_57 = arith.constant 0 : index
    %c0_58 = arith.constant 0 : index
    %104 = vector.load %arg8[%c0_56, %c0_57, %c0_58] : memref<8x8x128xf32, #tpu.memory_space<vmem>>, vector<1x8x128xf32>
    %105 = vector.shape_cast %104 : vector<1x8x128xf32> to vector<8x128xf32>
    %106 = vector.shape_cast %97 : vector<8x128xf32> to vector<1x8x128xf32>
    tpu.vector_store %arg8[%c0_56, %c0_57, %c0_58], %106 {strides = array<i32>} : memref<8x8x128xf32, #tpu.memory_space<vmem>>, vector<1x8x128xf32>,
    %c1_59 = arith.constant 1 : index
    %c0_60 = arith.constant 0 : index
    %c0_61 = arith.constant 0 : index
    %107 = vector.load %arg2[%c1_59, %c0_60, %c0_61] : memref<8x8x16xf32, #tpu.memory_space<vmem>>, vector<1x8x16xf32>
    %108 = vector.shape_cast %107 : vector<1x8x16xf32> to vector<8x16xf32>
    %c0_62 = arith.constant 0 : index
    %c0_63 = arith.constant 0 : index
    %c0_64 = arith.constant 0 : index
    %109 = vector.load %arg9[%c0_62, %c0_63, %c0_64] : memref<2x8x128xf32, #tpu.memory_space<vmem>>, vector<1x8x128xf32>
    %110 = vector.shape_cast %109 : vector<1x8x128xf32> to vector<8x128xf32>
    %c0_65 = arith.constant 0 : index
    %c0_66 = arith.constant 0 : index
    %c0_67 = arith.constant 0 : index
    %111 = vector.load %arg10[%c0_65, %c0_66, %c0_67] : memref<2x8x128xf32, #tpu.memory_space<vmem>>, vector<1x8x128xf32>
    %112 = vector.shape_cast %111 : vector<1x8x128xf32> to vector<8x128xf32>
    %c0_68 = arith.constant 0 : index
    %c0_69 = arith.constant 0 : index
    %113 = vector.load %arg5[%c0_68, %c0_69] : memref<144x512xbf16, #tpu.memory_space<vmem>>, vector<144x512xbf16>
    %114 = tpu.concatenate %110, %108 in 1 : vector<8x128xf32>, vector<8x16xf32> -> vector<8x144xf32>
    %115 = arith.truncf %114 : vector<8x144xf32> to vector<8x144xbf16>
    %cst_70 = arith.constant dense<0.000000e+00> : vector<8x512xf32>
    %116 = tpu.matmul %115, %113, %cst_70 {dimension_numbers = #tpu.dot_dimension_numbers<[1], [0], [0], [1], [0, 0, 1, 1], [], []>} : vector<8x144xbf16>, vector<144x512xbf16>, vector<8x512xf32> -> vector<8x512xf32>
    %c0_71 = arith.constant 0 : index
    %c0_72 = arith.constant 0 : index
    %c0_73 = arith.constant 0 : index
    %117 = vector.load %arg7[%c0_71, %c0_72, %c0_73] : memref<2x1x512xf32, #tpu.memory_space<vmem>>, vector<1x1x512xf32>
    %118 = vector.shape_cast %117 : vector<1x1x512xf32> to vector<1x512xf32>
    %119 = vector.broadcast %118 : vector<1x512xf32> to vector<8x512xf32>
    %120 = arith.addf %116, %119 : vector<8x512xf32>
    %121 = vector.extract_strided_slice %120 {offsets = [0, 0], sizes = [8, 128], strides = [1, 1]} : vector<8x512xf32> to vector<8x128xf32>
    %122 = vector.extract_strided_slice %120 {offsets = [0, 128], sizes = [8, 128], strides = [1, 1]} : vector<8x512xf32> to vector<8x128xf32>
    %123 = vector.extract_strided_slice %120 {offsets = [0, 256], sizes = [8, 128], strides = [1, 1]} : vector<8x512xf32> to vector<8x128xf32>
    %124 = vector.extract_strided_slice %120 {offsets = [0, 384], sizes = [8, 128], strides = [1, 1]} : vector<8x512xf32> to vector<8x128xf32>
    %cst_74 = arith.constant 5.000000e-01 : f32
    %125 = vector.broadcast %cst_74 : f32 to vector<8x128xf32>
    %126 = arith.mulf %125, %122 : vector<8x128xf32>
    %127 = math.tanh %126 : vector<8x128xf32>
    %cst_75 = arith.constant 5.000000e-01 : f32
    %128 = vector.broadcast %cst_75 : f32 to vector<8x128xf32>
    %129 = arith.mulf %128, %127 : vector<8x128xf32>
    %cst_76 = arith.constant 5.000000e-01 : f32
    %130 = vector.broadcast %cst_76 : f32 to vector<8x128xf32>
    %131 = arith.addf %129, %130 : vector<8x128xf32>
    %132 = arith.mulf %131, %112 : vector<8x128xf32>
    %cst_77 = arith.constant 5.000000e-01 : f32
    %133 = vector.broadcast %cst_77 : f32 to vector<8x128xf32>
    %134 = arith.mulf %133, %121 : vector<8x128xf32>
    %135 = math.tanh %134 : vector<8x128xf32>
    %cst_78 = arith.constant 5.000000e-01 : f32
    %136 = vector.broadcast %cst_78 : f32 to vector<8x128xf32>
    %137 = arith.mulf %136, %135 : vector<8x128xf32>
    %cst_79 = arith.constant 5.000000e-01 : f32
    %138 = vector.broadcast %cst_79 : f32 to vector<8x128xf32>
    %139 = arith.addf %137, %138 : vector<8x128xf32>
    %140 = math.tanh %123 : vector<8x128xf32>
    %141 = arith.mulf %139, %140 : vector<8x128xf32>
    %142 = arith.addf %132, %141 : vector<8x128xf32>
    %cst_80 = arith.constant 5.000000e-01 : f32
    %143 = vector.broadcast %cst_80 : f32 to vector<8x128xf32>
    %144 = arith.mulf %143, %124 : vector<8x128xf32>
    %145 = math.tanh %144 : vector<8x128xf32>
    %cst_81 = arith.constant 5.000000e-01 : f32
    %146 = vector.broadcast %cst_81 : f32 to vector<8x128xf32>
    %147 = arith.mulf %146, %145 : vector<8x128xf32>
    %cst_82 = arith.constant 5.000000e-01 : f32
    %148 = vector.broadcast %cst_82 : f32 to vector<8x128xf32>
    %149 = arith.addf %147, %148 : vector<8x128xf32>
    %150 = math.tanh %142 : vector<8x128xf32>
    %151 = arith.mulf %149, %150 : vector<8x128xf32>
    %c0_83 = arith.constant 0 : index
    %c0_84 = arith.constant 0 : index
    %c0_85 = arith.constant 0 : index
    %152 = vector.load %arg9[%c0_83, %c0_84, %c0_85] : memref<2x8x128xf32, #tpu.memory_space<vmem>>, vector<1x8x128xf32>
    %153 = vector.shape_cast %152 : vector<1x8x128xf32> to vector<8x128xf32>
    %154 = vector.shape_cast %151 : vector<8x128xf32> to vector<1x8x128xf32>
    tpu.vector_store %arg9[%c0_83, %c0_84, %c0_85], %154 {strides = array<i32>} : memref<2x8x128xf32, #tpu.memory_space<vmem>>, vector<1x8x128xf32>,
    %c0_86 = arith.constant 0 : index
    %c0_87 = arith.constant 0 : index
    %c0_88 = arith.constant 0 : index
    %155 = vector.load %arg10[%c0_86, %c0_87, %c0_88] : memref<2x8x128xf32, #tpu.memory_space<vmem>>, vector<1x8x128xf32>
    %156 = vector.shape_cast %155 : vector<1x8x128xf32> to vector<8x128xf32>
    %157 = vector.shape_cast %142 : vector<8x128xf32> to vector<1x8x128xf32>
    tpu.vector_store %arg10[%c0_86, %c0_87, %c0_88], %157 {strides = array<i32>} : memref<2x8x128xf32, #tpu.memory_space<vmem>>, vector<1x8x128xf32>,
    %c1_89 = arith.constant 1 : index
    %c0_90 = arith.constant 0 : index
    %c0_91 = arith.constant 0 : index
    %158 = vector.load %arg9[%c1_89, %c0_90, %c0_91] : memref<2x8x128xf32, #tpu.memory_space<vmem>>, vector<1x8x128xf32>
    %159 = vector.shape_cast %158 : vector<1x8x128xf32> to vector<8x128xf32>
    %c1_92 = arith.constant 1 : index
    %c0_93 = arith.constant 0 : index
    %c0_94 = arith.constant 0 : index
    %160 = vector.load %arg10[%c1_92, %c0_93, %c0_94] : memref<2x8x128xf32, #tpu.memory_space<vmem>>, vector<1x8x128xf32>
    %161 = vector.shape_cast %160 : vector<1x8x128xf32> to vector<8x128xf32>
    %c0_95 = arith.constant 0 : index
    %c0_96 = arith.constant 0 : index
    %c0_97 = arith.constant 0 : index
    %162 = vector.load %arg6[%c0_95, %c0_96, %c0_97] : memref<1x256x512xbf16, #tpu.memory_space<vmem>>, vector<1x256x512xbf16>
    %163 = vector.shape_cast %162 : vector<1x256x512xbf16> to vector<256x512xbf16>
    %164 = tpu.concatenate %159, %151 in 1 : vector<8x128xf32>, vector<8x128xf32> -> vector<8x256xf32>
    %165 = arith.truncf %164 : vector<8x256xf32> to vector<8x256xbf16>
    %cst_98 = arith.constant dense<0.000000e+00> : vector<8x512xf32>
    %166 = tpu.matmul %165, %163, %cst_98 {dimension_numbers = #tpu.dot_dimension_numbers<[1], [0], [0], [1], [0, 0, 1, 1], [], []>} : vector<8x256xbf16>, vector<256x512xbf16>, vector<8x512xf32> -> vector<8x512xf32>
    %c1_99 = arith.constant 1 : index
    %c0_100 = arith.constant 0 : index
    %c0_101 = arith.constant 0 : index
    %167 = vector.load %arg7[%c1_99, %c0_100, %c0_101] : memref<2x1x512xf32, #tpu.memory_space<vmem>>, vector<1x1x512xf32>
    %168 = vector.shape_cast %167 : vector<1x1x512xf32> to vector<1x512xf32>
    %169 = vector.broadcast %168 : vector<1x512xf32> to vector<8x512xf32>
    %170 = arith.addf %166, %169 : vector<8x512xf32>
    %171 = vector.extract_strided_slice %170 {offsets = [0, 0], sizes = [8, 128], strides = [1, 1]} : vector<8x512xf32> to vector<8x128xf32>
    %172 = vector.extract_strided_slice %170 {offsets = [0, 128], sizes = [8, 128], strides = [1, 1]} : vector<8x512xf32> to vector<8x128xf32>
    %173 = vector.extract_strided_slice %170 {offsets = [0, 256], sizes = [8, 128], strides = [1, 1]} : vector<8x512xf32> to vector<8x128xf32>
    %174 = vector.extract_strided_slice %170 {offsets = [0, 384], sizes = [8, 128], strides = [1, 1]} : vector<8x512xf32> to vector<8x128xf32>
    %cst_102 = arith.constant 5.000000e-01 : f32
    %175 = vector.broadcast %cst_102 : f32 to vector<8x128xf32>
    %176 = arith.mulf %175, %172 : vector<8x128xf32>
    %177 = math.tanh %176 : vector<8x128xf32>
    %cst_103 = arith.constant 5.000000e-01 : f32
    %178 = vector.broadcast %cst_103 : f32 to vector<8x128xf32>
    %179 = arith.mulf %178, %177 : vector<8x128xf32>
    %cst_104 = arith.constant 5.000000e-01 : f32
    %180 = vector.broadcast %cst_104 : f32 to vector<8x128xf32>
    %181 = arith.addf %179, %180 : vector<8x128xf32>
    %182 = arith.mulf %181, %161 : vector<8x128xf32>
    %cst_105 = arith.constant 5.000000e-01 : f32
    %183 = vector.broadcast %cst_105 : f32 to vector<8x128xf32>
    %184 = arith.mulf %183, %171 : vector<8x128xf32>
    %185 = math.tanh %184 : vector<8x128xf32>
    %cst_106 = arith.constant 5.000000e-01 : f32
    %186 = vector.broadcast %cst_106 : f32 to vector<8x128xf32>
    %187 = arith.mulf %186, %185 : vector<8x128xf32>
    %cst_107 = arith.constant 5.000000e-01 : f32
    %188 = vector.broadcast %cst_107 : f32 to vector<8x128xf32>
    %189 = arith.addf %187, %188 : vector<8x128xf32>
    %190 = math.tanh %173 : vector<8x128xf32>
    %191 = arith.mulf %189, %190 : vector<8x128xf32>
    %192 = arith.addf %182, %191 : vector<8x128xf32>
    %cst_108 = arith.constant 5.000000e-01 : f32
    %193 = vector.broadcast %cst_108 : f32 to vector<8x128xf32>
    %194 = arith.mulf %193, %174 : vector<8x128xf32>
    %195 = math.tanh %194 : vector<8x128xf32>
    %cst_109 = arith.constant 5.000000e-01 : f32
    %196 = vector.broadcast %cst_109 : f32 to vector<8x128xf32>
    %197 = arith.mulf %196, %195 : vector<8x128xf32>
    %cst_110 = arith.constant 5.000000e-01 : f32
    %198 = vector.broadcast %cst_110 : f32 to vector<8x128xf32>
    %199 = arith.addf %197, %198 : vector<8x128xf32>
    %200 = math.tanh %192 : vector<8x128xf32>
    %201 = arith.mulf %199, %200 : vector<8x128xf32>
    %c1_111 = arith.constant 1 : index
    %c0_112 = arith.constant 0 : index
    %c0_113 = arith.constant 0 : index
    %202 = vector.load %arg9[%c1_111, %c0_112, %c0_113] : memref<2x8x128xf32, #tpu.memory_space<vmem>>, vector<1x8x128xf32>
    %203 = vector.shape_cast %202 : vector<1x8x128xf32> to vector<8x128xf32>
    %204 = vector.shape_cast %201 : vector<8x128xf32> to vector<1x8x128xf32>
    tpu.vector_store %arg9[%c1_111, %c0_112, %c0_113], %204 {strides = array<i32>} : memref<2x8x128xf32, #tpu.memory_space<vmem>>, vector<1x8x128xf32>,
    %c1_114 = arith.constant 1 : index
    %c0_115 = arith.constant 0 : index
    %c0_116 = arith.constant 0 : index
    %205 = vector.load %arg10[%c1_114, %c0_115, %c0_116] : memref<2x8x128xf32, #tpu.memory_space<vmem>>, vector<1x8x128xf32>
    %206 = vector.shape_cast %205 : vector<1x8x128xf32> to vector<8x128xf32>
    %207 = vector.shape_cast %192 : vector<8x128xf32> to vector<1x8x128xf32>
    tpu.vector_store %arg10[%c1_114, %c0_115, %c0_116], %207 {strides = array<i32>} : memref<2x8x128xf32, #tpu.memory_space<vmem>>, vector<1x8x128xf32>,
    %c1_117 = arith.constant 1 : index
    %c0_118 = arith.constant 0 : index
    %c0_119 = arith.constant 0 : index
    %208 = vector.load %arg8[%c1_117, %c0_118, %c0_119] : memref<8x8x128xf32, #tpu.memory_space<vmem>>, vector<1x8x128xf32>
    %209 = vector.shape_cast %208 : vector<1x8x128xf32> to vector<8x128xf32>
    %210 = vector.shape_cast %201 : vector<8x128xf32> to vector<1x8x128xf32>
    tpu.vector_store %arg8[%c1_117, %c0_118, %c0_119], %210 {strides = array<i32>} : memref<8x8x128xf32, #tpu.memory_space<vmem>>, vector<1x8x128xf32>,
    %c2 = arith.constant 2 : index
    %c0_120 = arith.constant 0 : index
    %c0_121 = arith.constant 0 : index
    %211 = vector.load %arg2[%c2, %c0_120, %c0_121] : memref<8x8x16xf32, #tpu.memory_space<vmem>>, vector<1x8x16xf32>
    %212 = vector.shape_cast %211 : vector<1x8x16xf32> to vector<8x16xf32>
    %c0_122 = arith.constant 0 : index
    %c0_123 = arith.constant 0 : index
    %c0_124 = arith.constant 0 : index
    %213 = vector.load %arg9[%c0_122, %c0_123, %c0_124] : memref<2x8x128xf32, #tpu.memory_space<vmem>>, vector<1x8x128xf32>
    %214 = vector.shape_cast %213 : vector<1x8x128xf32> to vector<8x128xf32>
    %c0_125 = arith.constant 0 : index
    %c0_126 = arith.constant 0 : index
    %c0_127 = arith.constant 0 : index
    %215 = vector.load %arg10[%c0_125, %c0_126, %c0_127] : memref<2x8x128xf32, #tpu.memory_space<vmem>>, vector<1x8x128xf32>
    %216 = vector.shape_cast %215 : vector<1x8x128xf32> to vector<8x128xf32>
    %c0_128 = arith.constant 0 : index
    %c0_129 = arith.constant 0 : index
    %217 = vector.load %arg5[%c0_128, %c0_129] : memref<144x512xbf16, #tpu.memory_space<vmem>>, vector<144x512xbf16>
    %218 = tpu.concatenate %214, %212 in 1 : vector<8x128xf32>, vector<8x16xf32> -> vector<8x144xf32>
    %219 = arith.truncf %218 : vector<8x144xf32> to vector<8x144xbf16>
    %cst_130 = arith.constant dense<0.000000e+00> : vector<8x512xf32>
    %220 = tpu.matmul %219, %217, %cst_130 {dimension_numbers = #tpu.dot_dimension_numbers<[1], [0], [0], [1], [0, 0, 1, 1], [], []>} : vector<8x144xbf16>, vector<144x512xbf16>, vector<8x512xf32> -> vector<8x512xf32>
    %c0_131 = arith.constant 0 : index
    %c0_132 = arith.constant 0 : index
    %c0_133 = arith.constant 0 : index
    %221 = vector.load %arg7[%c0_131, %c0_132, %c0_133] : memref<2x1x512xf32, #tpu.memory_space<vmem>>, vector<1x1x512xf32>
    %222 = vector.shape_cast %221 : vector<1x1x512xf32> to vector<1x512xf32>
    %223 = vector.broadcast %222 : vector<1x512xf32> to vector<8x512xf32>
    %224 = arith.addf %220, %223 : vector<8x512xf32>
    %225 = vector.extract_strided_slice %224 {offsets = [0, 0], sizes = [8, 128], strides = [1, 1]} : vector<8x512xf32> to vector<8x128xf32>
    %226 = vector.extract_strided_slice %224 {offsets = [0, 128], sizes = [8, 128], strides = [1, 1]} : vector<8x512xf32> to vector<8x128xf32>
    %227 = vector.extract_strided_slice %224 {offsets = [0, 256], sizes = [8, 128], strides = [1, 1]} : vector<8x512xf32> to vector<8x128xf32>
    %228 = vector.extract_strided_slice %224 {offsets = [0, 384], sizes = [8, 128], strides = [1, 1]} : vector<8x512xf32> to vector<8x128xf32>
    %cst_134 = arith.constant 5.000000e-01 : f32
    %229 = vector.broadcast %cst_134 : f32 to vector<8x128xf32>
    %230 = arith.mulf %229, %226 : vector<8x128xf32>
    %231 = math.tanh %230 : vector<8x128xf32>
    %cst_135 = arith.constant 5.000000e-01 : f32
    %232 = vector.broadcast %cst_135 : f32 to vector<8x128xf32>
    %233 = arith.mulf %232, %231 : vector<8x128xf32>
    %cst_136 = arith.constant 5.000000e-01 : f32
    %234 = vector.broadcast %cst_136 : f32 to vector<8x128xf32>
    %235 = arith.addf %233, %234 : vector<8x128xf32>
    %236 = arith.mulf %235, %216 : vector<8x128xf32>
    %cst_137 = arith.constant 5.000000e-01 : f32
    %237 = vector.broadcast %cst_137 : f32 to vector<8x128xf32>
    %238 = arith.mulf %237, %225 : vector<8x128xf32>
    %239 = math.tanh %238 : vector<8x128xf32>
    %cst_138 = arith.constant 5.000000e-01 : f32
    %240 = vector.broadcast %cst_138 : f32 to vector<8x128xf32>
    %241 = arith.mulf %240, %239 : vector<8x128xf32>
    %cst_139 = arith.constant 5.000000e-01 : f32
    %242 = vector.broadcast %cst_139 : f32 to vector<8x128xf32>
    %243 = arith.addf %241, %242 : vector<8x128xf32>
    %244 = math.tanh %227 : vector<8x128xf32>
    %245 = arith.mulf %243, %244 : vector<8x128xf32>
    %246 = arith.addf %236, %245 : vector<8x128xf32>
    %cst_140 = arith.constant 5.000000e-01 : f32
    %247 = vector.broadcast %cst_140 : f32 to vector<8x128xf32>
    %248 = arith.mulf %247, %228 : vector<8x128xf32>
    %249 = math.tanh %248 : vector<8x128xf32>
    %cst_141 = arith.constant 5.000000e-01 : f32
    %250 = vector.broadcast %cst_141 : f32 to vector<8x128xf32>
    %251 = arith.mulf %250, %249 : vector<8x128xf32>
    %cst_142 = arith.constant 5.000000e-01 : f32
    %252 = vector.broadcast %cst_142 : f32 to vector<8x128xf32>
    %253 = arith.addf %251, %252 : vector<8x128xf32>
    %254 = math.tanh %246 : vector<8x128xf32>
    %255 = arith.mulf %253, %254 : vector<8x128xf32>
    %c0_143 = arith.constant 0 : index
    %c0_144 = arith.constant 0 : index
    %c0_145 = arith.constant 0 : index
    %256 = vector.load %arg9[%c0_143, %c0_144, %c0_145] : memref<2x8x128xf32, #tpu.memory_space<vmem>>, vector<1x8x128xf32>
    %257 = vector.shape_cast %256 : vector<1x8x128xf32> to vector<8x128xf32>
    %258 = vector.shape_cast %255 : vector<8x128xf32> to vector<1x8x128xf32>
    tpu.vector_store %arg9[%c0_143, %c0_144, %c0_145], %258 {strides = array<i32>} : memref<2x8x128xf32, #tpu.memory_space<vmem>>, vector<1x8x128xf32>,
    %c0_146 = arith.constant 0 : index
    %c0_147 = arith.constant 0 : index
    %c0_148 = arith.constant 0 : index
    %259 = vector.load %arg10[%c0_146, %c0_147, %c0_148] : memref<2x8x128xf32, #tpu.memory_space<vmem>>, vector<1x8x128xf32>
    %260 = vector.shape_cast %259 : vector<1x8x128xf32> to vector<8x128xf32>
    %261 = vector.shape_cast %246 : vector<8x128xf32> to vector<1x8x128xf32>
    tpu.vector_store %arg10[%c0_146, %c0_147, %c0_148], %261 {strides = array<i32>} : memref<2x8x128xf32, #tpu.memory_space<vmem>>, vector<1x8x128xf32>,
    %c1_149 = arith.constant 1 : index
    %c0_150 = arith.constant 0 : index
    %c0_151 = arith.constant 0 : index
    %262 = vector.load %arg9[%c1_149, %c0_150, %c0_151] : memref<2x8x128xf32, #tpu.memory_space<vmem>>, vector<1x8x128xf32>
    %263 = vector.shape_cast %262 : vector<1x8x128xf32> to vector<8x128xf32>
    %c1_152 = arith.constant 1 : index
    %c0_153 = arith.constant 0 : index
    %c0_154 = arith.constant 0 : index
    %264 = vector.load %arg10[%c1_152, %c0_153, %c0_154] : memref<2x8x128xf32, #tpu.memory_space<vmem>>, vector<1x8x128xf32>
    %265 = vector.shape_cast %264 : vector<1x8x128xf32> to vector<8x128xf32>
    %c0_155 = arith.constant 0 : index
    %c0_156 = arith.constant 0 : index
    %c0_157 = arith.constant 0 : index
    %266 = vector.load %arg6[%c0_155, %c0_156, %c0_157] : memref<1x256x512xbf16, #tpu.memory_space<vmem>>, vector<1x256x512xbf16>
    %267 = vector.shape_cast %266 : vector<1x256x512xbf16> to vector<256x512xbf16>
    %268 = tpu.concatenate %263, %255 in 1 : vector<8x128xf32>, vector<8x128xf32> -> vector<8x256xf32>
    %269 = arith.truncf %268 : vector<8x256xf32> to vector<8x256xbf16>
    %cst_158 = arith.constant dense<0.000000e+00> : vector<8x512xf32>
    %270 = tpu.matmul %269, %267, %cst_158 {dimension_numbers = #tpu.dot_dimension_numbers<[1], [0], [0], [1], [0, 0, 1, 1], [], []>} : vector<8x256xbf16>, vector<256x512xbf16>, vector<8x512xf32> -> vector<8x512xf32>
    %c1_159 = arith.constant 1 : index
    %c0_160 = arith.constant 0 : index
    %c0_161 = arith.constant 0 : index
    %271 = vector.load %arg7[%c1_159, %c0_160, %c0_161] : memref<2x1x512xf32, #tpu.memory_space<vmem>>, vector<1x1x512xf32>
    %272 = vector.shape_cast %271 : vector<1x1x512xf32> to vector<1x512xf32>
    %273 = vector.broadcast %272 : vector<1x512xf32> to vector<8x512xf32>
    %274 = arith.addf %270, %273 : vector<8x512xf32>
    %275 = vector.extract_strided_slice %274 {offsets = [0, 0], sizes = [8, 128], strides = [1, 1]} : vector<8x512xf32> to vector<8x128xf32>
    %276 = vector.extract_strided_slice %274 {offsets = [0, 128], sizes = [8, 128], strides = [1, 1]} : vector<8x512xf32> to vector<8x128xf32>
    %277 = vector.extract_strided_slice %274 {offsets = [0, 256], sizes = [8, 128], strides = [1, 1]} : vector<8x512xf32> to vector<8x128xf32>
    %278 = vector.extract_strided_slice %274 {offsets = [0, 384], sizes = [8, 128], strides = [1, 1]} : vector<8x512xf32> to vector<8x128xf32>
    %cst_162 = arith.constant 5.000000e-01 : f32
    %279 = vector.broadcast %cst_162 : f32 to vector<8x128xf32>
    %280 = arith.mulf %279, %276 : vector<8x128xf32>
    %281 = math.tanh %280 : vector<8x128xf32>
    %cst_163 = arith.constant 5.000000e-01 : f32
    %282 = vector.broadcast %cst_163 : f32 to vector<8x128xf32>
    %283 = arith.mulf %282, %281 : vector<8x128xf32>
    %cst_164 = arith.constant 5.000000e-01 : f32
    %284 = vector.broadcast %cst_164 : f32 to vector<8x128xf32>
    %285 = arith.addf %283, %284 : vector<8x128xf32>
    %286 = arith.mulf %285, %265 : vector<8x128xf32>
    %cst_165 = arith.constant 5.000000e-01 : f32
    %287 = vector.broadcast %cst_165 : f32 to vector<8x128xf32>
    %288 = arith.mulf %287, %275 : vector<8x128xf32>
    %289 = math.tanh %288 : vector<8x128xf32>
    %cst_166 = arith.constant 5.000000e-01 : f32
    %290 = vector.broadcast %cst_166 : f32 to vector<8x128xf32>
    %291 = arith.mulf %290, %289 : vector<8x128xf32>
    %cst_167 = arith.constant 5.000000e-01 : f32
    %292 = vector.broadcast %cst_167 : f32 to vector<8x128xf32>
    %293 = arith.addf %291, %292 : vector<8x128xf32>
    %294 = math.tanh %277 : vector<8x128xf32>
    %295 = arith.mulf %293, %294 : vector<8x128xf32>
    %296 = arith.addf %286, %295 : vector<8x128xf32>
    %cst_168 = arith.constant 5.000000e-01 : f32
    %297 = vector.broadcast %cst_168 : f32 to vector<8x128xf32>
    %298 = arith.mulf %297, %278 : vector<8x128xf32>
    %299 = math.tanh %298 : vector<8x128xf32>
    %cst_169 = arith.constant 5.000000e-01 : f32
    %300 = vector.broadcast %cst_169 : f32 to vector<8x128xf32>
    %301 = arith.mulf %300, %299 : vector<8x128xf32>
    %cst_170 = arith.constant 5.000000e-01 : f32
    %302 = vector.broadcast %cst_170 : f32 to vector<8x128xf32>
    %303 = arith.addf %301, %302 : vector<8x128xf32>
    %304 = math.tanh %296 : vector<8x128xf32>
    %305 = arith.mulf %303, %304 : vector<8x128xf32>
    %c1_171 = arith.constant 1 : index
    %c0_172 = arith.constant 0 : index
    %c0_173 = arith.constant 0 : index
    %306 = vector.load %arg9[%c1_171, %c0_172, %c0_173] : memref<2x8x128xf32, #tpu.memory_space<vmem>>, vector<1x8x128xf32>
    %307 = vector.shape_cast %306 : vector<1x8x128xf32> to vector<8x128xf32>
    %308 = vector.shape_cast %305 : vector<8x128xf32> to vector<1x8x128xf32>
    tpu.vector_store %arg9[%c1_171, %c0_172, %c0_173], %308 {strides = array<i32>} : memref<2x8x128xf32, #tpu.memory_space<vmem>>, vector<1x8x128xf32>,
    %c1_174 = arith.constant 1 : index
    %c0_175 = arith.constant 0 : index
    %c0_176 = arith.constant 0 : index
    %309 = vector.load %arg10[%c1_174, %c0_175, %c0_176] : memref<2x8x128xf32, #tpu.memory_space<vmem>>, vector<1x8x128xf32>
    %310 = vector.shape_cast %309 : vector<1x8x128xf32> to vector<8x128xf32>
    %311 = vector.shape_cast %296 : vector<8x128xf32> to vector<1x8x128xf32>
    tpu.vector_store %arg10[%c1_174, %c0_175, %c0_176], %311 {strides = array<i32>} : memref<2x8x128xf32, #tpu.memory_space<vmem>>, vector<1x8x128xf32>,
    %c2_177 = arith.constant 2 : index
    %c0_178 = arith.constant 0 : index
    %c0_179 = arith.constant 0 : index
    %312 = vector.load %arg8[%c2_177, %c0_178, %c0_179] : memref<8x8x128xf32, #tpu.memory_space<vmem>>, vector<1x8x128xf32>
    %313 = vector.shape_cast %312 : vector<1x8x128xf32> to vector<8x128xf32>
    %314 = vector.shape_cast %305 : vector<8x128xf32> to vector<1x8x128xf32>
    tpu.vector_store %arg8[%c2_177, %c0_178, %c0_179], %314 {strides = array<i32>} : memref<8x8x128xf32, #tpu.memory_space<vmem>>, vector<1x8x128xf32>,
    %c3 = arith.constant 3 : index
    %c0_180 = arith.constant 0 : index
    %c0_181 = arith.constant 0 : index
    %315 = vector.load %arg2[%c3, %c0_180, %c0_181] : memref<8x8x16xf32, #tpu.memory_space<vmem>>, vector<1x8x16xf32>
    %316 = vector.shape_cast %315 : vector<1x8x16xf32> to vector<8x16xf32>
    %c0_182 = arith.constant 0 : index
    %c0_183 = arith.constant 0 : index
    %c0_184 = arith.constant 0 : index
    %317 = vector.load %arg9[%c0_182, %c0_183, %c0_184] : memref<2x8x128xf32, #tpu.memory_space<vmem>>, vector<1x8x128xf32>
    %318 = vector.shape_cast %317 : vector<1x8x128xf32> to vector<8x128xf32>
    %c0_185 = arith.constant 0 : index
    %c0_186 = arith.constant 0 : index
    %c0_187 = arith.constant 0 : index
    %319 = vector.load %arg10[%c0_185, %c0_186, %c0_187] : memref<2x8x128xf32, #tpu.memory_space<vmem>>, vector<1x8x128xf32>
    %320 = vector.shape_cast %319 : vector<1x8x128xf32> to vector<8x128xf32>
    %c0_188 = arith.constant 0 : index
    %c0_189 = arith.constant 0 : index
    %321 = vector.load %arg5[%c0_188, %c0_189] : memref<144x512xbf16, #tpu.memory_space<vmem>>, vector<144x512xbf16>
    %322 = tpu.concatenate %318, %316 in 1 : vector<8x128xf32>, vector<8x16xf32> -> vector<8x144xf32>
    %323 = arith.truncf %322 : vector<8x144xf32> to vector<8x144xbf16>
    %cst_190 = arith.constant dense<0.000000e+00> : vector<8x512xf32>
    %324 = tpu.matmul %323, %321, %cst_190 {dimension_numbers = #tpu.dot_dimension_numbers<[1], [0], [0], [1], [0, 0, 1, 1], [], []>} : vector<8x144xbf16>, vector<144x512xbf16>, vector<8x512xf32> -> vector<8x512xf32>
    %c0_191 = arith.constant 0 : index
    %c0_192 = arith.constant 0 : index
    %c0_193 = arith.constant 0 : index
    %325 = vector.load %arg7[%c0_191, %c0_192, %c0_193] : memref<2x1x512xf32, #tpu.memory_space<vmem>>, vector<1x1x512xf32>
    %326 = vector.shape_cast %325 : vector<1x1x512xf32> to vector<1x512xf32>
    %327 = vector.broadcast %326 : vector<1x512xf32> to vector<8x512xf32>
    %328 = arith.addf %324, %327 : vector<8x512xf32>
    %329 = vector.extract_strided_slice %328 {offsets = [0, 0], sizes = [8, 128], strides = [1, 1]} : vector<8x512xf32> to vector<8x128xf32>
    %330 = vector.extract_strided_slice %328 {offsets = [0, 128], sizes = [8, 128], strides = [1, 1]} : vector<8x512xf32> to vector<8x128xf32>
    %331 = vector.extract_strided_slice %328 {offsets = [0, 256], sizes = [8, 128], strides = [1, 1]} : vector<8x512xf32> to vector<8x128xf32>
    %332 = vector.extract_strided_slice %328 {offsets = [0, 384], sizes = [8, 128], strides = [1, 1]} : vector<8x512xf32> to vector<8x128xf32>
    %cst_194 = arith.constant 5.000000e-01 : f32
    %333 = vector.broadcast %cst_194 : f32 to vector<8x128xf32>
    %334 = arith.mulf %333, %330 : vector<8x128xf32>
    %335 = math.tanh %334 : vector<8x128xf32>
    %cst_195 = arith.constant 5.000000e-01 : f32
    %336 = vector.broadcast %cst_195 : f32 to vector<8x128xf32>
    %337 = arith.mulf %336, %335 : vector<8x128xf32>
    %cst_196 = arith.constant 5.000000e-01 : f32
    %338 = vector.broadcast %cst_196 : f32 to vector<8x128xf32>
    %339 = arith.addf %337, %338 : vector<8x128xf32>
    %340 = arith.mulf %339, %320 : vector<8x128xf32>
    %cst_197 = arith.constant 5.000000e-01 : f32
    %341 = vector.broadcast %cst_197 : f32 to vector<8x128xf32>
    %342 = arith.mulf %341, %329 : vector<8x128xf32>
    %343 = math.tanh %342 : vector<8x128xf32>
    %cst_198 = arith.constant 5.000000e-01 : f32
    %344 = vector.broadcast %cst_198 : f32 to vector<8x128xf32>
    %345 = arith.mulf %344, %343 : vector<8x128xf32>
    %cst_199 = arith.constant 5.000000e-01 : f32
    %346 = vector.broadcast %cst_199 : f32 to vector<8x128xf32>
    %347 = arith.addf %345, %346 : vector<8x128xf32>
    %348 = math.tanh %331 : vector<8x128xf32>
    %349 = arith.mulf %347, %348 : vector<8x128xf32>
    %350 = arith.addf %340, %349 : vector<8x128xf32>
    %cst_200 = arith.constant 5.000000e-01 : f32
    %351 = vector.broadcast %cst_200 : f32 to vector<8x128xf32>
    %352 = arith.mulf %351, %332 : vector<8x128xf32>
    %353 = math.tanh %352 : vector<8x128xf32>
    %cst_201 = arith.constant 5.000000e-01 : f32
    %354 = vector.broadcast %cst_201 : f32 to vector<8x128xf32>
    %355 = arith.mulf %354, %353 : vector<8x128xf32>
    %cst_202 = arith.constant 5.000000e-01 : f32
    %356 = vector.broadcast %cst_202 : f32 to vector<8x128xf32>
    %357 = arith.addf %355, %356 : vector<8x128xf32>
    %358 = math.tanh %350 : vector<8x128xf32>
    %359 = arith.mulf %357, %358 : vector<8x128xf32>
    %c0_203 = arith.constant 0 : index
    %c0_204 = arith.constant 0 : index
    %c0_205 = arith.constant 0 : index
    %360 = vector.load %arg9[%c0_203, %c0_204, %c0_205] : memref<2x8x128xf32, #tpu.memory_space<vmem>>, vector<1x8x128xf32>
    %361 = vector.shape_cast %360 : vector<1x8x128xf32> to vector<8x128xf32>
    %362 = vector.shape_cast %359 : vector<8x128xf32> to vector<1x8x128xf32>
    tpu.vector_store %arg9[%c0_203, %c0_204, %c0_205], %362 {strides = array<i32>} : memref<2x8x128xf32, #tpu.memory_space<vmem>>, vector<1x8x128xf32>,
    %c0_206 = arith.constant 0 : index
    %c0_207 = arith.constant 0 : index
    %c0_208 = arith.constant 0 : index
    %363 = vector.load %arg10[%c0_206, %c0_207, %c0_208] : memref<2x8x128xf32, #tpu.memory_space<vmem>>, vector<1x8x128xf32>
    %364 = vector.shape_cast %363 : vector<1x8x128xf32> to vector<8x128xf32>
    %365 = vector.shape_cast %350 : vector<8x128xf32> to vector<1x8x128xf32>
    tpu.vector_store %arg10[%c0_206, %c0_207, %c0_208], %365 {strides = array<i32>} : memref<2x8x128xf32, #tpu.memory_space<vmem>>, vector<1x8x128xf32>,
    %c1_209 = arith.constant 1 : index
    %c0_210 = arith.constant 0 : index
    %c0_211 = arith.constant 0 : index
    %366 = vector.load %arg9[%c1_209, %c0_210, %c0_211] : memref<2x8x128xf32, #tpu.memory_space<vmem>>, vector<1x8x128xf32>
    %367 = vector.shape_cast %366 : vector<1x8x128xf32> to vector<8x128xf32>
    %c1_212 = arith.constant 1 : index
    %c0_213 = arith.constant 0 : index
    %c0_214 = arith.constant 0 : index
    %368 = vector.load %arg10[%c1_212, %c0_213, %c0_214] : memref<2x8x128xf32, #tpu.memory_space<vmem>>, vector<1x8x128xf32>
    %369 = vector.shape_cast %368 : vector<1x8x128xf32> to vector<8x128xf32>
    %c0_215 = arith.constant 0 : index
    %c0_216 = arith.constant 0 : index
    %c0_217 = arith.constant 0 : index
    %370 = vector.load %arg6[%c0_215, %c0_216, %c0_217] : memref<1x256x512xbf16, #tpu.memory_space<vmem>>, vector<1x256x512xbf16>
    %371 = vector.shape_cast %370 : vector<1x256x512xbf16> to vector<256x512xbf16>
    %372 = tpu.concatenate %367, %359 in 1 : vector<8x128xf32>, vector<8x128xf32> -> vector<8x256xf32>
    %373 = arith.truncf %372 : vector<8x256xf32> to vector<8x256xbf16>
    %cst_218 = arith.constant dense<0.000000e+00> : vector<8x512xf32>
    %374 = tpu.matmul %373, %371, %cst_218 {dimension_numbers = #tpu.dot_dimension_numbers<[1], [0], [0], [1], [0, 0, 1, 1], [], []>} : vector<8x256xbf16>, vector<256x512xbf16>, vector<8x512xf32> -> vector<8x512xf32>
    %c1_219 = arith.constant 1 : index
    %c0_220 = arith.constant 0 : index
    %c0_221 = arith.constant 0 : index
    %375 = vector.load %arg7[%c1_219, %c0_220, %c0_221] : memref<2x1x512xf32, #tpu.memory_space<vmem>>, vector<1x1x512xf32>
    %376 = vector.shape_cast %375 : vector<1x1x512xf32> to vector<1x512xf32>
    %377 = vector.broadcast %376 : vector<1x512xf32> to vector<8x512xf32>
    %378 = arith.addf %374, %377 : vector<8x512xf32>
    %379 = vector.extract_strided_slice %378 {offsets = [0, 0], sizes = [8, 128], strides = [1, 1]} : vector<8x512xf32> to vector<8x128xf32>
    %380 = vector.extract_strided_slice %378 {offsets = [0, 128], sizes = [8, 128], strides = [1, 1]} : vector<8x512xf32> to vector<8x128xf32>
    %381 = vector.extract_strided_slice %378 {offsets = [0, 256], sizes = [8, 128], strides = [1, 1]} : vector<8x512xf32> to vector<8x128xf32>
    %382 = vector.extract_strided_slice %378 {offsets = [0, 384], sizes = [8, 128], strides = [1, 1]} : vector<8x512xf32> to vector<8x128xf32>
    %cst_222 = arith.constant 5.000000e-01 : f32
    %383 = vector.broadcast %cst_222 : f32 to vector<8x128xf32>
    %384 = arith.mulf %383, %380 : vector<8x128xf32>
    %385 = math.tanh %384 : vector<8x128xf32>
    %cst_223 = arith.constant 5.000000e-01 : f32
    %386 = vector.broadcast %cst_223 : f32 to vector<8x128xf32>
    %387 = arith.mulf %386, %385 : vector<8x128xf32>
    %cst_224 = arith.constant 5.000000e-01 : f32
    %388 = vector.broadcast %cst_224 : f32 to vector<8x128xf32>
    %389 = arith.addf %387, %388 : vector<8x128xf32>
    %390 = arith.mulf %389, %369 : vector<8x128xf32>
    %cst_225 = arith.constant 5.000000e-01 : f32
    %391 = vector.broadcast %cst_225 : f32 to vector<8x128xf32>
    %392 = arith.mulf %391, %379 : vector<8x128xf32>
    %393 = math.tanh %392 : vector<8x128xf32>
    %cst_226 = arith.constant 5.000000e-01 : f32
    %394 = vector.broadcast %cst_226 : f32 to vector<8x128xf32>
    %395 = arith.mulf %394, %393 : vector<8x128xf32>
    %cst_227 = arith.constant 5.000000e-01 : f32
    %396 = vector.broadcast %cst_227 : f32 to vector<8x128xf32>
    %397 = arith.addf %395, %396 : vector<8x128xf32>
    %398 = math.tanh %381 : vector<8x128xf32>
    %399 = arith.mulf %397, %398 : vector<8x128xf32>
    %400 = arith.addf %390, %399 : vector<8x128xf32>
    %cst_228 = arith.constant 5.000000e-01 : f32
    %401 = vector.broadcast %cst_228 : f32 to vector<8x128xf32>
    %402 = arith.mulf %401, %382 : vector<8x128xf32>
    %403 = math.tanh %402 : vector<8x128xf32>
    %cst_229 = arith.constant 5.000000e-01 : f32
    %404 = vector.broadcast %cst_229 : f32 to vector<8x128xf32>
    %405 = arith.mulf %404, %403 : vector<8x128xf32>
    %cst_230 = arith.constant 5.000000e-01 : f32
    %406 = vector.broadcast %cst_230 : f32 to vector<8x128xf32>
    %407 = arith.addf %405, %406 : vector<8x128xf32>
    %408 = math.tanh %400 : vector<8x128xf32>
    %409 = arith.mulf %407, %408 : vector<8x128xf32>
    %c1_231 = arith.constant 1 : index
    %c0_232 = arith.constant 0 : index
    %c0_233 = arith.constant 0 : index
    %410 = vector.load %arg9[%c1_231, %c0_232, %c0_233] : memref<2x8x128xf32, #tpu.memory_space<vmem>>, vector<1x8x128xf32>
    %411 = vector.shape_cast %410 : vector<1x8x128xf32> to vector<8x128xf32>
    %412 = vector.shape_cast %409 : vector<8x128xf32> to vector<1x8x128xf32>
    tpu.vector_store %arg9[%c1_231, %c0_232, %c0_233], %412 {strides = array<i32>} : memref<2x8x128xf32, #tpu.memory_space<vmem>>, vector<1x8x128xf32>,
    %c1_234 = arith.constant 1 : index
    %c0_235 = arith.constant 0 : index
    %c0_236 = arith.constant 0 : index
    %413 = vector.load %arg10[%c1_234, %c0_235, %c0_236] : memref<2x8x128xf32, #tpu.memory_space<vmem>>, vector<1x8x128xf32>
    %414 = vector.shape_cast %413 : vector<1x8x128xf32> to vector<8x128xf32>
    %415 = vector.shape_cast %400 : vector<8x128xf32> to vector<1x8x128xf32>
    tpu.vector_store %arg10[%c1_234, %c0_235, %c0_236], %415 {strides = array<i32>} : memref<2x8x128xf32, #tpu.memory_space<vmem>>, vector<1x8x128xf32>,
    %c3_237 = arith.constant 3 : index
    %c0_238 = arith.constant 0 : index
    %c0_239 = arith.constant 0 : index
    %416 = vector.load %arg8[%c3_237, %c0_238, %c0_239] : memref<8x8x128xf32, #tpu.memory_space<vmem>>, vector<1x8x128xf32>
    %417 = vector.shape_cast %416 : vector<1x8x128xf32> to vector<8x128xf32>
    %418 = vector.shape_cast %409 : vector<8x128xf32> to vector<1x8x128xf32>
    tpu.vector_store %arg8[%c3_237, %c0_238, %c0_239], %418 {strides = array<i32>} : memref<8x8x128xf32, #tpu.memory_space<vmem>>, vector<1x8x128xf32>,
    %c4 = arith.constant 4 : index
    %c0_240 = arith.constant 0 : index
    %c0_241 = arith.constant 0 : index
    %419 = vector.load %arg2[%c4, %c0_240, %c0_241] : memref<8x8x16xf32, #tpu.memory_space<vmem>>, vector<1x8x16xf32>
    %420 = vector.shape_cast %419 : vector<1x8x16xf32> to vector<8x16xf32>
    %c0_242 = arith.constant 0 : index
    %c0_243 = arith.constant 0 : index
    %c0_244 = arith.constant 0 : index
    %421 = vector.load %arg9[%c0_242, %c0_243, %c0_244] : memref<2x8x128xf32, #tpu.memory_space<vmem>>, vector<1x8x128xf32>
    %422 = vector.shape_cast %421 : vector<1x8x128xf32> to vector<8x128xf32>
    %c0_245 = arith.constant 0 : index
    %c0_246 = arith.constant 0 : index
    %c0_247 = arith.constant 0 : index
    %423 = vector.load %arg10[%c0_245, %c0_246, %c0_247] : memref<2x8x128xf32, #tpu.memory_space<vmem>>, vector<1x8x128xf32>
    %424 = vector.shape_cast %423 : vector<1x8x128xf32> to vector<8x128xf32>
    %c0_248 = arith.constant 0 : index
    %c0_249 = arith.constant 0 : index
    %425 = vector.load %arg5[%c0_248, %c0_249] : memref<144x512xbf16, #tpu.memory_space<vmem>>, vector<144x512xbf16>
    %426 = tpu.concatenate %422, %420 in 1 : vector<8x128xf32>, vector<8x16xf32> -> vector<8x144xf32>
    %427 = arith.truncf %426 : vector<8x144xf32> to vector<8x144xbf16>
    %cst_250 = arith.constant dense<0.000000e+00> : vector<8x512xf32>
    %428 = tpu.matmul %427, %425, %cst_250 {dimension_numbers = #tpu.dot_dimension_numbers<[1], [0], [0], [1], [0, 0, 1, 1], [], []>} : vector<8x144xbf16>, vector<144x512xbf16>, vector<8x512xf32> -> vector<8x512xf32>
    %c0_251 = arith.constant 0 : index
    %c0_252 = arith.constant 0 : index
    %c0_253 = arith.constant 0 : index
    %429 = vector.load %arg7[%c0_251, %c0_252, %c0_253] : memref<2x1x512xf32, #tpu.memory_space<vmem>>, vector<1x1x512xf32>
    %430 = vector.shape_cast %429 : vector<1x1x512xf32> to vector<1x512xf32>
    %431 = vector.broadcast %430 : vector<1x512xf32> to vector<8x512xf32>
    %432 = arith.addf %428, %431 : vector<8x512xf32>
    %433 = vector.extract_strided_slice %432 {offsets = [0, 0], sizes = [8, 128], strides = [1, 1]} : vector<8x512xf32> to vector<8x128xf32>
    %434 = vector.extract_strided_slice %432 {offsets = [0, 128], sizes = [8, 128], strides = [1, 1]} : vector<8x512xf32> to vector<8x128xf32>
    %435 = vector.extract_strided_slice %432 {offsets = [0, 256], sizes = [8, 128], strides = [1, 1]} : vector<8x512xf32> to vector<8x128xf32>
    %436 = vector.extract_strided_slice %432 {offsets = [0, 384], sizes = [8, 128], strides = [1, 1]} : vector<8x512xf32> to vector<8x128xf32>
    %cst_254 = arith.constant 5.000000e-01 : f32
    %437 = vector.broadcast %cst_254 : f32 to vector<8x128xf32>
    %438 = arith.mulf %437, %434 : vector<8x128xf32>
    %439 = math.tanh %438 : vector<8x128xf32>
    %cst_255 = arith.constant 5.000000e-01 : f32
    %440 = vector.broadcast %cst_255 : f32 to vector<8x128xf32>
    %441 = arith.mulf %440, %439 : vector<8x128xf32>
    %cst_256 = arith.constant 5.000000e-01 : f32
    %442 = vector.broadcast %cst_256 : f32 to vector<8x128xf32>
    %443 = arith.addf %441, %442 : vector<8x128xf32>
    %444 = arith.mulf %443, %424 : vector<8x128xf32>
    %cst_257 = arith.constant 5.000000e-01 : f32
    %445 = vector.broadcast %cst_257 : f32 to vector<8x128xf32>
    %446 = arith.mulf %445, %433 : vector<8x128xf32>
    %447 = math.tanh %446 : vector<8x128xf32>
    %cst_258 = arith.constant 5.000000e-01 : f32
    %448 = vector.broadcast %cst_258 : f32 to vector<8x128xf32>
    %449 = arith.mulf %448, %447 : vector<8x128xf32>
    %cst_259 = arith.constant 5.000000e-01 : f32
    %450 = vector.broadcast %cst_259 : f32 to vector<8x128xf32>
    %451 = arith.addf %449, %450 : vector<8x128xf32>
    %452 = math.tanh %435 : vector<8x128xf32>
    %453 = arith.mulf %451, %452 : vector<8x128xf32>
    %454 = arith.addf %444, %453 : vector<8x128xf32>
    %cst_260 = arith.constant 5.000000e-01 : f32
    %455 = vector.broadcast %cst_260 : f32 to vector<8x128xf32>
    %456 = arith.mulf %455, %436 : vector<8x128xf32>
    %457 = math.tanh %456 : vector<8x128xf32>
    %cst_261 = arith.constant 5.000000e-01 : f32
    %458 = vector.broadcast %cst_261 : f32 to vector<8x128xf32>
    %459 = arith.mulf %458, %457 : vector<8x128xf32>
    %cst_262 = arith.constant 5.000000e-01 : f32
    %460 = vector.broadcast %cst_262 : f32 to vector<8x128xf32>
    %461 = arith.addf %459, %460 : vector<8x128xf32>
    %462 = math.tanh %454 : vector<8x128xf32>
    %463 = arith.mulf %461, %462 : vector<8x128xf32>
    %c0_263 = arith.constant 0 : index
    %c0_264 = arith.constant 0 : index
    %c0_265 = arith.constant 0 : index
    %464 = vector.load %arg9[%c0_263, %c0_264, %c0_265] : memref<2x8x128xf32, #tpu.memory_space<vmem>>, vector<1x8x128xf32>
    %465 = vector.shape_cast %464 : vector<1x8x128xf32> to vector<8x128xf32>
    %466 = vector.shape_cast %463 : vector<8x128xf32> to vector<1x8x128xf32>
    tpu.vector_store %arg9[%c0_263, %c0_264, %c0_265], %466 {strides = array<i32>} : memref<2x8x128xf32, #tpu.memory_space<vmem>>, vector<1x8x128xf32>,
    %c0_266 = arith.constant 0 : index
    %c0_267 = arith.constant 0 : index
    %c0_268 = arith.constant 0 : index
    %467 = vector.load %arg10[%c0_266, %c0_267, %c0_268] : memref<2x8x128xf32, #tpu.memory_space<vmem>>, vector<1x8x128xf32>
    %468 = vector.shape_cast %467 : vector<1x8x128xf32> to vector<8x128xf32>
    %469 = vector.shape_cast %454 : vector<8x128xf32> to vector<1x8x128xf32>
    tpu.vector_store %arg10[%c0_266, %c0_267, %c0_268], %469 {strides = array<i32>} : memref<2x8x128xf32, #tpu.memory_space<vmem>>, vector<1x8x128xf32>,
    %c1_269 = arith.constant 1 : index
    %c0_270 = arith.constant 0 : index
    %c0_271 = arith.constant 0 : index
    %470 = vector.load %arg9[%c1_269, %c0_270, %c0_271] : memref<2x8x128xf32, #tpu.memory_space<vmem>>, vector<1x8x128xf32>
    %471 = vector.shape_cast %470 : vector<1x8x128xf32> to vector<8x128xf32>
    %c1_272 = arith.constant 1 : index
    %c0_273 = arith.constant 0 : index
    %c0_274 = arith.constant 0 : index
    %472 = vector.load %arg10[%c1_272, %c0_273, %c0_274] : memref<2x8x128xf32, #tpu.memory_space<vmem>>, vector<1x8x128xf32>
    %473 = vector.shape_cast %472 : vector<1x8x128xf32> to vector<8x128xf32>
    %c0_275 = arith.constant 0 : index
    %c0_276 = arith.constant 0 : index
    %c0_277 = arith.constant 0 : index
    %474 = vector.load %arg6[%c0_275, %c0_276, %c0_277] : memref<1x256x512xbf16, #tpu.memory_space<vmem>>, vector<1x256x512xbf16>
    %475 = vector.shape_cast %474 : vector<1x256x512xbf16> to vector<256x512xbf16>
    %476 = tpu.concatenate %471, %463 in 1 : vector<8x128xf32>, vector<8x128xf32> -> vector<8x256xf32>
    %477 = arith.truncf %476 : vector<8x256xf32> to vector<8x256xbf16>
    %cst_278 = arith.constant dense<0.000000e+00> : vector<8x512xf32>
    %478 = tpu.matmul %477, %475, %cst_278 {dimension_numbers = #tpu.dot_dimension_numbers<[1], [0], [0], [1], [0, 0, 1, 1], [], []>} : vector<8x256xbf16>, vector<256x512xbf16>, vector<8x512xf32> -> vector<8x512xf32>
    %c1_279 = arith.constant 1 : index
    %c0_280 = arith.constant 0 : index
    %c0_281 = arith.constant 0 : index
    %479 = vector.load %arg7[%c1_279, %c0_280, %c0_281] : memref<2x1x512xf32, #tpu.memory_space<vmem>>, vector<1x1x512xf32>
    %480 = vector.shape_cast %479 : vector<1x1x512xf32> to vector<1x512xf32>
    %481 = vector.broadcast %480 : vector<1x512xf32> to vector<8x512xf32>
    %482 = arith.addf %478, %481 : vector<8x512xf32>
    %483 = vector.extract_strided_slice %482 {offsets = [0, 0], sizes = [8, 128], strides = [1, 1]} : vector<8x512xf32> to vector<8x128xf32>
    %484 = vector.extract_strided_slice %482 {offsets = [0, 128], sizes = [8, 128], strides = [1, 1]} : vector<8x512xf32> to vector<8x128xf32>
    %485 = vector.extract_strided_slice %482 {offsets = [0, 256], sizes = [8, 128], strides = [1, 1]} : vector<8x512xf32> to vector<8x128xf32>
    %486 = vector.extract_strided_slice %482 {offsets = [0, 384], sizes = [8, 128], strides = [1, 1]} : vector<8x512xf32> to vector<8x128xf32>
    %cst_282 = arith.constant 5.000000e-01 : f32
    %487 = vector.broadcast %cst_282 : f32 to vector<8x128xf32>
    %488 = arith.mulf %487, %484 : vector<8x128xf32>
    %489 = math.tanh %488 : vector<8x128xf32>
    %cst_283 = arith.constant 5.000000e-01 : f32
    %490 = vector.broadcast %cst_283 : f32 to vector<8x128xf32>
    %491 = arith.mulf %490, %489 : vector<8x128xf32>
    %cst_284 = arith.constant 5.000000e-01 : f32
    %492 = vector.broadcast %cst_284 : f32 to vector<8x128xf32>
    %493 = arith.addf %491, %492 : vector<8x128xf32>
    %494 = arith.mulf %493, %473 : vector<8x128xf32>
    %cst_285 = arith.constant 5.000000e-01 : f32
    %495 = vector.broadcast %cst_285 : f32 to vector<8x128xf32>
    %496 = arith.mulf %495, %483 : vector<8x128xf32>
    %497 = math.tanh %496 : vector<8x128xf32>
    %cst_286 = arith.constant 5.000000e-01 : f32
    %498 = vector.broadcast %cst_286 : f32 to vector<8x128xf32>
    %499 = arith.mulf %498, %497 : vector<8x128xf32>
    %cst_287 = arith.constant 5.000000e-01 : f32
    %500 = vector.broadcast %cst_287 : f32 to vector<8x128xf32>
    %501 = arith.addf %499, %500 : vector<8x128xf32>
    %502 = math.tanh %485 : vector<8x128xf32>
    %503 = arith.mulf %501, %502 : vector<8x128xf32>
    %504 = arith.addf %494, %503 : vector<8x128xf32>
    %cst_288 = arith.constant 5.000000e-01 : f32
    %505 = vector.broadcast %cst_288 : f32 to vector<8x128xf32>
    %506 = arith.mulf %505, %486 : vector<8x128xf32>
    %507 = math.tanh %506 : vector<8x128xf32>
    %cst_289 = arith.constant 5.000000e-01 : f32
    %508 = vector.broadcast %cst_289 : f32 to vector<8x128xf32>
    %509 = arith.mulf %508, %507 : vector<8x128xf32>
    %cst_290 = arith.constant 5.000000e-01 : f32
    %510 = vector.broadcast %cst_290 : f32 to vector<8x128xf32>
    %511 = arith.addf %509, %510 : vector<8x128xf32>
    %512 = math.tanh %504 : vector<8x128xf32>
    %513 = arith.mulf %511, %512 : vector<8x128xf32>
    %c1_291 = arith.constant 1 : index
    %c0_292 = arith.constant 0 : index
    %c0_293 = arith.constant 0 : index
    %514 = vector.load %arg9[%c1_291, %c0_292, %c0_293] : memref<2x8x128xf32, #tpu.memory_space<vmem>>, vector<1x8x128xf32>
    %515 = vector.shape_cast %514 : vector<1x8x128xf32> to vector<8x128xf32>
    %516 = vector.shape_cast %513 : vector<8x128xf32> to vector<1x8x128xf32>
    tpu.vector_store %arg9[%c1_291, %c0_292, %c0_293], %516 {strides = array<i32>} : memref<2x8x128xf32, #tpu.memory_space<vmem>>, vector<1x8x128xf32>,
    %c1_294 = arith.constant 1 : index
    %c0_295 = arith.constant 0 : index
    %c0_296 = arith.constant 0 : index
    %517 = vector.load %arg10[%c1_294, %c0_295, %c0_296] : memref<2x8x128xf32, #tpu.memory_space<vmem>>, vector<1x8x128xf32>
    %518 = vector.shape_cast %517 : vector<1x8x128xf32> to vector<8x128xf32>
    %519 = vector.shape_cast %504 : vector<8x128xf32> to vector<1x8x128xf32>
    tpu.vector_store %arg10[%c1_294, %c0_295, %c0_296], %519 {strides = array<i32>} : memref<2x8x128xf32, #tpu.memory_space<vmem>>, vector<1x8x128xf32>,
    %c4_297 = arith.constant 4 : index
    %c0_298 = arith.constant 0 : index
    %c0_299 = arith.constant 0 : index
    %520 = vector.load %arg8[%c4_297, %c0_298, %c0_299] : memref<8x8x128xf32, #tpu.memory_space<vmem>>, vector<1x8x128xf32>
    %521 = vector.shape_cast %520 : vector<1x8x128xf32> to vector<8x128xf32>
    %522 = vector.shape_cast %513 : vector<8x128xf32> to vector<1x8x128xf32>
    tpu.vector_store %arg8[%c4_297, %c0_298, %c0_299], %522 {strides = array<i32>} : memref<8x8x128xf32, #tpu.memory_space<vmem>>, vector<1x8x128xf32>,
    %c5 = arith.constant 5 : index
    %c0_300 = arith.constant 0 : index
    %c0_301 = arith.constant 0 : index
    %523 = vector.load %arg2[%c5, %c0_300, %c0_301] : memref<8x8x16xf32, #tpu.memory_space<vmem>>, vector<1x8x16xf32>
    %524 = vector.shape_cast %523 : vector<1x8x16xf32> to vector<8x16xf32>
    %c0_302 = arith.constant 0 : index
    %c0_303 = arith.constant 0 : index
    %c0_304 = arith.constant 0 : index
    %525 = vector.load %arg9[%c0_302, %c0_303, %c0_304] : memref<2x8x128xf32, #tpu.memory_space<vmem>>, vector<1x8x128xf32>
    %526 = vector.shape_cast %525 : vector<1x8x128xf32> to vector<8x128xf32>
    %c0_305 = arith.constant 0 : index
    %c0_306 = arith.constant 0 : index
    %c0_307 = arith.constant 0 : index
    %527 = vector.load %arg10[%c0_305, %c0_306, %c0_307] : memref<2x8x128xf32, #tpu.memory_space<vmem>>, vector<1x8x128xf32>
    %528 = vector.shape_cast %527 : vector<1x8x128xf32> to vector<8x128xf32>
    %c0_308 = arith.constant 0 : index
    %c0_309 = arith.constant 0 : index
    %529 = vector.load %arg5[%c0_308, %c0_309] : memref<144x512xbf16, #tpu.memory_space<vmem>>, vector<144x512xbf16>
    %530 = tpu.concatenate %526, %524 in 1 : vector<8x128xf32>, vector<8x16xf32> -> vector<8x144xf32>
    %531 = arith.truncf %530 : vector<8x144xf32> to vector<8x144xbf16>
    %cst_310 = arith.constant dense<0.000000e+00> : vector<8x512xf32>
    %532 = tpu.matmul %531, %529, %cst_310 {dimension_numbers = #tpu.dot_dimension_numbers<[1], [0], [0], [1], [0, 0, 1, 1], [], []>} : vector<8x144xbf16>, vector<144x512xbf16>, vector<8x512xf32> -> vector<8x512xf32>
    %c0_311 = arith.constant 0 : index
    %c0_312 = arith.constant 0 : index
    %c0_313 = arith.constant 0 : index
    %533 = vector.load %arg7[%c0_311, %c0_312, %c0_313] : memref<2x1x512xf32, #tpu.memory_space<vmem>>, vector<1x1x512xf32>
    %534 = vector.shape_cast %533 : vector<1x1x512xf32> to vector<1x512xf32>
    %535 = vector.broadcast %534 : vector<1x512xf32> to vector<8x512xf32>
    %536 = arith.addf %532, %535 : vector<8x512xf32>
    %537 = vector.extract_strided_slice %536 {offsets = [0, 0], sizes = [8, 128], strides = [1, 1]} : vector<8x512xf32> to vector<8x128xf32>
    %538 = vector.extract_strided_slice %536 {offsets = [0, 128], sizes = [8, 128], strides = [1, 1]} : vector<8x512xf32> to vector<8x128xf32>
    %539 = vector.extract_strided_slice %536 {offsets = [0, 256], sizes = [8, 128], strides = [1, 1]} : vector<8x512xf32> to vector<8x128xf32>
    %540 = vector.extract_strided_slice %536 {offsets = [0, 384], sizes = [8, 128], strides = [1, 1]} : vector<8x512xf32> to vector<8x128xf32>
    %cst_314 = arith.constant 5.000000e-01 : f32
    %541 = vector.broadcast %cst_314 : f32 to vector<8x128xf32>
    %542 = arith.mulf %541, %538 : vector<8x128xf32>
    %543 = math.tanh %542 : vector<8x128xf32>
    %cst_315 = arith.constant 5.000000e-01 : f32
    %544 = vector.broadcast %cst_315 : f32 to vector<8x128xf32>
    %545 = arith.mulf %544, %543 : vector<8x128xf32>
    %cst_316 = arith.constant 5.000000e-01 : f32
    %546 = vector.broadcast %cst_316 : f32 to vector<8x128xf32>
    %547 = arith.addf %545, %546 : vector<8x128xf32>
    %548 = arith.mulf %547, %528 : vector<8x128xf32>
    %cst_317 = arith.constant 5.000000e-01 : f32
    %549 = vector.broadcast %cst_317 : f32 to vector<8x128xf32>
    %550 = arith.mulf %549, %537 : vector<8x128xf32>
    %551 = math.tanh %550 : vector<8x128xf32>
    %cst_318 = arith.constant 5.000000e-01 : f32
    %552 = vector.broadcast %cst_318 : f32 to vector<8x128xf32>
    %553 = arith.mulf %552, %551 : vector<8x128xf32>
    %cst_319 = arith.constant 5.000000e-01 : f32
    %554 = vector.broadcast %cst_319 : f32 to vector<8x128xf32>
    %555 = arith.addf %553, %554 : vector<8x128xf32>
    %556 = math.tanh %539 : vector<8x128xf32>
    %557 = arith.mulf %555, %556 : vector<8x128xf32>
    %558 = arith.addf %548, %557 : vector<8x128xf32>
    %cst_320 = arith.constant 5.000000e-01 : f32
    %559 = vector.broadcast %cst_320 : f32 to vector<8x128xf32>
    %560 = arith.mulf %559, %540 : vector<8x128xf32>
    %561 = math.tanh %560 : vector<8x128xf32>
    %cst_321 = arith.constant 5.000000e-01 : f32
    %562 = vector.broadcast %cst_321 : f32 to vector<8x128xf32>
    %563 = arith.mulf %562, %561 : vector<8x128xf32>
    %cst_322 = arith.constant 5.000000e-01 : f32
    %564 = vector.broadcast %cst_322 : f32 to vector<8x128xf32>
    %565 = arith.addf %563, %564 : vector<8x128xf32>
    %566 = math.tanh %558 : vector<8x128xf32>
    %567 = arith.mulf %565, %566 : vector<8x128xf32>
    %c0_323 = arith.constant 0 : index
    %c0_324 = arith.constant 0 : index
    %c0_325 = arith.constant 0 : index
    %568 = vector.load %arg9[%c0_323, %c0_324, %c0_325] : memref<2x8x128xf32, #tpu.memory_space<vmem>>, vector<1x8x128xf32>
    %569 = vector.shape_cast %568 : vector<1x8x128xf32> to vector<8x128xf32>
    %570 = vector.shape_cast %567 : vector<8x128xf32> to vector<1x8x128xf32>
    tpu.vector_store %arg9[%c0_323, %c0_324, %c0_325], %570 {strides = array<i32>} : memref<2x8x128xf32, #tpu.memory_space<vmem>>, vector<1x8x128xf32>,
    %c0_326 = arith.constant 0 : index
    %c0_327 = arith.constant 0 : index
    %c0_328 = arith.constant 0 : index
    %571 = vector.load %arg10[%c0_326, %c0_327, %c0_328] : memref<2x8x128xf32, #tpu.memory_space<vmem>>, vector<1x8x128xf32>
    %572 = vector.shape_cast %571 : vector<1x8x128xf32> to vector<8x128xf32>
    %573 = vector.shape_cast %558 : vector<8x128xf32> to vector<1x8x128xf32>
    tpu.vector_store %arg10[%c0_326, %c0_327, %c0_328], %573 {strides = array<i32>} : memref<2x8x128xf32, #tpu.memory_space<vmem>>, vector<1x8x128xf32>,
    %c1_329 = arith.constant 1 : index
    %c0_330 = arith.constant 0 : index
    %c0_331 = arith.constant 0 : index
    %574 = vector.load %arg9[%c1_329, %c0_330, %c0_331] : memref<2x8x128xf32, #tpu.memory_space<vmem>>, vector<1x8x128xf32>
    %575 = vector.shape_cast %574 : vector<1x8x128xf32> to vector<8x128xf32>
    %c1_332 = arith.constant 1 : index
    %c0_333 = arith.constant 0 : index
    %c0_334 = arith.constant 0 : index
    %576 = vector.load %arg10[%c1_332, %c0_333, %c0_334] : memref<2x8x128xf32, #tpu.memory_space<vmem>>, vector<1x8x128xf32>
    %577 = vector.shape_cast %576 : vector<1x8x128xf32> to vector<8x128xf32>
    %c0_335 = arith.constant 0 : index
    %c0_336 = arith.constant 0 : index
    %c0_337 = arith.constant 0 : index
    %578 = vector.load %arg6[%c0_335, %c0_336, %c0_337] : memref<1x256x512xbf16, #tpu.memory_space<vmem>>, vector<1x256x512xbf16>
    %579 = vector.shape_cast %578 : vector<1x256x512xbf16> to vector<256x512xbf16>
    %580 = tpu.concatenate %575, %567 in 1 : vector<8x128xf32>, vector<8x128xf32> -> vector<8x256xf32>
    %581 = arith.truncf %580 : vector<8x256xf32> to vector<8x256xbf16>
    %cst_338 = arith.constant dense<0.000000e+00> : vector<8x512xf32>
    %582 = tpu.matmul %581, %579, %cst_338 {dimension_numbers = #tpu.dot_dimension_numbers<[1], [0], [0], [1], [0, 0, 1, 1], [], []>} : vector<8x256xbf16>, vector<256x512xbf16>, vector<8x512xf32> -> vector<8x512xf32>
    %c1_339 = arith.constant 1 : index
    %c0_340 = arith.constant 0 : index
    %c0_341 = arith.constant 0 : index
    %583 = vector.load %arg7[%c1_339, %c0_340, %c0_341] : memref<2x1x512xf32, #tpu.memory_space<vmem>>, vector<1x1x512xf32>
    %584 = vector.shape_cast %583 : vector<1x1x512xf32> to vector<1x512xf32>
    %585 = vector.broadcast %584 : vector<1x512xf32> to vector<8x512xf32>
    %586 = arith.addf %582, %585 : vector<8x512xf32>
    %587 = vector.extract_strided_slice %586 {offsets = [0, 0], sizes = [8, 128], strides = [1, 1]} : vector<8x512xf32> to vector<8x128xf32>
    %588 = vector.extract_strided_slice %586 {offsets = [0, 128], sizes = [8, 128], strides = [1, 1]} : vector<8x512xf32> to vector<8x128xf32>
    %589 = vector.extract_strided_slice %586 {offsets = [0, 256], sizes = [8, 128], strides = [1, 1]} : vector<8x512xf32> to vector<8x128xf32>
    %590 = vector.extract_strided_slice %586 {offsets = [0, 384], sizes = [8, 128], strides = [1, 1]} : vector<8x512xf32> to vector<8x128xf32>
    %cst_342 = arith.constant 5.000000e-01 : f32
    %591 = vector.broadcast %cst_342 : f32 to vector<8x128xf32>
    %592 = arith.mulf %591, %588 : vector<8x128xf32>
    %593 = math.tanh %592 : vector<8x128xf32>
    %cst_343 = arith.constant 5.000000e-01 : f32
    %594 = vector.broadcast %cst_343 : f32 to vector<8x128xf32>
    %595 = arith.mulf %594, %593 : vector<8x128xf32>
    %cst_344 = arith.constant 5.000000e-01 : f32
    %596 = vector.broadcast %cst_344 : f32 to vector<8x128xf32>
    %597 = arith.addf %595, %596 : vector<8x128xf32>
    %598 = arith.mulf %597, %577 : vector<8x128xf32>
    %cst_345 = arith.constant 5.000000e-01 : f32
    %599 = vector.broadcast %cst_345 : f32 to vector<8x128xf32>
    %600 = arith.mulf %599, %587 : vector<8x128xf32>
    %601 = math.tanh %600 : vector<8x128xf32>
    %cst_346 = arith.constant 5.000000e-01 : f32
    %602 = vector.broadcast %cst_346 : f32 to vector<8x128xf32>
    %603 = arith.mulf %602, %601 : vector<8x128xf32>
    %cst_347 = arith.constant 5.000000e-01 : f32
    %604 = vector.broadcast %cst_347 : f32 to vector<8x128xf32>
    %605 = arith.addf %603, %604 : vector<8x128xf32>
    %606 = math.tanh %589 : vector<8x128xf32>
    %607 = arith.mulf %605, %606 : vector<8x128xf32>
    %608 = arith.addf %598, %607 : vector<8x128xf32>
    %cst_348 = arith.constant 5.000000e-01 : f32
    %609 = vector.broadcast %cst_348 : f32 to vector<8x128xf32>
    %610 = arith.mulf %609, %590 : vector<8x128xf32>
    %611 = math.tanh %610 : vector<8x128xf32>
    %cst_349 = arith.constant 5.000000e-01 : f32
    %612 = vector.broadcast %cst_349 : f32 to vector<8x128xf32>
    %613 = arith.mulf %612, %611 : vector<8x128xf32>
    %cst_350 = arith.constant 5.000000e-01 : f32
    %614 = vector.broadcast %cst_350 : f32 to vector<8x128xf32>
    %615 = arith.addf %613, %614 : vector<8x128xf32>
    %616 = math.tanh %608 : vector<8x128xf32>
    %617 = arith.mulf %615, %616 : vector<8x128xf32>
    %c1_351 = arith.constant 1 : index
    %c0_352 = arith.constant 0 : index
    %c0_353 = arith.constant 0 : index
    %618 = vector.load %arg9[%c1_351, %c0_352, %c0_353] : memref<2x8x128xf32, #tpu.memory_space<vmem>>, vector<1x8x128xf32>
    %619 = vector.shape_cast %618 : vector<1x8x128xf32> to vector<8x128xf32>
    %620 = vector.shape_cast %617 : vector<8x128xf32> to vector<1x8x128xf32>
    tpu.vector_store %arg9[%c1_351, %c0_352, %c0_353], %620 {strides = array<i32>} : memref<2x8x128xf32, #tpu.memory_space<vmem>>, vector<1x8x128xf32>,
    %c1_354 = arith.constant 1 : index
    %c0_355 = arith.constant 0 : index
    %c0_356 = arith.constant 0 : index
    %621 = vector.load %arg10[%c1_354, %c0_355, %c0_356] : memref<2x8x128xf32, #tpu.memory_space<vmem>>, vector<1x8x128xf32>
    %622 = vector.shape_cast %621 : vector<1x8x128xf32> to vector<8x128xf32>
    %623 = vector.shape_cast %608 : vector<8x128xf32> to vector<1x8x128xf32>
    tpu.vector_store %arg10[%c1_354, %c0_355, %c0_356], %623 {strides = array<i32>} : memref<2x8x128xf32, #tpu.memory_space<vmem>>, vector<1x8x128xf32>,
    %c5_357 = arith.constant 5 : index
    %c0_358 = arith.constant 0 : index
    %c0_359 = arith.constant 0 : index
    %624 = vector.load %arg8[%c5_357, %c0_358, %c0_359] : memref<8x8x128xf32, #tpu.memory_space<vmem>>, vector<1x8x128xf32>
    %625 = vector.shape_cast %624 : vector<1x8x128xf32> to vector<8x128xf32>
    %626 = vector.shape_cast %617 : vector<8x128xf32> to vector<1x8x128xf32>
    tpu.vector_store %arg8[%c5_357, %c0_358, %c0_359], %626 {strides = array<i32>} : memref<8x8x128xf32, #tpu.memory_space<vmem>>, vector<1x8x128xf32>,
    %c6 = arith.constant 6 : index
    %c0_360 = arith.constant 0 : index
    %c0_361 = arith.constant 0 : index
    %627 = vector.load %arg2[%c6, %c0_360, %c0_361] : memref<8x8x16xf32, #tpu.memory_space<vmem>>, vector<1x8x16xf32>
    %628 = vector.shape_cast %627 : vector<1x8x16xf32> to vector<8x16xf32>
    %c0_362 = arith.constant 0 : index
    %c0_363 = arith.constant 0 : index
    %c0_364 = arith.constant 0 : index
    %629 = vector.load %arg9[%c0_362, %c0_363, %c0_364] : memref<2x8x128xf32, #tpu.memory_space<vmem>>, vector<1x8x128xf32>
    %630 = vector.shape_cast %629 : vector<1x8x128xf32> to vector<8x128xf32>
    %c0_365 = arith.constant 0 : index
    %c0_366 = arith.constant 0 : index
    %c0_367 = arith.constant 0 : index
    %631 = vector.load %arg10[%c0_365, %c0_366, %c0_367] : memref<2x8x128xf32, #tpu.memory_space<vmem>>, vector<1x8x128xf32>
    %632 = vector.shape_cast %631 : vector<1x8x128xf32> to vector<8x128xf32>
    %c0_368 = arith.constant 0 : index
    %c0_369 = arith.constant 0 : index
    %633 = vector.load %arg5[%c0_368, %c0_369] : memref<144x512xbf16, #tpu.memory_space<vmem>>, vector<144x512xbf16>
    %634 = tpu.concatenate %630, %628 in 1 : vector<8x128xf32>, vector<8x16xf32> -> vector<8x144xf32>
    %635 = arith.truncf %634 : vector<8x144xf32> to vector<8x144xbf16>
    %cst_370 = arith.constant dense<0.000000e+00> : vector<8x512xf32>
    %636 = tpu.matmul %635, %633, %cst_370 {dimension_numbers = #tpu.dot_dimension_numbers<[1], [0], [0], [1], [0, 0, 1, 1], [], []>} : vector<8x144xbf16>, vector<144x512xbf16>, vector<8x512xf32> -> vector<8x512xf32>
    %c0_371 = arith.constant 0 : index
    %c0_372 = arith.constant 0 : index
    %c0_373 = arith.constant 0 : index
    %637 = vector.load %arg7[%c0_371, %c0_372, %c0_373] : memref<2x1x512xf32, #tpu.memory_space<vmem>>, vector<1x1x512xf32>
    %638 = vector.shape_cast %637 : vector<1x1x512xf32> to vector<1x512xf32>
    %639 = vector.broadcast %638 : vector<1x512xf32> to vector<8x512xf32>
    %640 = arith.addf %636, %639 : vector<8x512xf32>
    %641 = vector.extract_strided_slice %640 {offsets = [0, 0], sizes = [8, 128], strides = [1, 1]} : vector<8x512xf32> to vector<8x128xf32>
    %642 = vector.extract_strided_slice %640 {offsets = [0, 128], sizes = [8, 128], strides = [1, 1]} : vector<8x512xf32> to vector<8x128xf32>
    %643 = vector.extract_strided_slice %640 {offsets = [0, 256], sizes = [8, 128], strides = [1, 1]} : vector<8x512xf32> to vector<8x128xf32>
    %644 = vector.extract_strided_slice %640 {offsets = [0, 384], sizes = [8, 128], strides = [1, 1]} : vector<8x512xf32> to vector<8x128xf32>
    %cst_374 = arith.constant 5.000000e-01 : f32
    %645 = vector.broadcast %cst_374 : f32 to vector<8x128xf32>
    %646 = arith.mulf %645, %642 : vector<8x128xf32>
    %647 = math.tanh %646 : vector<8x128xf32>
    %cst_375 = arith.constant 5.000000e-01 : f32
    %648 = vector.broadcast %cst_375 : f32 to vector<8x128xf32>
    %649 = arith.mulf %648, %647 : vector<8x128xf32>
    %cst_376 = arith.constant 5.000000e-01 : f32
    %650 = vector.broadcast %cst_376 : f32 to vector<8x128xf32>
    %651 = arith.addf %649, %650 : vector<8x128xf32>
    %652 = arith.mulf %651, %632 : vector<8x128xf32>
    %cst_377 = arith.constant 5.000000e-01 : f32
    %653 = vector.broadcast %cst_377 : f32 to vector<8x128xf32>
    %654 = arith.mulf %653, %641 : vector<8x128xf32>
    %655 = math.tanh %654 : vector<8x128xf32>
    %cst_378 = arith.constant 5.000000e-01 : f32
    %656 = vector.broadcast %cst_378 : f32 to vector<8x128xf32>
    %657 = arith.mulf %656, %655 : vector<8x128xf32>
    %cst_379 = arith.constant 5.000000e-01 : f32
    %658 = vector.broadcast %cst_379 : f32 to vector<8x128xf32>
    %659 = arith.addf %657, %658 : vector<8x128xf32>
    %660 = math.tanh %643 : vector<8x128xf32>
    %661 = arith.mulf %659, %660 : vector<8x128xf32>
    %662 = arith.addf %652, %661 : vector<8x128xf32>
    %cst_380 = arith.constant 5.000000e-01 : f32
    %663 = vector.broadcast %cst_380 : f32 to vector<8x128xf32>
    %664 = arith.mulf %663, %644 : vector<8x128xf32>
    %665 = math.tanh %664 : vector<8x128xf32>
    %cst_381 = arith.constant 5.000000e-01 : f32
    %666 = vector.broadcast %cst_381 : f32 to vector<8x128xf32>
    %667 = arith.mulf %666, %665 : vector<8x128xf32>
    %cst_382 = arith.constant 5.000000e-01 : f32
    %668 = vector.broadcast %cst_382 : f32 to vector<8x128xf32>
    %669 = arith.addf %667, %668 : vector<8x128xf32>
    %670 = math.tanh %662 : vector<8x128xf32>
    %671 = arith.mulf %669, %670 : vector<8x128xf32>
    %c0_383 = arith.constant 0 : index
    %c0_384 = arith.constant 0 : index
    %c0_385 = arith.constant 0 : index
    %672 = vector.load %arg9[%c0_383, %c0_384, %c0_385] : memref<2x8x128xf32, #tpu.memory_space<vmem>>, vector<1x8x128xf32>
    %673 = vector.shape_cast %672 : vector<1x8x128xf32> to vector<8x128xf32>
    %674 = vector.shape_cast %671 : vector<8x128xf32> to vector<1x8x128xf32>
    tpu.vector_store %arg9[%c0_383, %c0_384, %c0_385], %674 {strides = array<i32>} : memref<2x8x128xf32, #tpu.memory_space<vmem>>, vector<1x8x128xf32>,
    %c0_386 = arith.constant 0 : index
    %c0_387 = arith.constant 0 : index
    %c0_388 = arith.constant 0 : index
    %675 = vector.load %arg10[%c0_386, %c0_387, %c0_388] : memref<2x8x128xf32, #tpu.memory_space<vmem>>, vector<1x8x128xf32>
    %676 = vector.shape_cast %675 : vector<1x8x128xf32> to vector<8x128xf32>
    %677 = vector.shape_cast %662 : vector<8x128xf32> to vector<1x8x128xf32>
    tpu.vector_store %arg10[%c0_386, %c0_387, %c0_388], %677 {strides = array<i32>} : memref<2x8x128xf32, #tpu.memory_space<vmem>>, vector<1x8x128xf32>,
    %c1_389 = arith.constant 1 : index
    %c0_390 = arith.constant 0 : index
    %c0_391 = arith.constant 0 : index
    %678 = vector.load %arg9[%c1_389, %c0_390, %c0_391] : memref<2x8x128xf32, #tpu.memory_space<vmem>>, vector<1x8x128xf32>
    %679 = vector.shape_cast %678 : vector<1x8x128xf32> to vector<8x128xf32>
    %c1_392 = arith.constant 1 : index
    %c0_393 = arith.constant 0 : index
    %c0_394 = arith.constant 0 : index
    %680 = vector.load %arg10[%c1_392, %c0_393, %c0_394] : memref<2x8x128xf32, #tpu.memory_space<vmem>>, vector<1x8x128xf32>
    %681 = vector.shape_cast %680 : vector<1x8x128xf32> to vector<8x128xf32>
    %c0_395 = arith.constant 0 : index
    %c0_396 = arith.constant 0 : index
    %c0_397 = arith.constant 0 : index
    %682 = vector.load %arg6[%c0_395, %c0_396, %c0_397] : memref<1x256x512xbf16, #tpu.memory_space<vmem>>, vector<1x256x512xbf16>
    %683 = vector.shape_cast %682 : vector<1x256x512xbf16> to vector<256x512xbf16>
    %684 = tpu.concatenate %679, %671 in 1 : vector<8x128xf32>, vector<8x128xf32> -> vector<8x256xf32>
    %685 = arith.truncf %684 : vector<8x256xf32> to vector<8x256xbf16>
    %cst_398 = arith.constant dense<0.000000e+00> : vector<8x512xf32>
    %686 = tpu.matmul %685, %683, %cst_398 {dimension_numbers = #tpu.dot_dimension_numbers<[1], [0], [0], [1], [0, 0, 1, 1], [], []>} : vector<8x256xbf16>, vector<256x512xbf16>, vector<8x512xf32> -> vector<8x512xf32>
    %c1_399 = arith.constant 1 : index
    %c0_400 = arith.constant 0 : index
    %c0_401 = arith.constant 0 : index
    %687 = vector.load %arg7[%c1_399, %c0_400, %c0_401] : memref<2x1x512xf32, #tpu.memory_space<vmem>>, vector<1x1x512xf32>
    %688 = vector.shape_cast %687 : vector<1x1x512xf32> to vector<1x512xf32>
    %689 = vector.broadcast %688 : vector<1x512xf32> to vector<8x512xf32>
    %690 = arith.addf %686, %689 : vector<8x512xf32>
    %691 = vector.extract_strided_slice %690 {offsets = [0, 0], sizes = [8, 128], strides = [1, 1]} : vector<8x512xf32> to vector<8x128xf32>
    %692 = vector.extract_strided_slice %690 {offsets = [0, 128], sizes = [8, 128], strides = [1, 1]} : vector<8x512xf32> to vector<8x128xf32>
    %693 = vector.extract_strided_slice %690 {offsets = [0, 256], sizes = [8, 128], strides = [1, 1]} : vector<8x512xf32> to vector<8x128xf32>
    %694 = vector.extract_strided_slice %690 {offsets = [0, 384], sizes = [8, 128], strides = [1, 1]} : vector<8x512xf32> to vector<8x128xf32>
    %cst_402 = arith.constant 5.000000e-01 : f32
    %695 = vector.broadcast %cst_402 : f32 to vector<8x128xf32>
    %696 = arith.mulf %695, %692 : vector<8x128xf32>
    %697 = math.tanh %696 : vector<8x128xf32>
    %cst_403 = arith.constant 5.000000e-01 : f32
    %698 = vector.broadcast %cst_403 : f32 to vector<8x128xf32>
    %699 = arith.mulf %698, %697 : vector<8x128xf32>
    %cst_404 = arith.constant 5.000000e-01 : f32
    %700 = vector.broadcast %cst_404 : f32 to vector<8x128xf32>
    %701 = arith.addf %699, %700 : vector<8x128xf32>
    %702 = arith.mulf %701, %681 : vector<8x128xf32>
    %cst_405 = arith.constant 5.000000e-01 : f32
    %703 = vector.broadcast %cst_405 : f32 to vector<8x128xf32>
    %704 = arith.mulf %703, %691 : vector<8x128xf32>
    %705 = math.tanh %704 : vector<8x128xf32>
    %cst_406 = arith.constant 5.000000e-01 : f32
    %706 = vector.broadcast %cst_406 : f32 to vector<8x128xf32>
    %707 = arith.mulf %706, %705 : vector<8x128xf32>
    %cst_407 = arith.constant 5.000000e-01 : f32
    %708 = vector.broadcast %cst_407 : f32 to vector<8x128xf32>
    %709 = arith.addf %707, %708 : vector<8x128xf32>
    %710 = math.tanh %693 : vector<8x128xf32>
    %711 = arith.mulf %709, %710 : vector<8x128xf32>
    %712 = arith.addf %702, %711 : vector<8x128xf32>
    %cst_408 = arith.constant 5.000000e-01 : f32
    %713 = vector.broadcast %cst_408 : f32 to vector<8x128xf32>
    %714 = arith.mulf %713, %694 : vector<8x128xf32>
    %715 = math.tanh %714 : vector<8x128xf32>
    %cst_409 = arith.constant 5.000000e-01 : f32
    %716 = vector.broadcast %cst_409 : f32 to vector<8x128xf32>
    %717 = arith.mulf %716, %715 : vector<8x128xf32>
    %cst_410 = arith.constant 5.000000e-01 : f32
    %718 = vector.broadcast %cst_410 : f32 to vector<8x128xf32>
    %719 = arith.addf %717, %718 : vector<8x128xf32>
    %720 = math.tanh %712 : vector<8x128xf32>
    %721 = arith.mulf %719, %720 : vector<8x128xf32>
    %c1_411 = arith.constant 1 : index
    %c0_412 = arith.constant 0 : index
    %c0_413 = arith.constant 0 : index
    %722 = vector.load %arg9[%c1_411, %c0_412, %c0_413] : memref<2x8x128xf32, #tpu.memory_space<vmem>>, vector<1x8x128xf32>
    %723 = vector.shape_cast %722 : vector<1x8x128xf32> to vector<8x128xf32>
    %724 = vector.shape_cast %721 : vector<8x128xf32> to vector<1x8x128xf32>
    tpu.vector_store %arg9[%c1_411, %c0_412, %c0_413], %724 {strides = array<i32>} : memref<2x8x128xf32, #tpu.memory_space<vmem>>, vector<1x8x128xf32>,
    %c1_414 = arith.constant 1 : index
    %c0_415 = arith.constant 0 : index
    %c0_416 = arith.constant 0 : index
    %725 = vector.load %arg10[%c1_414, %c0_415, %c0_416] : memref<2x8x128xf32, #tpu.memory_space<vmem>>, vector<1x8x128xf32>
    %726 = vector.shape_cast %725 : vector<1x8x128xf32> to vector<8x128xf32>
    %727 = vector.shape_cast %712 : vector<8x128xf32> to vector<1x8x128xf32>
    tpu.vector_store %arg10[%c1_414, %c0_415, %c0_416], %727 {strides = array<i32>} : memref<2x8x128xf32, #tpu.memory_space<vmem>>, vector<1x8x128xf32>,
    %c6_417 = arith.constant 6 : index
    %c0_418 = arith.constant 0 : index
    %c0_419 = arith.constant 0 : index
    %728 = vector.load %arg8[%c6_417, %c0_418, %c0_419] : memref<8x8x128xf32, #tpu.memory_space<vmem>>, vector<1x8x128xf32>
    %729 = vector.shape_cast %728 : vector<1x8x128xf32> to vector<8x128xf32>
    %730 = vector.shape_cast %721 : vector<8x128xf32> to vector<1x8x128xf32>
    tpu.vector_store %arg8[%c6_417, %c0_418, %c0_419], %730 {strides = array<i32>} : memref<8x8x128xf32, #tpu.memory_space<vmem>>, vector<1x8x128xf32>,
    %c7 = arith.constant 7 : index
    %c0_420 = arith.constant 0 : index
    %c0_421 = arith.constant 0 : index
    %731 = vector.load %arg2[%c7, %c0_420, %c0_421] : memref<8x8x16xf32, #tpu.memory_space<vmem>>, vector<1x8x16xf32>
    %732 = vector.shape_cast %731 : vector<1x8x16xf32> to vector<8x16xf32>
    %c0_422 = arith.constant 0 : index
    %c0_423 = arith.constant 0 : index
    %c0_424 = arith.constant 0 : index
    %733 = vector.load %arg9[%c0_422, %c0_423, %c0_424] : memref<2x8x128xf32, #tpu.memory_space<vmem>>, vector<1x8x128xf32>
    %734 = vector.shape_cast %733 : vector<1x8x128xf32> to vector<8x128xf32>
    %c0_425 = arith.constant 0 : index
    %c0_426 = arith.constant 0 : index
    %c0_427 = arith.constant 0 : index
    %735 = vector.load %arg10[%c0_425, %c0_426, %c0_427] : memref<2x8x128xf32, #tpu.memory_space<vmem>>, vector<1x8x128xf32>
    %736 = vector.shape_cast %735 : vector<1x8x128xf32> to vector<8x128xf32>
    %c0_428 = arith.constant 0 : index
    %c0_429 = arith.constant 0 : index
    %737 = vector.load %arg5[%c0_428, %c0_429] : memref<144x512xbf16, #tpu.memory_space<vmem>>, vector<144x512xbf16>
    %738 = tpu.concatenate %734, %732 in 1 : vector<8x128xf32>, vector<8x16xf32> -> vector<8x144xf32>
    %739 = arith.truncf %738 : vector<8x144xf32> to vector<8x144xbf16>
    %cst_430 = arith.constant dense<0.000000e+00> : vector<8x512xf32>
    %740 = tpu.matmul %739, %737, %cst_430 {dimension_numbers = #tpu.dot_dimension_numbers<[1], [0], [0], [1], [0, 0, 1, 1], [], []>} : vector<8x144xbf16>, vector<144x512xbf16>, vector<8x512xf32> -> vector<8x512xf32>
    %c0_431 = arith.constant 0 : index
    %c0_432 = arith.constant 0 : index
    %c0_433 = arith.constant 0 : index
    %741 = vector.load %arg7[%c0_431, %c0_432, %c0_433] : memref<2x1x512xf32, #tpu.memory_space<vmem>>, vector<1x1x512xf32>
    %742 = vector.shape_cast %741 : vector<1x1x512xf32> to vector<1x512xf32>
    %743 = vector.broadcast %742 : vector<1x512xf32> to vector<8x512xf32>
    %744 = arith.addf %740, %743 : vector<8x512xf32>
    %745 = vector.extract_strided_slice %744 {offsets = [0, 0], sizes = [8, 128], strides = [1, 1]} : vector<8x512xf32> to vector<8x128xf32>
    %746 = vector.extract_strided_slice %744 {offsets = [0, 128], sizes = [8, 128], strides = [1, 1]} : vector<8x512xf32> to vector<8x128xf32>
    %747 = vector.extract_strided_slice %744 {offsets = [0, 256], sizes = [8, 128], strides = [1, 1]} : vector<8x512xf32> to vector<8x128xf32>
    %748 = vector.extract_strided_slice %744 {offsets = [0, 384], sizes = [8, 128], strides = [1, 1]} : vector<8x512xf32> to vector<8x128xf32>
    %cst_434 = arith.constant 5.000000e-01 : f32
    %749 = vector.broadcast %cst_434 : f32 to vector<8x128xf32>
    %750 = arith.mulf %749, %746 : vector<8x128xf32>
    %751 = math.tanh %750 : vector<8x128xf32>
    %cst_435 = arith.constant 5.000000e-01 : f32
    %752 = vector.broadcast %cst_435 : f32 to vector<8x128xf32>
    %753 = arith.mulf %752, %751 : vector<8x128xf32>
    %cst_436 = arith.constant 5.000000e-01 : f32
    %754 = vector.broadcast %cst_436 : f32 to vector<8x128xf32>
    %755 = arith.addf %753, %754 : vector<8x128xf32>
    %756 = arith.mulf %755, %736 : vector<8x128xf32>
    %cst_437 = arith.constant 5.000000e-01 : f32
    %757 = vector.broadcast %cst_437 : f32 to vector<8x128xf32>
    %758 = arith.mulf %757, %745 : vector<8x128xf32>
    %759 = math.tanh %758 : vector<8x128xf32>
    %cst_438 = arith.constant 5.000000e-01 : f32
    %760 = vector.broadcast %cst_438 : f32 to vector<8x128xf32>
    %761 = arith.mulf %760, %759 : vector<8x128xf32>
    %cst_439 = arith.constant 5.000000e-01 : f32
    %762 = vector.broadcast %cst_439 : f32 to vector<8x128xf32>
    %763 = arith.addf %761, %762 : vector<8x128xf32>
    %764 = math.tanh %747 : vector<8x128xf32>
    %765 = arith.mulf %763, %764 : vector<8x128xf32>
    %766 = arith.addf %756, %765 : vector<8x128xf32>
    %cst_440 = arith.constant 5.000000e-01 : f32
    %767 = vector.broadcast %cst_440 : f32 to vector<8x128xf32>
    %768 = arith.mulf %767, %748 : vector<8x128xf32>
    %769 = math.tanh %768 : vector<8x128xf32>
    %cst_441 = arith.constant 5.000000e-01 : f32
    %770 = vector.broadcast %cst_441 : f32 to vector<8x128xf32>
    %771 = arith.mulf %770, %769 : vector<8x128xf32>
    %cst_442 = arith.constant 5.000000e-01 : f32
    %772 = vector.broadcast %cst_442 : f32 to vector<8x128xf32>
    %773 = arith.addf %771, %772 : vector<8x128xf32>
    %774 = math.tanh %766 : vector<8x128xf32>
    %775 = arith.mulf %773, %774 : vector<8x128xf32>
    %c0_443 = arith.constant 0 : index
    %c0_444 = arith.constant 0 : index
    %c0_445 = arith.constant 0 : index
    %776 = vector.load %arg9[%c0_443, %c0_444, %c0_445] : memref<2x8x128xf32, #tpu.memory_space<vmem>>, vector<1x8x128xf32>
    %777 = vector.shape_cast %776 : vector<1x8x128xf32> to vector<8x128xf32>
    %778 = vector.shape_cast %775 : vector<8x128xf32> to vector<1x8x128xf32>
    tpu.vector_store %arg9[%c0_443, %c0_444, %c0_445], %778 {strides = array<i32>} : memref<2x8x128xf32, #tpu.memory_space<vmem>>, vector<1x8x128xf32>,
    %c0_446 = arith.constant 0 : index
    %c0_447 = arith.constant 0 : index
    %c0_448 = arith.constant 0 : index
    %779 = vector.load %arg10[%c0_446, %c0_447, %c0_448] : memref<2x8x128xf32, #tpu.memory_space<vmem>>, vector<1x8x128xf32>
    %780 = vector.shape_cast %779 : vector<1x8x128xf32> to vector<8x128xf32>
    %781 = vector.shape_cast %766 : vector<8x128xf32> to vector<1x8x128xf32>
    tpu.vector_store %arg10[%c0_446, %c0_447, %c0_448], %781 {strides = array<i32>} : memref<2x8x128xf32, #tpu.memory_space<vmem>>, vector<1x8x128xf32>,
    %c1_449 = arith.constant 1 : index
    %c0_450 = arith.constant 0 : index
    %c0_451 = arith.constant 0 : index
    %782 = vector.load %arg9[%c1_449, %c0_450, %c0_451] : memref<2x8x128xf32, #tpu.memory_space<vmem>>, vector<1x8x128xf32>
    %783 = vector.shape_cast %782 : vector<1x8x128xf32> to vector<8x128xf32>
    %c1_452 = arith.constant 1 : index
    %c0_453 = arith.constant 0 : index
    %c0_454 = arith.constant 0 : index
    %784 = vector.load %arg10[%c1_452, %c0_453, %c0_454] : memref<2x8x128xf32, #tpu.memory_space<vmem>>, vector<1x8x128xf32>
    %785 = vector.shape_cast %784 : vector<1x8x128xf32> to vector<8x128xf32>
    %c0_455 = arith.constant 0 : index
    %c0_456 = arith.constant 0 : index
    %c0_457 = arith.constant 0 : index
    %786 = vector.load %arg6[%c0_455, %c0_456, %c0_457] : memref<1x256x512xbf16, #tpu.memory_space<vmem>>, vector<1x256x512xbf16>
    %787 = vector.shape_cast %786 : vector<1x256x512xbf16> to vector<256x512xbf16>
    %788 = tpu.concatenate %783, %775 in 1 : vector<8x128xf32>, vector<8x128xf32> -> vector<8x256xf32>
    %789 = arith.truncf %788 : vector<8x256xf32> to vector<8x256xbf16>
    %cst_458 = arith.constant dense<0.000000e+00> : vector<8x512xf32>
    %790 = tpu.matmul %789, %787, %cst_458 {dimension_numbers = #tpu.dot_dimension_numbers<[1], [0], [0], [1], [0, 0, 1, 1], [], []>} : vector<8x256xbf16>, vector<256x512xbf16>, vector<8x512xf32> -> vector<8x512xf32>
    %c1_459 = arith.constant 1 : index
    %c0_460 = arith.constant 0 : index
    %c0_461 = arith.constant 0 : index
    %791 = vector.load %arg7[%c1_459, %c0_460, %c0_461] : memref<2x1x512xf32, #tpu.memory_space<vmem>>, vector<1x1x512xf32>
    %792 = vector.shape_cast %791 : vector<1x1x512xf32> to vector<1x512xf32>
    %793 = vector.broadcast %792 : vector<1x512xf32> to vector<8x512xf32>
    %794 = arith.addf %790, %793 : vector<8x512xf32>
    %795 = vector.extract_strided_slice %794 {offsets = [0, 0], sizes = [8, 128], strides = [1, 1]} : vector<8x512xf32> to vector<8x128xf32>
    %796 = vector.extract_strided_slice %794 {offsets = [0, 128], sizes = [8, 128], strides = [1, 1]} : vector<8x512xf32> to vector<8x128xf32>
    %797 = vector.extract_strided_slice %794 {offsets = [0, 256], sizes = [8, 128], strides = [1, 1]} : vector<8x512xf32> to vector<8x128xf32>
    %798 = vector.extract_strided_slice %794 {offsets = [0, 384], sizes = [8, 128], strides = [1, 1]} : vector<8x512xf32> to vector<8x128xf32>
    %cst_462 = arith.constant 5.000000e-01 : f32
    %799 = vector.broadcast %cst_462 : f32 to vector<8x128xf32>
    %800 = arith.mulf %799, %796 : vector<8x128xf32>
    %801 = math.tanh %800 : vector<8x128xf32>
    %cst_463 = arith.constant 5.000000e-01 : f32
    %802 = vector.broadcast %cst_463 : f32 to vector<8x128xf32>
    %803 = arith.mulf %802, %801 : vector<8x128xf32>
    %cst_464 = arith.constant 5.000000e-01 : f32
    %804 = vector.broadcast %cst_464 : f32 to vector<8x128xf32>
    %805 = arith.addf %803, %804 : vector<8x128xf32>
    %806 = arith.mulf %805, %785 : vector<8x128xf32>
    %cst_465 = arith.constant 5.000000e-01 : f32
    %807 = vector.broadcast %cst_465 : f32 to vector<8x128xf32>
    %808 = arith.mulf %807, %795 : vector<8x128xf32>
    %809 = math.tanh %808 : vector<8x128xf32>
    %cst_466 = arith.constant 5.000000e-01 : f32
    %810 = vector.broadcast %cst_466 : f32 to vector<8x128xf32>
    %811 = arith.mulf %810, %809 : vector<8x128xf32>
    %cst_467 = arith.constant 5.000000e-01 : f32
    %812 = vector.broadcast %cst_467 : f32 to vector<8x128xf32>
    %813 = arith.addf %811, %812 : vector<8x128xf32>
    %814 = math.tanh %797 : vector<8x128xf32>
    %815 = arith.mulf %813, %814 : vector<8x128xf32>
    %816 = arith.addf %806, %815 : vector<8x128xf32>
    %cst_468 = arith.constant 5.000000e-01 : f32
    %817 = vector.broadcast %cst_468 : f32 to vector<8x128xf32>
    %818 = arith.mulf %817, %798 : vector<8x128xf32>
    %819 = math.tanh %818 : vector<8x128xf32>
    %cst_469 = arith.constant 5.000000e-01 : f32
    %820 = vector.broadcast %cst_469 : f32 to vector<8x128xf32>
    %821 = arith.mulf %820, %819 : vector<8x128xf32>
    %cst_470 = arith.constant 5.000000e-01 : f32
    %822 = vector.broadcast %cst_470 : f32 to vector<8x128xf32>
    %823 = arith.addf %821, %822 : vector<8x128xf32>
    %824 = math.tanh %816 : vector<8x128xf32>
    %825 = arith.mulf %823, %824 : vector<8x128xf32>
    %c1_471 = arith.constant 1 : index
    %c0_472 = arith.constant 0 : index
    %c0_473 = arith.constant 0 : index
    %826 = vector.load %arg9[%c1_471, %c0_472, %c0_473] : memref<2x8x128xf32, #tpu.memory_space<vmem>>, vector<1x8x128xf32>
    %827 = vector.shape_cast %826 : vector<1x8x128xf32> to vector<8x128xf32>
    %828 = vector.shape_cast %825 : vector<8x128xf32> to vector<1x8x128xf32>
    tpu.vector_store %arg9[%c1_471, %c0_472, %c0_473], %828 {strides = array<i32>} : memref<2x8x128xf32, #tpu.memory_space<vmem>>, vector<1x8x128xf32>,
    %c1_474 = arith.constant 1 : index
    %c0_475 = arith.constant 0 : index
    %c0_476 = arith.constant 0 : index
    %829 = vector.load %arg10[%c1_474, %c0_475, %c0_476] : memref<2x8x128xf32, #tpu.memory_space<vmem>>, vector<1x8x128xf32>
    %830 = vector.shape_cast %829 : vector<1x8x128xf32> to vector<8x128xf32>
    %831 = vector.shape_cast %816 : vector<8x128xf32> to vector<1x8x128xf32>
    tpu.vector_store %arg10[%c1_474, %c0_475, %c0_476], %831 {strides = array<i32>} : memref<2x8x128xf32, #tpu.memory_space<vmem>>, vector<1x8x128xf32>,
    %c7_477 = arith.constant 7 : index
    %c0_478 = arith.constant 0 : index
    %c0_479 = arith.constant 0 : index
    %832 = vector.load %arg8[%c7_477, %c0_478, %c0_479] : memref<8x8x128xf32, #tpu.memory_space<vmem>>, vector<1x8x128xf32>
    %833 = vector.shape_cast %832 : vector<1x8x128xf32> to vector<8x128xf32>
    %834 = vector.shape_cast %825 : vector<8x128xf32> to vector<1x8x128xf32>
    tpu.vector_store %arg8[%c7_477, %c0_478, %c0_479], %834 {strides = array<i32>} : memref<8x8x128xf32, #tpu.memory_space<vmem>>, vector<1x8x128xf32>,
    return
  }
  func.func @transform_0(%arg0: i32, %arg1: i32) -> (i32, i32, i32) {
    %c0_i32 = arith.constant 0 : i32
    %c0_i32_0 = arith.constant 0 : i32
    return %arg1, %arg0, %c0_i32 : i32, i32, i32
  }
  func.func @transform_1(%arg0: i32, %arg1: i32) -> (i32, i32, i32) {
    %c0_i32 = arith.constant 0 : i32
    %c0_i32_0 = arith.constant 0 : i32
    %c0_i32_1 = arith.constant 0 : i32
    return %c0_i32, %arg0, %c0_i32_0 : i32, i32, i32
  }
  func.func @transform_2(%arg0: i32, %arg1: i32) -> (i32, i32, i32) {
    %c0_i32 = arith.constant 0 : i32
    %c0_i32_0 = arith.constant 0 : i32
    %c0_i32_1 = arith.constant 0 : i32
    return %c0_i32, %arg0, %c0_i32_0 : i32, i32, i32
  }
  func.func @transform_3(%arg0: i32, %arg1: i32) -> (i32, i32) {
    %c0_i32 = arith.constant 0 : i32
    %c0_i32_0 = arith.constant 0 : i32
    %c0_i32_1 = arith.constant 0 : i32
    return %c0_i32, %c0_i32_0 : i32, i32
  }
  func.func @transform_4(%arg0: i32, %arg1: i32) -> (i32, i32, i32) {
    %c0_i32 = arith.constant 0 : i32
    %c0_i32_0 = arith.constant 0 : i32
    %c0_i32_1 = arith.constant 0 : i32
    %c0_i32_2 = arith.constant 0 : i32
    return %c0_i32, %c0_i32_0, %c0_i32_1 : i32, i32, i32
  }
  func.func @transform_5(%arg0: i32, %arg1: i32) -> (i32, i32, i32) {
    %c0_i32 = arith.constant 0 : i32
    %c0_i32_0 = arith.constant 0 : i32
    %c0_i32_1 = arith.constant 0 : i32
    %c0_i32_2 = arith.constant 0 : i32
    return %c0_i32, %c0_i32_0, %c0_i32_1 : i32, i32, i32
  }
  func.func @transform_6(%arg0: i32, %arg1: i32) -> (i32, i32, i32) {
    %c0_i32 = arith.constant 0 : i32
    %c0_i32_0 = arith.constant 0 : i32
    return %arg1, %arg0, %c0_i32 : i32, i32, i32
  }
  func.func @transform_7(%arg0: i32, %arg1: i32) -> (i32, i32, i32) {
    %c0_i32 = arith.constant 0 : i32
    %c0_i32_0 = arith.constant 0 : i32
    %c0_i32_1 = arith.constant 0 : i32
    return %c0_i32, %arg0, %c0_i32_0 : i32, i32, i32
  }
  func.func @transform_8(%arg0: i32, %arg1: i32) -> (i32, i32, i32) {
    %c0_i32 = arith.constant 0 : i32
    %c0_i32_0 = arith.constant 0 : i32
    %c0_i32_1 = arith.constant 0 : i32
    return %c0_i32, %arg0, %c0_i32_0 : i32, i32, i32
  }
}

</mosaic_0001>

<bundles_post_ra>
// kernel: tpu_custom_call.1
= control target key start
LH: loop header
LB: loop body
LE: loop exit
PB: predicated region body
PF: predicated region fallthrough
CT: control target
= control target key end

     0   :  { %14 = vsyncpa [#allocation3], 0  ;;  %s10584_s0 = inlined_call_operand.hbm [shape: f32[8,8,16], index: 0, kind: input, shape index: {}]   ;;  %s10585_s1 = inlined_call_operand.hbm [shape: f32[2,8,128], index: 1, kind: input, shape index: {}]   ;;  %s10586_s2 = inlined_call_operand.hbm [shape: f32[2,8,128], index: 2, kind: input, shape index: {}]   ;;  %s10587_s3 = inlined_call_operand.hbm [shape: bf16[144,512], index: 3, kind: input, shape index: {}]   ;;  %s10588_s4 = inlined_call_operand.hbm [shape: bf16[1,256,512], index: 4, kind: input, shape index: {}]   ;;  %s10589_s5 = inlined_call_operand.vmem [shape: f32[2,1,512], index: 5, kind: input, shape index: {}]   ;;  %s10590_s6 = inlined_call_operand.hbm [shape: f32[8,8,128], index: 6, kind: output, shape index: {0}]   ;;  %s10591_s7 = inlined_call_operand.hbm [shape: f32[2,8,128], index: 7, kind: output, shape index: {1}]   ;;  %s10592_s8 = inlined_call_operand.hbm [shape: f32[2,8,128], index: 8, kind: output, shape index: {2}]  }
   0x1   :  { %15 = vsyncpa [#allocation6], 0 }
   0x2   :  { %16 = vsyncpa [#allocation9], 0 }
   0x3   :  { %17 = vsyncpa [#allocation4], 0 }
   0x4   :  { %18 = vsyncpa [#allocation13], 0  ;;  %s8887_s27 = smov [#allocation5]   ;;  %s8888_s29 = smov [#allocation8]  }
   0x5   :  { %s36_s28 = sshll.u32 %s8887_s27, 4  ;;  %s60_s30 = sshll.u32 %s8888_s29, 4  ;;  %s37_s28 = int_to_ptr.vmem [resolvable:$true] %s36_s28  ;;  %s61_s30 = int_to_ptr.vmem [resolvable:$true] %s60_s30 }
   0x6   :  { %s8725_s9 = scalar_lea.vmem %s37_s28, 256  ;;  %p8730_p1 = scmp.lt.s32.totalorder %s37_s28, %s37_s28 }
   0x7   :  { %p8726_p0 = scmp.ne.s32.totalorder %s37_s28, %s8725_s9  ;;  %p8731_p2 = scmp.lt.s32.totalorder %s8725_s9, %s8725_s9 }
   0x9   :  { %p8732_p3 = por %p8731_p2, %p8730_p1 }
   0xb   :  { %p8733_p4 = pnand %p8732_p3, %p8726_p0 }
   0xd   :  { %8736 = shalt.err (!%p8733_p4)
}
   0xe   :  { %s8889_s10 = smov 128   ;;  %s8890_s11 = smov 8  }
   0xf   :  { %42 = dma.hbm_to_vmem [thread:$0]  %s10585_s1, 256, %s37_s28, [#allocation6], %s8889_s10, %s8889_s10, %s8890_s11  }
  0x10   :  { %s8745_s14 = scalar_lea.vmem %s61_s30, 4608  ;;  %p8750_p6 = scmp.lt.s32.totalorder %s61_s30, %s61_s30 }
  0x11   :  { %p8746_p5 = scmp.ne.s32.totalorder %s61_s30, %s8745_s14  ;;  %p8751_p7 = scmp.lt.s32.totalorder %s8745_s14, %s8745_s14 }
  0x13   :  { %p8752_p8 = por %p8751_p7, %p8750_p6 }
  0x15   :  { %p8753_p9 = pnand %p8752_p8, %p8746_p5 }
  0x17   :  { %8756 = shalt.err (!%p8753_p9)
}
  0x18   :  { %s8891_s15 = smov 256   ;;  %s8892_s16 = smov 16  }
  0x19   :  { %66 = dma.hbm_to_vmem [thread:$0]  %s10587_s3, 4608, %s61_s30, [#allocation9], %s8891_s15, %s8891_s15, %s8892_s16  }
  0x1a   :  { %s8893_s19 = smov [#allocation2]   ;;  %s8894_s21 = smov [#allocation7]  }
  0x1b   :  { %s24_s20 = sshll.u32 %s8893_s19, 4  ;;  %s48_s1 = sshll.u32 %s8894_s21, 4  ;;  %s25_s20 = int_to_ptr.vmem [resolvable:$true] %s24_s20  ;;  %s49_s1 = int_to_ptr.vmem [resolvable:$true] %s48_s1 }
  0x1c   :  { %s8765_s22 = scalar_lea.vmem %s25_s20, 1024  ;;  %p8770_p11 = scmp.lt.s32.totalorder %s25_s20, %s25_s20 }
  0x1d   :  { %p8766_p10 = scmp.ne.s32.totalorder %s25_s20, %s8765_s22  ;;  %p8771_p12 = scmp.lt.s32.totalorder %s8765_s22, %s8765_s22 }
  0x1f   :  { %p8772_p13 = por %p8771_p12, %p8770_p11 }
  0x21   :  { %p8773_p0 = pnand %p8772_p13, %p8766_p10 }
  0x23   :  { %8776 = shalt.err (!%p8773_p0)
}
  0x24   :  { %30 = dma.hbm_to_vmem [thread:$0]  %s10584_s0, 1024, %s25_s20, [#allocation3], %s8889_s10, %s8889_s10, %s8890_s11  }
  0x25   :  { %s8785_s3 = scalar_lea.vmem %s49_s1, 256  ;;  %p8790_p2 = scmp.lt.s32.totalorder %s49_s1, %s49_s1 }
  0x26   :  { %p8786_p1 = scmp.ne.s32.totalorder %s49_s1, %s8785_s3  ;;  %p8791_p3 = scmp.lt.s32.totalorder %s8785_s3, %s8785_s3 }
  0x28   :  { %p8792_p4 = por %p8791_p3, %p8790_p2 }
  0x2a   :  { %p8793_p5 = pnand %p8792_p4, %p8786_p1 }
  0x2c   :  { %8796 = shalt.err (!%p8793_p5)
}
  0x2d   :  { %54 = dma.hbm_to_vmem [thread:$0]  %s10586_s2, 256, %s49_s1, [#allocation6], %s8889_s10, %s8889_s10, %s8890_s11  }
  0x2e   :  { %s8895_s27 = smov [#allocation10]  }
  0x2f   :  { %s72_s28 = sshll.u32 %s8895_s27, 4  ;;  %s73_s28 = int_to_ptr.vmem [resolvable:$true] %s72_s28 }
  0x30   :  { %s8805_s29 = scalar_lea.vmem %s73_s28, 8192  ;;  %p8810_p7 = scmp.lt.s32.totalorder %s73_s28, %s73_s28 }
  0x31   :  { %p8806_p6 = scmp.ne.s32.totalorder %s73_s28, %s8805_s29  ;;  %p8811_p8 = scmp.lt.s32.totalorder %s8805_s29, %s8805_s29 }
  0x33   :  { %p8812_p9 = por %p8811_p8, %p8810_p7 }
  0x35   :  { %p8813_p10 = pnand %p8812_p9, %p8806_p6 }
  0x37   :  { %8816 = shalt.err (!%p8813_p10)
}
  0x38   :  { %78 = dma.hbm_to_vmem [thread:$0]  %s10588_s4, 8192, %s73_s28, [#allocation9], %s8891_s15, %s8891_s15, %s8892_s16  }
  0x39   :  { %8877 = dma.done.wait [#allocation3], 1024  }
  0x3a   :  { %8878 = vsyncadd [#allocation3], 4294966272 }
  0x3b   :  { %8879 = dma.done.wait [#allocation6], 512  }
  0x3c   :  { %8880 = vsyncadd [#allocation6], 4294966784 }
  0x3d   :  { %8881 = dma.done.wait [#allocation9], 12800  }
  0x3e   :  { %8882 = vsyncadd [#allocation9], 4294954496  ;;  %v7901_v0 = vld [vmem:[#allocation8 + $0xe4] ss:$16 sps:$4 sm:$0xff]   ;;  %v7903_v1 = vld [vmem:[#allocation8 + $0xe0] ss:$16 sps:$4 sm:$0xff]  }
  0x3f   :  { %356 = vmatprep.subr.bf16.mxu0 %v7901_v0  ;;  %v7904_v2 = vld [vmem:[#allocation8 + $0xec] ss:$16 sps:$4 sm:$0xff]   ;;  %v7906_v3 = vld [vmem:[#allocation8 + $0xe8] ss:$16 sps:$4 sm:$0xff]   ;;  %v7907_v4 = vld [vmem:[#allocation8 + $0xc4] ss:$16 sps:$4 sm:$0xff]  }
  0x40   :  { %357 = vmatpush1.bf16.msra.mxu0 %v7903_v1  ;;  %v7909_v5 = vld [vmem:[#allocation8 + $0xc0] ss:$16 sps:$4 sm:$0xff]   ;;  %397 = vmatprep.subr.bf16.mxu1 %v7904_v2  ;;  %v7910_v6 = vld [vmem:[#allocation8 + $0xcc] ss:$16 sps:$4 sm:$0xff]   ;;  %v7912_v7 = vld [vmem:[#allocation8 + $0xc8] ss:$16 sps:$4 sm:$0xff]  }
  0x41   :  { %398 = vmatpush1.bf16.msra.mxu1 %v7906_v3  ;;  %358 = vmatprep.subr.bf16.mxu0 %v7907_v4  ;;  %v7913_v8 = vld [vmem:[#allocation8 + $0xa4] ss:$16 sps:$4 sm:$0xff]   ;;  %v7915_v9 = vld [vmem:[#allocation8 + $0xa0] ss:$16 sps:$4 sm:$0xff]   ;;  %v7916_v10 = vld [vmem:[#allocation8 + $0xac] ss:$16 sps:$4 sm:$0xff]  }
  0x42   :  { %399 = vmatprep.subr.bf16.mxu1 %v7910_v6  ;;  %v7919_v11 = vld [vmem:[#allocation8 + $0x84] ss:$16 sps:$4 sm:$0xff]   ;;  %v7918_v12 = vld [vmem:[#allocation8 + $0xa8] ss:$16 sps:$4 sm:$0xff]   ;;  %v7922_v13 = vld [vmem:[#allocation8 + $0x8c] ss:$16 sps:$4 sm:$0xff]  }
  0x43   :  { %v7921_v14 = vld [vmem:[#allocation8 + $0x80] ss:$16 sps:$4 sm:$0xff]   ;;  %v7925_v15 = vld [vmem:[#allocation8 + $0x64] ss:$16 sps:$4 sm:$0xff]   ;;  %v7924_v16 = vld [vmem:[#allocation8 + $0x88] ss:$16 sps:$4 sm:$0xff]  }
  0x44   :  { %359 = vmatpush1.bf16.msra.mxu0 %v7909_v5  ;;  %v7928_v17 = vld [vmem:[#allocation8 + $0x6c] ss:$16 sps:$4 sm:$0xff]   ;;  %v7927_v18 = vld [vmem:[#allocation8 + $0x60] ss:$16 sps:$4 sm:$0xff]   ;;  %v7931_v19 = vld [vmem:[#allocation8 + $0x44] ss:$16 sps:$4 sm:$0xff]  }
  0x45   :  { %360 = vmatprep.subr.bf16.mxu0 %v7913_v8  ;;  %400 = vmatpush1.bf16.msra.mxu1 %v7912_v7  ;;  %v7930_v20 = vld [vmem:[#allocation8 + $0x68] ss:$16 sps:$4 sm:$0xff]   ;;  %v7934_v21 = vld [vmem:[#allocation8 + $0x4c] ss:$16 sps:$4 sm:$0xff]   ;;  %v7933_v22 = vld [vmem:[#allocation8 + $0x40] ss:$16 sps:$4 sm:$0xff]  }
  0x46   :  { %401 = vmatprep.subr.bf16.mxu1 %v7916_v10  ;;  %v7937_v23 = vld [vmem:[#allocation8 + $0x24] ss:$16 sps:$4 sm:$0xff]   ;;  %v7936_v24 = vld [vmem:[#allocation8 + $0x48] ss:$16 sps:$4 sm:$0xff]   ;;  %v7940_v25 = vld [vmem:[#allocation8 + $0x2c] ss:$16 sps:$4 sm:$0xff]  }
  0x47   :  { %v7939_v26 = vld [vmem:[#allocation8 + $0x20] ss:$16 sps:$4 sm:$0xff]   ;;  %vm352_vm0 = vcmask 130048   ;;  %v7943_v28 = vld [vmem:[#allocation8 + $0x4] ss:$16 sps:$4 sm:$0xff]   ;;  %s8897_s17 = smov [#allocation11]  }
  0x48   :  { %361 = vmatpush1.bf16.msra.mxu0 %v7915_v9  ;;  %v109_v27 = vld [vmem:[#allocation2] sm:$0xff]  ;;  %v7942_v30 = vld [vmem:[#allocation8 + $0x28] ss:$16 sps:$4 sm:$0xff]   ;;  %v7946_v31 = vld [vmem:[#allocation8 + $0xc] ss:$16 sps:$4 sm:$0xff]   ;;  %s7020_s18 = sshll.u32 %s8897_s17, 4  ;;  %s7021_s18 = int_to_ptr.vmem [resolvable:$true] %s7020_s18 }
  0x49   :  { %362 = vmatprep.subr.bf16.mxu0 %v7919_v11  ;;  %402 = vmatpush1.bf16.msra.mxu1 %v7918_v12  ;;  %v149_v29 = vpack.c.bf16 %v109_v27, %v109_v27  ;;  %v7945_v32 = vld [vmem:[#allocation8] ss:$16 sps:$4 sm:$0xff]   ;;  %v7949_v33 = vld [vmem:[#allocation8 + $0x104] ss:$16 sps:$4 sm:$0xff]   ;;  %v7948_v34 = vld [vmem:[#allocation8 + $0x8] ss:$16 sps:$4 sm:$0xff]  }
  0x4a   :  { %403 = vmatprep.subr.bf16.mxu1 %v7922_v13  ;;  %v7951_v35 = vld [vmem:[#allocation8 + $0x100] ss:$16 sps:$4 sm:$0xff]   ;;  %v7952_v36 = vld [vmem:[#allocation8 + $0x10c] ss:$16 sps:$4 sm:$0xff]   ;;  %v7957_v38 = vld [vmem:[#allocation10 + $0xe4] ss:$16 sps:$4 sm:$0xff]  }
  0x4b   :  { %7101 = vmatprep.mubr.msk.bf16.mxu0 %vm352_vm0, %v149_v29  ;;  %7102 = vmatprep.mubr.msk.bf16.mxu1 %vm352_vm0, %v149_v29  ;;  %v101_v37 = vld [vmem:[#allocation5] sm:$0xff]  ;;  %v7954_v39 = vld [vmem:[#allocation8 + $0x108] ss:$16 sps:$4 sm:$0xff]   ;;  %v7960_v41 = vld [vmem:[#allocation10 + $0xec] ss:$16 sps:$4 sm:$0xff]   ;;  %s8898_s19 = smov [#allocation14]  }
  0x4c   :  { %363 = vmatpush1.bf16.msra.mxu0 %v7921_v14  ;;  %v148_v40 = vpack.c.bf16 %v101_v37, %v101_v37  ;;  %v7955_v42 = vld [vmem:[#allocation10 + $0xe0] ss:$16 sps:$4 sm:$0xff]   ;;  %v7958_v43 = vld [vmem:[#allocation10 + $0xe8] ss:$16 sps:$4 sm:$0xff]   ;;  %v7963_v44 = vld [vmem:[#allocation10 + $0xc4] ss:$16 sps:$4 sm:$0xff]  }
  0x4d   :  { %364 = vmatprep.subr.bf16.mxu0 %v7925_v15  ;;  %404 = vmatpush1.bf16.msra.mxu1 %v7924_v16  ;;  %v7961_v45 = vld [vmem:[#allocation10 + $0xc0] ss:$16 sps:$4 sm:$0xff]   ;;  %v7966_v46 = vld [vmem:[#allocation10 + $0xcc] ss:$16 sps:$4 sm:$0xff]   ;;  %v7969_v47 = vld [vmem:[#allocation10 + $0xa4] ss:$16 sps:$4 sm:$0xff]  }
  0x4e   :  { %405 = vmatprep.subr.bf16.mxu1 %v7928_v17  ;;  %v7964_v48 = vld [vmem:[#allocation10 + $0xc8] ss:$16 sps:$4 sm:$0xff]   ;;  %v7972_v49 = vld [vmem:[#allocation10 + $0xac] ss:$16 sps:$4 sm:$0xff]   ;;  %v7967_v50 = vld [vmem:[#allocation10 + $0xa0] ss:$16 sps:$4 sm:$0xff]  }
  0x4f   :  { %v7975_v51 = vld [vmem:[#allocation10 + $0x84] ss:$16 sps:$4 sm:$0xff]   ;;  %v7970_v52 = vld [vmem:[#allocation10 + $0xa8] ss:$16 sps:$4 sm:$0xff]   ;;  %v7978_v53 = vld [vmem:[#allocation10 + $0x8c] ss:$16 sps:$4 sm:$0xff]  }
  0x50   :  { %365 = vmatpush1.bf16.msra.mxu0 %v7927_v18  ;;  %v7973_v54 = vld [vmem:[#allocation10 + $0x80] ss:$16 sps:$4 sm:$0xff]   ;;  %v7981_v55 = vld [vmem:[#allocation10 + $0x64] ss:$16 sps:$4 sm:$0xff]   ;;  %v7976_v56 = vld [vmem:[#allocation10 + $0x88] ss:$16 sps:$4 sm:$0xff]  }
  0x51   :  { %366 = vmatprep.subr.bf16.mxu0 %v7931_v19  ;;  %406 = vmatpush1.bf16.msra.mxu1 %v7930_v20  ;;  %v7984_v57 = vld [vmem:[#allocation10 + $0x6c] ss:$16 sps:$4 sm:$0xff]   ;;  %v7979_v58 = vld [vmem:[#allocation10 + $0x60] ss:$16 sps:$4 sm:$0xff]   ;;  %v7982_v59 = vld [vmem:[#allocation10 + $0x68] ss:$16 sps:$4 sm:$0xff]  }
  0x52   :  { %407 = vmatprep.subr.bf16.mxu1 %v7934_v21  ;;  %v8976_v60 = vld [vmem:[#allocation10 + $0x44] ss:$16 sps:$4 sm:$0xff]   ;;  %v8978_v61 = vld [vmem:[#allocation10 + $0x4c] ss:$16 sps:$4 sm:$0xff]   ;;  %v8980_v62 = vld [vmem:[#allocation10 + $0x40] ss:$16 sps:$4 sm:$0xff]  }
  0x53   :  { %v8982_v63 = vld [vmem:[#allocation10 + $0x48] ss:$16 sps:$4 sm:$0xff]   ;;  %v8988_v0 = vld [vmem:[#allocation10 + $0x24] ss:$16 sps:$4 sm:$0xff]   ;;  %v8990_v1 = vld [vmem:[#allocation10 + $0x2c] ss:$16 sps:$4 sm:$0xff]  }
  0x54   :  { %367 = vmatpush1.bf16.msra.mxu0 %v7933_v22  ;;  %v8992_v2 = vld [vmem:[#allocation10 + $0x20] ss:$16 sps:$4 sm:$0xff]   ;;  %v8994_v3 = vld [vmem:[#allocation10 + $0x28] ss:$16 sps:$4 sm:$0xff]   ;;  %v9000_v4 = vld [vmem:[#allocation10 + $0x4] ss:$16 sps:$4 sm:$0xff]  }
  0x55   :  { %368 = vmatprep.subr.bf16.mxu0 %v7937_v23  ;;  %408 = vmatpush1.bf16.msra.mxu1 %v7936_v24  ;;  %v9002_v5 = vld [vmem:[#allocation10 + $0xc] ss:$16 sps:$4 sm:$0xff]   ;;  %v9004_v6 = vld [vmem:[#allocation10] ss:$16 sps:$4 sm:$0xff]   ;;  %v9006_v7 = vld [vmem:[#allocation10 + $0x8] ss:$16 sps:$4 sm:$0xff]  }
  0x56   :  { %409 = vmatprep.subr.bf16.mxu1 %v7940_v25  ;;  %v9012_v8 = vld [vmem:[#allocation10 + $0x1e4] ss:$16 sps:$4 sm:$0xff]   ;;  %v9014_v9 = vld [vmem:[#allocation10 + $0x1ec] ss:$16 sps:$4 sm:$0xff]   ;;  %v9016_v10 = vld [vmem:[#allocation10 + $0x1e0] ss:$16 sps:$4 sm:$0xff]  }
  0x57   :  { %v9018_v11 = vld [vmem:[#allocation10 + $0x1e8] ss:$16 sps:$4 sm:$0xff]   ;;  %v9024_v12 = vld [vmem:[#allocation10 + $0x1c4] ss:$16 sps:$4 sm:$0xff]   ;;  %v9026_v13 = vld [vmem:[#allocation10 + $0x1cc] ss:$16 sps:$4 sm:$0xff]  }
  0x58   :  { %369 = vmatpush1.bf16.msra.mxu0 %v7939_v26  ;;  %v9028_v14 = vld [vmem:[#allocation10 + $0x1c0] ss:$16 sps:$4 sm:$0xff]   ;;  %v9030_v15 = vld [vmem:[#allocation10 + $0x1c8] ss:$16 sps:$4 sm:$0xff]   ;;  %v9036_v16 = vld [vmem:[#allocation10 + $0x1a4] ss:$16 sps:$4 sm:$0xff]  }
  0x59   :  { %370 = vmatprep.subr.bf16.mxu0 %v7943_v28  ;;  %410 = vmatpush1.bf16.msra.mxu1 %v7942_v30  ;;  %v9038_v17 = vld [vmem:[#allocation10 + $0x1ac] ss:$16 sps:$4 sm:$0xff]   ;;  %v9040_v18 = vld [vmem:[#allocation10 + $0x1a0] ss:$16 sps:$4 sm:$0xff]   ;;  %v9042_v19 = vld [vmem:[#allocation10 + $0x1a8] ss:$16 sps:$4 sm:$0xff]  }
  0x5a   :  { %411 = vmatprep.subr.bf16.mxu1 %v7946_v31  ;;  %v9048_v20 = vld [vmem:[#allocation10 + $0x184] ss:$16 sps:$4 sm:$0xff]   ;;  %v9050_v21 = vld [vmem:[#allocation10 + $0x18c] ss:$16 sps:$4 sm:$0xff]   ;;  %v9052_v22 = vld [vmem:[#allocation10 + $0x180] ss:$16 sps:$4 sm:$0xff]  }
  0x5b   :  { %v9054_v23 = vld [vmem:[#allocation10 + $0x188] ss:$16 sps:$4 sm:$0xff]   ;;  %v9060_v24 = vld [vmem:[#allocation10 + $0x160] ss:$16 sps:$4 sm:$0xff]   ;;  %v9062_v25 = vld [vmem:[#allocation10 + $0x164] ss:$16 sps:$4 sm:$0xff]  }
  0x5c   :  { %371 = vmatpush1.bf16.msra.mxu0 %v7945_v32  ;;  %v9064_v26 = vld [vmem:[#allocation10 + $0x168] ss:$16 sps:$4 sm:$0xff]   ;;  %v9066_v27 = vld [vmem:[#allocation10 + $0x16c] ss:$16 sps:$4 sm:$0xff]   ;;  %v9068_v28 = vld [vmem:[#allocation10 + $0x144] ss:$16 sps:$4 sm:$0xff]  }
  0x5d   :  { %386 = vmatprep.subr.bf16.mxu0 %v7949_v33  ;;  %412 = vmatpush1.bf16.msra.mxu1 %v7948_v34  ;;  %v9071_v29 = vld [vmem:[#allocation10 + $0x14c] ss:$16 sps:$4 sm:$0xff]   ;;  %v9075_v30 = vld [vmem:[#allocation10 + $0x140] ss:$16 sps:$4 sm:$0xff]   ;;  %v9079_v31 = vld [vmem:[#allocation10 + $0x148] ss:$16 sps:$4 sm:$0xff]  }
  0x5e   :  { %427 = vmatprep.subr.bf16.mxu1 %v7952_v36  ;;  %v9081_v32 = vld [vmem:[#allocation10 + $0x124] ss:$16 sps:$4 sm:$0xff]   ;;  %v9084_v33 = vld [vmem:[#allocation10 + $0x120] ss:$16 sps:$4 sm:$0xff]   ;;  %v9086_v34 = vld [vmem:[#allocation10 + $0x12c] ss:$16 sps:$4 sm:$0xff]  }
  0x5f   :  { %v9090_v36 = vld [vmem:[#allocation10 + $0x104] ss:$16 sps:$4 sm:$0xff]   ;;  %v9093_v37 = vld [vmem:[#allocation10 + $0x10c] ss:$16 sps:$4 sm:$0xff]   ;;  %s7044_s20 = sshll.u32 %s8898_s19, 4  ;;  %s7045_s20 = int_to_ptr.vmem [resolvable:$true] %s7044_s20 }
  0x60   :  { %387 = vmatpush2.bf16.msra.mxu0 %v7951_v35  ;;  %v9088_v35 = vld [vmem:[#allocation10 + $0x128] ss:$16 sps:$4 sm:$0xff]  }
  0x61   :  { %871 = vmatprep.subr.bf16.mxu0 %v7957_v38  ;;  %428 = vmatpush2.bf16.msra.mxu1 %v7954_v39  ;;  %v9098_v38 = vld [vmem:[#allocation10 + $0x100] ss:$16 sps:$4 sm:$0xff]   ;;  %v9100_v39 = vld [vmem:[#allocation10 + $0x108] ss:$16 sps:$4 sm:$0xff]  }
  0x62   :  { %912 = vmatprep.subr.bf16.mxu1 %v7960_v41  ;;  %10790 = vst [vmem:[#allocation20_spill] sm:$0xff] %v9098_v38  ;;  %10791 = vst [vmem:[#allocation21_spill] sm:$0xff] %v9100_v39  ;;  %v8662_v41 = vld [vmem:[#allocation8 + $0xec] ss:$16 sps:$4 sm:$0xff]  }
  0x63   :  { %389 = vmatmul.mubr.bf16.vlgmr.msra.gmra.mxu0 %v148_v40 }
  0x64   :  { %872 = vmatpush1.bf16.msra.mxu0 %v7955_v42  ;;  %430 = vmatmul.mubr.bf16.vlgmr.msra.gmra.mxu1 %v148_v40  ;;  %v8661_v40 = vld [vmem:[#allocation8 + $0xe4] ss:$16 sps:$4 sm:$0xff]   ;;  %v152_v42 = vlaneseq }
  0x65   :  { %873 = vmatprep.subr.bf16.mxu0 %v7963_v44  ;;  %913 = vmatpush1.bf16.msra.mxu1 %v7958_v43 }
  0x66   :  { %914 = vmatprep.subr.bf16.mxu1 %v7966_v46  ;;  %v153_v43 = vshrl.u32 %v152_v42, 7 }
  0x68   :  { %874 = vmatpush1.bf16.msra.mxu0 %v7961_v45  ;;  %v9108_v44 = vsub.s32 0, %v153_v43  ;;  %v150_v45 = vld [vmem:[%s10589_s5] sm:$0xf]  ;;  %v9113_v46 = vsub.s32 1, %v153_v43 }
  0x69   :  { %875 = vmatprep.subr.bf16.mxu0 %v7969_v47  ;;  %915 = vmatpush1.bf16.msra.mxu1 %v7964_v48  ;;  %v9116_v48 = vsub.s32 2, %v153_v43 }
  0x6a   :  { %916 = vmatprep.subr.bf16.mxu1 %v7972_v49  ;;  %10792 = vst [vmem:[#allocation22_spill] sm:$0xff] %v9108_v44  ;;  %10793 = vst [vmem:[#allocation23_spill] sm:$0xff] %v9113_v46  ;;  %v155_v47 = vrot.slane %v150_v45, %v9108_v44  ;;  %v159_v49 = vrot.slane %v150_v45, %v9113_v46 }
  0x6b   :  { %10794 = vst [vmem:[#allocation24_spill] sm:$0xff] %v9116_v48 }
  0x6c   :  { %876 = vmatpush1.bf16.msra.mxu0 %v7967_v50 }
  0x6d   :  { %877 = vmatprep.subr.bf16.mxu0 %v7975_v51  ;;  %917 = vmatpush1.bf16.msra.mxu1 %v7970_v52  ;;  %v163_v52 = vrot.slane %v150_v45, %v9116_v48 }
  0x6e   :  { %918 = vmatprep.subr.bf16.mxu1 %v7978_v53 }
  0x70   :  { %878 = vmatpush1.bf16.msra.mxu0 %v7973_v54 }
  0x71   :  { %879 = vmatprep.subr.bf16.mxu0 %v7981_v55  ;;  %919 = vmatpush1.bf16.msra.mxu1 %v7976_v56 }
  0x72   :  { %920 = vmatprep.subr.bf16.mxu1 %v7984_v57 }
  0x74   :  { %880 = vmatpush1.bf16.msra.mxu0 %v7979_v58 }
  0x75   :  { %921 = vmatpush1.bf16.msra.mxu1 %v7982_v59  ;;  %881 = vmatprep.subr.bf16.mxu0 %v8976_v60 }
  0x76   :  { %922 = vmatprep.subr.bf16.mxu1 %v8978_v61 }
  0x78   :  { %882 = vmatpush1.bf16.msra.mxu0 %v8980_v62 }
  0x79   :  { %923 = vmatpush1.bf16.msra.mxu1 %v8982_v63  ;;  %883 = vmatprep.subr.bf16.mxu0 %v8988_v0 }
  0x7a   :  { %924 = vmatprep.subr.bf16.mxu1 %v8990_v1 }
  0x7c   :  { %884 = vmatpush1.bf16.msra.mxu0 %v8992_v2 }
  0x7d   :  { %925 = vmatpush1.bf16.msra.mxu1 %v8994_v3  ;;  %885 = vmatprep.subr.bf16.mxu0 %v9000_v4 }
  0x7e   :  { %926 = vmatprep.subr.bf16.mxu1 %v9002_v5 }
  0x80   :  { %886 = vmatpush1.bf16.msra.mxu0 %v9004_v6 }
  0x81   :  { %927 = vmatpush1.bf16.msra.mxu1 %v9006_v7  ;;  %887 = vmatprep.subr.bf16.mxu0 %v9012_v8 }
  0x82   :  { %928 = vmatprep.subr.bf16.mxu1 %v9014_v9 }
  0x84   :  { %888 = vmatpush2.bf16.msra.mxu0 %v9016_v10 }
  0x85   :  { %929 = vmatpush2.bf16.msra.mxu1 %v9018_v11  ;;  %889 = vmatprep.subr.bf16.mxu0 %v9024_v12 }
  0x86   :  { %930 = vmatprep.subr.bf16.mxu1 %v9026_v13 }
  0x88   :  { %890 = vmatpush2.bf16.msra.mxu0 %v9028_v14 }
  0x89   :  { %931 = vmatpush2.bf16.msra.mxu1 %v9030_v15  ;;  %891 = vmatprep.subr.bf16.mxu0 %v9036_v16 }
  0x8a   :  { %932 = vmatprep.subr.bf16.mxu1 %v9038_v17 }
  0x8c   :  { %892 = vmatpush2.bf16.msra.mxu0 %v9040_v18 }
  0x8d   :  { %933 = vmatpush2.bf16.msra.mxu1 %v9042_v19  ;;  %893 = vmatprep.subr.bf16.mxu0 %v9048_v20 }
  0x8e   :  { %934 = vmatprep.subr.bf16.mxu1 %v9050_v21 }
  0x90   :  { %894 = vmatpush2.bf16.msra.mxu0 %v9052_v22 }
  0x91   :  { %935 = vmatpush2.bf16.msra.mxu1 %v9054_v23  ;;  %895 = vmatprep.subr.bf16.mxu0 %v9062_v25 }
  0x92   :  { %936 = vmatprep.subr.bf16.mxu1 %v9066_v27 }
  0x94   :  { %896 = vmatpush2.bf16.msra.mxu0 %v9060_v24 }
  0x95   :  { %937 = vmatpush2.bf16.msra.mxu1 %v9064_v26  ;;  %897 = vmatprep.subr.bf16.mxu0 %v9068_v28 }
  0x96   :  { %938 = vmatprep.subr.bf16.mxu1 %v9071_v29 }
  0x98   :  { %898 = vmatpush2.bf16.msra.mxu0 %v9075_v30 }
  0x99   :  { %939 = vmatpush2.bf16.msra.mxu1 %v9079_v31  ;;  %899 = vmatprep.subr.bf16.mxu0 %v9081_v32 }
  0x9a   :  { %940 = vmatprep.subr.bf16.mxu1 %v9086_v34 }
  0x9c   :  { %900 = vmatpush2.bf16.msra.mxu0 %v9084_v33 }
  0x9d   :  { %941 = vmatpush2.bf16.msra.mxu1 %v9088_v35  ;;  %901 = vmatprep.subr.bf16.mxu0 %v9090_v36 }
  0x9e   :  { %942 = vmatprep.subr.bf16.mxu1 %v9093_v37 }
  0xa0   :  { %902 = vmatpush2.bf16.msra.mxu0 %v9098_v38 }
  0xa1   :  { %943 = vmatpush2.bf16.msra.mxu1 %v9100_v39  ;;  %1221 = vmatprep.subr.bf16.mxu0 %v8661_v40 }
  0xa2   :  { %1262 = vmatprep.subr.bf16.mxu1 %v8662_v41  ;;  %v9120_v41 = vsub.s32 3, %v153_v43 }
 0x123   :  { %v390_v50 = vpop.f32.mrf.mxu0 }
 0x124   :  { %v391_v51 = vadd.f32 %v390_v50, %v155_v47  ;;  %v431_v54 = vpop.f32.mrf.mxu1  ;;  %v167_v47 = vrot.slane %v150_v45, %v9120_v41 }
 0x125   :  { %v392_v53 = vpop.f32.mrf.mxu0  ;;  %v432_v40 = vadd.f32 %v431_v54, %v163_v52 }
 0x126   :  { %v443_v55 = vmul.f32 0.5, %v391_v51  ;;  %v393_v56 = vadd.f32 %v392_v53, %v159_v49  ;;  %v433_v58 = vpop.f32.mrf.mxu1 }
 0x127   :  { %v394_v57 = vpop.f32.mrf.mxu0  ;;  %v434_v50 = vadd.f32 %v433_v58, %v167_v47  ;;  %v102_v58 = vld [vmem:[#allocation5 + $0x8] sm:$0xff]  ;;  %v8663_v47 = vld [vmem:[#allocation8 + $0xe0] ss:$16 sps:$4 sm:$0xff]  }
 0x128   :  { %8501 = vtanh.f32 %v443_v55  ;;  %v438_v59 = vmul.f32 0.5, %v393_v56  ;;  %v435_v44 = vpop.f32.mrf.mxu1  ;;  %v105_v56 = vld [vmem:[#allocation7] sm:$0xff] }
 0x129   :  { %v395_v42 = vpop.f32.mrf.mxu0  ;;  %v450_v48 = vmul.f32 0.5, %v434_v50  ;;  %v8664_v50 = vld [vmem:[#allocation8 + $0xe8] ss:$16 sps:$4 sm:$0xff]  }
 0x12a   :  { %8503 = vtanh.f32 %v438_v59  ;;  %v436_v39 = vpop.f32.mrf.mxu1  ;;  %v975_v42 = vld [vmem:[#allocation2 + $0x8] sm:$0xff] }
 0x12b   :  { %8505 = vtanh.f32 %v432_v40 }
 0x12c   :  { %8507 = vtanh.f32 %v450_v48  ;;  %v1015_v48 = vpack.c.bf16 %v975_v42, %v975_v42  ;;  %v8680_v42 = vld [vmem:[#allocation8 + $0x68] ss:$16 sps:$4 sm:$0xff]  }
 0x135   :  { %v8502_v46 = vpop.eup %8501 }
 0x136   :  { %v445_v38 = vmul.f32 0.5, %v8502_v46  ;;  %v526_v46 = vpack.c.bf16 %v102_v58, %v102_v58  ;;  %v8676_v58 = vld [vmem:[#allocation8 + $0x88] ss:$16 sps:$4 sm:$0xff]  }
 0x137   :  { %v8504_v51 = vpop.eup %8503 }
 0x138   :  { %v446_v49 = vadd.f32 0.5, %v445_v38  ;;  %v440_v53 = vmul.f32 0.5, %v8504_v51  ;;  %v8506_v55 = vpop.eup %8505  ;;  %v8665_v51 = vld [vmem:[#allocation8 + $0xc4] ss:$16 sps:$4 sm:$0xff]  }
 0x139   :  { %v8508_v39 = vpop.eup %8507 }
 0x13a   :  { %v441_v52 = vadd.f32 0.5, %v440_v53  ;;  %v448_v54 = vmul.f32 %v8506_v55, %v446_v49  ;;  %v452_v44 = vmul.f32 0.5, %v8508_v39  ;;  %v8666_v49 = vld [vmem:[#allocation8 + $0xcc] ss:$16 sps:$4 sm:$0xff]   ;;  %v8667_v53 = vld [vmem:[#allocation8 + $0xc0] ss:$16 sps:$4 sm:$0xff]  }
 0x13b   :  { %v8668_v55 = vld [vmem:[#allocation8 + $0xc8] ss:$16 sps:$4 sm:$0xff]   ;;  %v8673_v39 = vld [vmem:[#allocation8 + $0x84] ss:$16 sps:$4 sm:$0xff]  }
 0x13c   :  { %v442_v43 = vmul.f32 %v441_v52, %v105_v56  ;;  %v453_v45 = vadd.f32 0.5, %v452_v44  ;;  %v8669_v56 = vld [vmem:[#allocation8 + $0xa4] ss:$16 sps:$4 sm:$0xff]   ;;  %v8670_v52 = vld [vmem:[#allocation8 + $0xac] ss:$16 sps:$4 sm:$0xff]  }
 0x13d   :  { %v8674_v44 = vld [vmem:[#allocation8 + $0x8c] ss:$16 sps:$4 sm:$0xff]  }
 0x13e   :  { %v9123_v57 = vadd.f32 %v448_v54, %v442_v43  ;;  %v8671_v43 = vld [vmem:[#allocation8 + $0xa0] ss:$16 sps:$4 sm:$0xff]   ;;  %v8672_v54 = vld [vmem:[#allocation8 + $0xa8] ss:$16 sps:$4 sm:$0xff]  }
 0x140   :  { %8509 = vtanh.f32 %v9123_v57 }
 0x14d   :  { %v8510_v59 = vpop.eup %8509 }
 0x14e   :  { %v455_v40 = vmul.f32 %v8510_v59, %v453_v45  ;;  %v8675_v45 = vld [vmem:[#allocation8 + $0x80] ss:$16 sps:$4 sm:$0xff]   ;;  %v8677_v59 = vld [vmem:[#allocation8 + $0x64] ss:$16 sps:$4 sm:$0xff]  }
 0x150   :  { %v9126_v38 = vpack.c.bf16 %v455_v40, %v455_v40  ;;  %v8678_v40 = vld [vmem:[#allocation8 + $0x6c] ss:$16 sps:$4 sm:$0xff]  }
 0x152   :  { %903 = vmatprep.mubr.bf16.mxu0 %v9126_v38  ;;  %944 = vmatprep.mubr.bf16.mxu1 %v9126_v38 }
 0x153   :  { %904 = vmatmul.mubr.bf16.vlgmr.msra.gmra.mxu0 %v526_v46  ;;  %945 = vmatmul.mubr.bf16.vlgmr.msra.gmra.mxu1 %v526_v46  ;;  %v8679_v46 = vld [vmem:[#allocation8 + $0x60] ss:$16 sps:$4 sm:$0xff]  }
 0x154   :  { %1222 = vmatpush1.bf16.msra.mxu0 %v8663_v47  ;;  %1263 = vmatpush1.bf16.msra.mxu1 %v8664_v50  ;;  %v8682_v47 = vld [vmem:[#allocation8 + $0x4c] ss:$16 sps:$4 sm:$0xff]   ;;  %v8683_v50 = vld [vmem:[#allocation8 + $0x40] ss:$16 sps:$4 sm:$0xff]  }
 0x155   :  { %1223 = vmatprep.subr.bf16.mxu0 %v8665_v51  ;;  %1264 = vmatprep.subr.bf16.mxu1 %v8666_v49  ;;  %v8684_v51 = vld [vmem:[#allocation8 + $0x48] ss:$16 sps:$4 sm:$0xff]   ;;  %v8685_v49 = vld [vmem:[#allocation8 + $0x24] ss:$16 sps:$4 sm:$0xff]  }
 0x156   :  { %7204 = vmatprep.mubr.msk.bf16.mxu0 %vm352_vm0, %v1015_v48  ;;  %7205 = vmatprep.mubr.msk.bf16.mxu1 %vm352_vm0, %v1015_v48  ;;  %v8681_v48 = vld [vmem:[#allocation8 + $0x44] ss:$16 sps:$4 sm:$0xff]  }
 0x158   :  { %1224 = vmatpush1.bf16.msra.mxu0 %v8667_v53  ;;  %1265 = vmatpush1.bf16.msra.mxu1 %v8668_v55  ;;  %v8686_v53 = vld [vmem:[#allocation8 + $0x2c] ss:$16 sps:$4 sm:$0xff]   ;;  %v8687_v55 = vld [vmem:[#allocation8 + $0x20] ss:$16 sps:$4 sm:$0xff]  }
 0x159   :  { %1225 = vmatprep.subr.bf16.mxu0 %v8669_v56  ;;  %1266 = vmatprep.subr.bf16.mxu1 %v8670_v52  ;;  %v8688_v56 = vld [vmem:[#allocation8 + $0x28] ss:$16 sps:$4 sm:$0xff]   ;;  %v8689_v52 = vld [vmem:[#allocation8 + $0x4] ss:$16 sps:$4 sm:$0xff]  }
 0x15c   :  { %1226 = vmatpush1.bf16.msra.mxu0 %v8671_v43  ;;  %1267 = vmatpush1.bf16.msra.mxu1 %v8672_v54  ;;  %v8690_v43 = vld [vmem:[#allocation8 + $0xc] ss:$16 sps:$4 sm:$0xff]   ;;  %v8691_v54 = vld [vmem:[#allocation8] ss:$16 sps:$4 sm:$0xff]  }
 0x15d   :  { %1227 = vmatprep.subr.bf16.mxu0 %v8673_v39  ;;  %1268 = vmatprep.subr.bf16.mxu1 %v8674_v44  ;;  %v8692_v39 = vld [vmem:[#allocation8 + $0x8] ss:$16 sps:$4 sm:$0xff]   ;;  %v8693_v44 = vld [vmem:[#allocation8 + $0x104] ss:$16 sps:$4 sm:$0xff]  }
 0x160   :  { %1228 = vmatpush1.bf16.msra.mxu0 %v8675_v45  ;;  %1269 = vmatpush1.bf16.msra.mxu1 %v8676_v58  ;;  %v8694_v45 = vld [vmem:[#allocation8 + $0x10c] ss:$16 sps:$4 sm:$0xff]   ;;  %v8695_v58 = vld [vmem:[#allocation8 + $0x100] ss:$16 sps:$4 sm:$0xff]  }
 0x161   :  { %1229 = vmatprep.subr.bf16.mxu0 %v8677_v59  ;;  %1270 = vmatprep.subr.bf16.mxu1 %v8678_v40  ;;  %v8696_v59 = vld [vmem:[#allocation8 + $0x108] ss:$16 sps:$4 sm:$0xff]   ;;  %v8697_v40 = vld [vmem:[#allocation10 + $0xe4] ss:$16 sps:$4 sm:$0xff]  }
 0x164   :  { %1230 = vmatpush1.bf16.msra.mxu0 %v8679_v46  ;;  %1271 = vmatpush1.bf16.msra.mxu1 %v8680_v42  ;;  %v8698_v46 = vld [vmem:[#allocation10 + $0xec] ss:$16 sps:$4 sm:$0xff]   ;;  %v8699_v42 = vld [vmem:[#allocation10 + $0xe0] ss:$16 sps:$4 sm:$0xff]  }
 0x165   :  { %1231 = vmatprep.subr.bf16.mxu0 %v8681_v48  ;;  %1272 = vmatprep.subr.bf16.mxu1 %v8682_v47  ;;  %v8700_v48 = vld [vmem:[#allocation10 + $0xe8] ss:$16 sps:$4 sm:$0xff]   ;;  %v8701_v47 = vld [vmem:[#allocation10 + $0xc4] ss:$16 sps:$4 sm:$0xff]  }
 0x168   :  { %1232 = vmatpush1.bf16.msra.mxu0 %v8683_v50  ;;  %1273 = vmatpush1.bf16.msra.mxu1 %v8684_v51  ;;  %v8702_v50 = vld [vmem:[#allocation10 + $0xcc] ss:$16 sps:$4 sm:$0xff]   ;;  %v8703_v51 = vld [vmem:[#allocation10 + $0xc0] ss:$16 sps:$4 sm:$0xff]  }
 0x169   :  { %1233 = vmatprep.subr.bf16.mxu0 %v8685_v49  ;;  %1274 = vmatprep.subr.bf16.mxu1 %v8686_v53  ;;  %v8704_v49 = vld [vmem:[#allocation10 + $0xc8] ss:$16 sps:$4 sm:$0xff]   ;;  %v8705_v53 = vld [vmem:[#allocation10 + $0xa4] ss:$16 sps:$4 sm:$0xff]  }
 0x16c   :  { %1234 = vmatpush1.bf16.msra.mxu0 %v8687_v55  ;;  %1275 = vmatpush1.bf16.msra.mxu1 %v8688_v56  ;;  %v8706_v55 = vld [vmem:[#allocation10 + $0xac] ss:$16 sps:$4 sm:$0xff]   ;;  %v8707_v56 = vld [vmem:[#allocation10 + $0xa0] ss:$16 sps:$4 sm:$0xff]  }
 0x16d   :  { %1235 = vmatprep.subr.bf16.mxu0 %v8689_v52  ;;  %1276 = vmatprep.subr.bf16.mxu1 %v8690_v43  ;;  %v8708_v52 = vld [vmem:[#allocation10 + $0xa8] ss:$16 sps:$4 sm:$0xff]   ;;  %v8710_v43 = vld [vmem:[#allocation10 + $0x8c] ss:$16 sps:$4 sm:$0xff]  }
 0x170   :  { %1236 = vmatpush1.bf16.msra.mxu0 %v8691_v54  ;;  %1277 = vmatpush1.bf16.msra.mxu1 %v8692_v39  ;;  %v8711_v54 = vld [vmem:[#allocation10 + $0x80] ss:$16 sps:$4 sm:$0xff]   ;;  %v8712_v39 = vld [vmem:[#allocation10 + $0x88] ss:$16 sps:$4 sm:$0xff]  }
 0x171   :  { %1251 = vmatprep.subr.bf16.mxu0 %v8693_v44  ;;  %1292 = vmatprep.subr.bf16.mxu1 %v8694_v45  ;;  %v8713_v44 = vld [vmem:[#allocation10 + $0x64] ss:$16 sps:$4 sm:$0xff]   ;;  %v8714_v45 = vld [vmem:[#allocation10 + $0x6c] ss:$16 sps:$4 sm:$0xff]  }
 0x174   :  { %1252 = vmatpush2.bf16.msra.mxu0 %v8695_v58  ;;  %1293 = vmatpush2.bf16.msra.mxu1 %v8696_v59  ;;  %v8715_v58 = vld [vmem:[#allocation10 + $0x60] ss:$16 sps:$4 sm:$0xff]   ;;  %v8716_v59 = vld [vmem:[#allocation10 + $0x68] ss:$16 sps:$4 sm:$0xff]  }
 0x175   :  { %1733 = vmatprep.subr.bf16.mxu0 %v8697_v40  ;;  %1774 = vmatprep.subr.bf16.mxu1 %v8698_v46 }
 0x177   :  { %1254 = vmatmul.mubr.bf16.vlgmr.msra.gmra.mxu0 %v9126_v38  ;;  %1295 = vmatmul.mubr.bf16.vlgmr.msra.gmra.mxu1 %v9126_v38  ;;  %v8709_v38 = vld [vmem:[#allocation10 + $0x84] ss:$16 sps:$4 sm:$0xff]  }
 0x178   :  { %1734 = vmatpush1.bf16.msra.mxu0 %v8699_v42  ;;  %1775 = vmatpush1.bf16.msra.mxu1 %v8700_v48 }
 0x179   :  { %1735 = vmatprep.subr.bf16.mxu0 %v8701_v47  ;;  %1776 = vmatprep.subr.bf16.mxu1 %v8702_v50 }
 0x17c   :  { %1736 = vmatpush1.bf16.msra.mxu0 %v8703_v51  ;;  %1777 = vmatpush1.bf16.msra.mxu1 %v8704_v49 }
 0x17d   :  { %1737 = vmatprep.subr.bf16.mxu0 %v8705_v53  ;;  %1778 = vmatprep.subr.bf16.mxu1 %v8706_v55 }
 0x180   :  { %1738 = vmatpush1.bf16.msra.mxu0 %v8707_v56  ;;  %1779 = vmatpush1.bf16.msra.mxu1 %v8708_v52 }
 0x181   :  { %1739 = vmatprep.subr.bf16.mxu0 %v8709_v38  ;;  %1780 = vmatprep.subr.bf16.mxu1 %v8710_v43 }
 0x184   :  { %1740 = vmatpush1.bf16.msra.mxu0 %v8711_v54  ;;  %1781 = vmatpush1.bf16.msra.mxu1 %v8712_v39 }
 0x185   :  { %1741 = vmatprep.subr.bf16.mxu0 %v8713_v44  ;;  %1782 = vmatprep.subr.bf16.mxu1 %v8714_v45 }
 0x188   :  { %1742 = vmatpush1.bf16.msra.mxu0 %v8715_v58  ;;  %1783 = vmatpush1.bf16.msra.mxu1 %v8716_v59 }
 0x189   :  { %1743 = vmatprep.subr.bf16.mxu0 %v8976_v60  ;;  %1784 = vmatprep.subr.bf16.mxu1 %v8978_v61  ;;  %v10795_v60 = vld [vmem:[#allocation20_spill] sm:$0xff]  ;;  %v10796_v61 = vld [vmem:[#allocation21_spill] sm:$0xff] }
 0x18c   :  { %1744 = vmatpush1.bf16.msra.mxu0 %v8980_v62  ;;  %1785 = vmatpush1.bf16.msra.mxu1 %v8982_v63  ;;  %v9178_v62 = vld [vmem:[#allocation8 + $0xe4] ss:$16 sps:$4 sm:$0xff]   ;;  %v9180_v63 = vld [vmem:[#allocation8 + $0xec] ss:$16 sps:$4 sm:$0xff]  }
 0x18d   :  { %1745 = vmatprep.subr.bf16.mxu0 %v8988_v0  ;;  %1786 = vmatprep.subr.bf16.mxu1 %v8990_v1  ;;  %v7103_v0 = vld [vmem:[%s10589_s5 + $0x4] sm:$0xf]  ;;  %v10797_v1 = vld [vmem:[#allocation22_spill] sm:$0xff] }
 0x190   :  { %1746 = vmatpush1.bf16.msra.mxu0 %v8992_v2  ;;  %1787 = vmatpush1.bf16.msra.mxu1 %v8994_v3  ;;  %v534_v2 = vrot.slane %v7103_v0, %v10797_v1  ;;  %v10798_v3 = vld [vmem:[#allocation23_spill] sm:$0xff] }
 0x191   :  { %1747 = vmatprep.subr.bf16.mxu0 %v9000_v4  ;;  %1788 = vmatprep.subr.bf16.mxu1 %v9002_v5  ;;  %v538_v4 = vrot.slane %v7103_v0, %v10798_v3 }
 0x194   :  { %1748 = vmatpush1.bf16.msra.mxu0 %v9004_v6  ;;  %1789 = vmatpush1.bf16.msra.mxu1 %v9006_v7 }
 0x195   :  { %1749 = vmatprep.subr.bf16.mxu0 %v9012_v8  ;;  %1790 = vmatprep.subr.bf16.mxu1 %v9014_v9  ;;  %v10799_v8 = vld [vmem:[#allocation24_spill] sm:$0xff] }
 0x196   :  { %v542_v9 = vrot.slane %v7103_v0, %v10799_v8 }
 0x198   :  { %1750 = vmatpush2.bf16.msra.mxu0 %v9016_v10  ;;  %1791 = vmatpush2.bf16.msra.mxu1 %v9018_v11 }
 0x199   :  { %1751 = vmatprep.subr.bf16.mxu0 %v9024_v12  ;;  %1792 = vmatprep.subr.bf16.mxu1 %v9026_v13 }
 0x19c   :  { %1752 = vmatpush2.bf16.msra.mxu0 %v9028_v14  ;;  %1793 = vmatpush2.bf16.msra.mxu1 %v9030_v15 }
 0x19d   :  { %1753 = vmatprep.subr.bf16.mxu0 %v9036_v16  ;;  %1794 = vmatprep.subr.bf16.mxu1 %v9038_v17 }
 0x1a0   :  { %1754 = vmatpush2.bf16.msra.mxu0 %v9040_v18  ;;  %1795 = vmatpush2.bf16.msra.mxu1 %v9042_v19 }
 0x1a1   :  { %1755 = vmatprep.subr.bf16.mxu0 %v9048_v20  ;;  %1796 = vmatprep.subr.bf16.mxu1 %v9050_v21  ;;  %v546_v20 = vrot.slane %v7103_v0, %v9120_v41 }
 0x1a4   :  { %1756 = vmatpush2.bf16.msra.mxu0 %v9052_v22  ;;  %1797 = vmatpush2.bf16.msra.mxu1 %v9054_v23 }
 0x1a5   :  { %1757 = vmatprep.subr.bf16.mxu0 %v9062_v25  ;;  %1798 = vmatprep.subr.bf16.mxu1 %v9066_v27 }
 0x1a8   :  { %1758 = vmatpush2.bf16.msra.mxu0 %v9060_v24  ;;  %1799 = vmatpush2.bf16.msra.mxu1 %v9064_v26 }
 0x1a9   :  { %1759 = vmatprep.subr.bf16.mxu0 %v9068_v28  ;;  %1800 = vmatprep.subr.bf16.mxu1 %v9071_v29  ;;  %v106_v29 = vld [vmem:[#allocation7 + $0x8] sm:$0xff] }
 0x1ac   :  { %1760 = vmatpush2.bf16.msra.mxu0 %v9075_v30  ;;  %1801 = vmatpush2.bf16.msra.mxu1 %v9079_v31 }
 0x1ad   :  { %1761 = vmatprep.subr.bf16.mxu0 %v9081_v32  ;;  %1802 = vmatprep.subr.bf16.mxu1 %v9086_v34  ;;  %v1016_v34 = vld [vmem:[%s10589_s5] sm:$0xf] }
 0x1ae   :  { %v1029_v49 = vrot.slane %v1016_v34, %v10799_v8  ;;  %v1033_v58 = vrot.slane %v1016_v34, %v9120_v41 }
 0x1b0   :  { %1762 = vmatpush2.bf16.msra.mxu0 %v9084_v33  ;;  %1803 = vmatpush2.bf16.msra.mxu1 %v9088_v35  ;;  %v1021_v35 = vrot.slane %v1016_v34, %v10797_v1 }
 0x1b1   :  { %1763 = vmatprep.subr.bf16.mxu0 %v9090_v36  ;;  %1804 = vmatprep.subr.bf16.mxu1 %v9093_v37  ;;  %v1025_v37 = vrot.slane %v1016_v34, %v10798_v3  ;;  %v9247_v34 = vld [vmem:[#allocation8 + $0x88] ss:$16 sps:$4 sm:$0xff]  }
 0x1b4   :  { %1764 = vmatpush2.bf16.msra.mxu0 %v10795_v60  ;;  %1805 = vmatpush2.bf16.msra.mxu1 %v10796_v61 }
 0x1b5   :  { %2084 = vmatprep.subr.bf16.mxu0 %v9178_v62  ;;  %2125 = vmatprep.subr.bf16.mxu1 %v9180_v63 }
 0x213   :  { %v905_v5 = vpop.f32.mrf.mxu0  ;;  %v946_v6 = vpop.f32.mrf.mxu1 }
 0x214   :  { %v906_v7 = vadd.f32 %v905_v5, %v534_v2  ;;  %v947_v17 = vadd.f32 %v946_v6, %v542_v9 }
 0x215   :  { %v907_v10 = vpop.f32.mrf.mxu0  ;;  %v948_v11 = vpop.f32.mrf.mxu1 }
 0x216   :  { %v958_v12 = vmul.f32 0.5, %v906_v7  ;;  %v908_v13 = vadd.f32 %v907_v10, %v538_v4  ;;  %v949_v21 = vadd.f32 %v948_v11, %v546_v20  ;;  %v9209_v20 = vld [vmem:[#allocation8 + $0xe8] ss:$16 sps:$4 sm:$0xff]  }
 0x217   :  { %v909_v14 = vpop.f32.mrf.mxu0  ;;  %v950_v15 = vpop.f32.mrf.mxu1 }
 0x218   :  { %8511 = vtanh.f32 %v958_v12  ;;  %v953_v16 = vmul.f32 0.5, %v908_v13  ;;  %v965_v22 = vmul.f32 0.5, %v949_v21 }
 0x219   :  { %v910_v18 = vpop.f32.mrf.mxu0  ;;  %v951_v19 = vpop.f32.mrf.mxu1 }
 0x21a   :  { %8513 = vtanh.f32 %v953_v16  ;;  %v9207_v19 = vld [vmem:[#allocation8 + $0xe0] ss:$16 sps:$4 sm:$0xff]  }
 0x21b   :  { %8515 = vtanh.f32 %v947_v17  ;;  %v1838_v17 = vld [vmem:[#allocation2 + $0x10] sm:$0xff] }
 0x21c   :  { %8517 = vtanh.f32 %v965_v22  ;;  %v9211_v22 = vld [vmem:[#allocation8 + $0xc4] ss:$16 sps:$4 sm:$0xff]  }
 0x225   :  { %v8512_v23 = vpop.eup %8511 }
 0x226   :  { %v960_v24 = vmul.f32 0.5, %v8512_v23  ;;  %v1878_v23 = vpack.c.bf16 %v1838_v17, %v1838_v17  ;;  %v9367_v17 = vld [vmem:[#allocation10 + $0x60] ss:$16 sps:$4 sm:$0xff]  }
 0x227   :  { %v8514_v25 = vpop.eup %8513  ;;  %10816 = vst [vmem:[#allocation36_spill] sm:$0xff] %v9367_v17 }
 0x228   :  { %v961_v26 = vadd.f32 0.5, %v960_v24  ;;  %v955_v27 = vmul.f32 0.5, %v8514_v25  ;;  %v8516_v28 = vpop.eup %8515  ;;  %v9219_v24 = vld [vmem:[#allocation8 + $0xc0] ss:$16 sps:$4 sm:$0xff]   ;;  %v9221_v25 = vld [vmem:[#allocation8 + $0xc8] ss:$16 sps:$4 sm:$0xff]  }
 0x229   :  { %v8518_v36 = vpop.eup %8517 }
 0x22a   :  { %v956_v30 = vadd.f32 0.5, %v955_v27  ;;  %v963_v32 = vmul.f32 %v8516_v28, %v961_v26  ;;  %v967_v42 = vmul.f32 0.5, %v8518_v36  ;;  %v9225_v26 = vld [vmem:[#allocation8 + $0xa4] ss:$16 sps:$4 sm:$0xff]   ;;  %v9227_v27 = vld [vmem:[#allocation8 + $0xac] ss:$16 sps:$4 sm:$0xff]  }
 0x22b   :  { %v9233_v28 = vld [vmem:[#allocation8 + $0xa0] ss:$16 sps:$4 sm:$0xff]   ;;  %v9253_v36 = vld [vmem:[#allocation8 + $0x6c] ss:$16 sps:$4 sm:$0xff]  }
 0x22c   :  { %v957_v31 = vmul.f32 %v956_v30, %v106_v29  ;;  %v968_v52 = vadd.f32 0.5, %v967_v42  ;;  %v9235_v29 = vld [vmem:[#allocation8 + $0xa8] ss:$16 sps:$4 sm:$0xff]   ;;  %v9239_v30 = vld [vmem:[#allocation8 + $0x84] ss:$16 sps:$4 sm:$0xff]  }
 0x22d   :  { %v9265_v42 = vld [vmem:[#allocation8 + $0x4c] ss:$16 sps:$4 sm:$0xff]  }
 0x22e   :  { %v9191_v33 = vadd.f32 %v963_v32, %v957_v31  ;;  %v9241_v31 = vld [vmem:[#allocation8 + $0x8c] ss:$16 sps:$4 sm:$0xff]   ;;  %v9245_v32 = vld [vmem:[#allocation8 + $0x80] ss:$16 sps:$4 sm:$0xff]  }
 0x230   :  { %8519 = vtanh.f32 %v9191_v33 }
 0x237   :  { %v1255_v40 = vpop.f32.mrf.mxu0  ;;  %v1296_v46 = vpop.f32.mrf.mxu1 }
 0x238   :  { %v1256_v48 = vadd.f32 %v1255_v40, %v1021_v35  ;;  %v1297_v45 = vadd.f32 %v1296_v46, %v1029_v49  ;;  %v9251_v35 = vld [vmem:[#allocation8 + $0x64] ss:$16 sps:$4 sm:$0xff]   ;;  %v9259_v40 = vld [vmem:[#allocation8 + $0x68] ss:$16 sps:$4 sm:$0xff]   ;;  %v9281_v49 = vld [vmem:[#allocation8 + $0x20] ss:$16 sps:$4 sm:$0xff]  }
 0x239   :  { %v1257_v47 = vpop.f32.mrf.mxu0  ;;  %v1298_v50 = vpop.f32.mrf.mxu1  ;;  %v9263_v46 = vld [vmem:[#allocation8 + $0x44] ss:$16 sps:$4 sm:$0xff]  }
 0x23a   :  { %v1308_v51 = vmul.f32 0.5, %v1256_v48  ;;  %v1258_v53 = vadd.f32 %v1257_v47, %v1025_v37  ;;  %v1299_v59 = vadd.f32 %v1298_v50, %v1033_v58  ;;  %v9257_v37 = vld [vmem:[#allocation8 + $0x60] ss:$16 sps:$4 sm:$0xff]   ;;  %v9271_v47 = vld [vmem:[#allocation8 + $0x48] ss:$16 sps:$4 sm:$0xff]  }
 0x23b   :  { %v1259_v55 = vpop.f32.mrf.mxu0  ;;  %v1300_v56 = vpop.f32.mrf.mxu1  ;;  %v9269_v48 = vld [vmem:[#allocation8 + $0x40] ss:$16 sps:$4 sm:$0xff]   ;;  %v9275_v50 = vld [vmem:[#allocation8 + $0x24] ss:$16 sps:$4 sm:$0xff]   ;;  %v9317_v58 = vld [vmem:[#allocation10 + $0xec] ss:$16 sps:$4 sm:$0xff]  }
 0x23c   :  { %8521 = vtanh.f32 %v1308_v51  ;;  %v1303_v38 = vmul.f32 0.5, %v1258_v53  ;;  %v1315_v60 = vmul.f32 0.5, %v1299_v59  ;;  %v9277_v51 = vld [vmem:[#allocation8 + $0x2c] ss:$16 sps:$4 sm:$0xff]   ;;  %v9283_v53 = vld [vmem:[#allocation8 + $0x28] ss:$16 sps:$4 sm:$0xff]  }
 0x23d   :  { %v8520_v43 = vpop.eup %8519  ;;  %v1260_v54 = vpop.f32.mrf.mxu0  ;;  %v9287_v55 = vld [vmem:[#allocation8 + $0x4] ss:$16 sps:$4 sm:$0xff]   ;;  %v9289_v56 = vld [vmem:[#allocation8 + $0xc] ss:$16 sps:$4 sm:$0xff]   ;;  %v9319_v59 = vld [vmem:[#allocation10 + $0xe0] ss:$16 sps:$4 sm:$0xff]  }
 0x23e   :  { %v1301_v39 = vpop.f32.mrf.mxu1  ;;  %v970_v44 = vmul.f32 %v8520_v43, %v968_v52  ;;  %8523 = vtanh.f32 %v1303_v38  ;;  %v9293_v52 = vld [vmem:[#allocation8] ss:$16 sps:$4 sm:$0xff]   ;;  %v9295_v38 = vld [vmem:[#allocation8 + $0x8] ss:$16 sps:$4 sm:$0xff]   ;;  %v9299_v43 = vld [vmem:[#allocation8 + $0x104] ss:$16 sps:$4 sm:$0xff]  }
 0x23f   :  { %8525 = vtanh.f32 %v1297_v45  ;;  %v9301_v54 = vld [vmem:[#allocation8 + $0x10c] ss:$16 sps:$4 sm:$0xff]   ;;  %v9305_v39 = vld [vmem:[#allocation8 + $0x100] ss:$16 sps:$4 sm:$0xff]   ;;  %v9315_v45 = vld [vmem:[#allocation10 + $0xe4] ss:$16 sps:$4 sm:$0xff]  }
 0x240   :  { %973 = vst [vmem:[#allocation11] sm:$0xff] %v970_v44  ;;  %8527 = vtanh.f32 %v1315_v60  ;;  %v1389_v21 = vpack.c.bf16 %v970_v44, %v970_v44  ;;  %v9307_v44 = vld [vmem:[#allocation8 + $0x108] ss:$16 sps:$4 sm:$0xff]   ;;  %10800 = vst [vmem:[#allocation20_spill] sm:$0xff] %v9319_v59 }
 0x241   :  { %v9321_v60 = vld [vmem:[#allocation10 + $0xe8] ss:$16 sps:$4 sm:$0xff]  }
 0x242   :  { %10801 = vst [vmem:[#allocation21_spill] sm:$0xff] %v9321_v60 }
 0x249   :  { %v8522_v61 = vpop.eup %8521 }
 0x24a   :  { %v1310_v0 = vmul.f32 0.5, %v8522_v61  ;;  %v9327_v61 = vld [vmem:[#allocation10 + $0xc4] ss:$16 sps:$4 sm:$0xff]  }
 0x24b   :  { %v8524_v2 = vpop.eup %8523  ;;  %10802 = vst [vmem:[#allocation22_spill] sm:$0xff] %v9327_v61 }
 0x24c   :  { %v1311_v4 = vadd.f32 0.5, %v1310_v0  ;;  %v1305_v5 = vmul.f32 0.5, %v8524_v2  ;;  %v8526_v7 = vpop.eup %8525  ;;  %v9329_v0 = vld [vmem:[#allocation10 + $0xcc] ss:$16 sps:$4 sm:$0xff]   ;;  %v9331_v2 = vld [vmem:[#allocation10 + $0xc0] ss:$16 sps:$4 sm:$0xff]  }
 0x24d   :  { %v8528_v12 = vpop.eup %8527  ;;  %10803 = vst [vmem:[#allocation23_spill] sm:$0xff] %v9329_v0  ;;  %10804 = vst [vmem:[#allocation24_spill] sm:$0xff] %v9331_v2 }
 0x24e   :  { %v1306_v6 = vadd.f32 0.5, %v1305_v5  ;;  %v1313_v10 = vmul.f32 %v8526_v7, %v1311_v4  ;;  %v1317_v13 = vmul.f32 0.5, %v8528_v12  ;;  %v9333_v4 = vld [vmem:[#allocation10 + $0xc8] ss:$16 sps:$4 sm:$0xff]   ;;  %v9339_v5 = vld [vmem:[#allocation10 + $0xa4] ss:$16 sps:$4 sm:$0xff]  }
 0x24f   :  { %10805 = vst [vmem:[#allocation25_spill] sm:$0xff] %v9333_v4  ;;  %10806 = vst [vmem:[#allocation26_spill] sm:$0xff] %v9339_v5  ;;  %v9343_v7 = vld [vmem:[#allocation10 + $0xa0] ss:$16 sps:$4 sm:$0xff]   ;;  %v9353_v12 = vld [vmem:[#allocation10 + $0x8c] ss:$16 sps:$4 sm:$0xff]  }
 0x250   :  { %v1307_v9 = vmul.f32 %v1306_v6, %v9123_v57  ;;  %v1318_v14 = vadd.f32 0.5, %v1317_v13  ;;  %v9213_v57 = vld [vmem:[#allocation8 + $0xcc] ss:$16 sps:$4 sm:$0xff]   ;;  %10808 = vst [vmem:[#allocation28_spill] sm:$0xff] %v9343_v7  ;;  %10811 = vst [vmem:[#allocation31_spill] sm:$0xff] %v9353_v12 }
 0x251   :  { %v9341_v6 = vld [vmem:[#allocation10 + $0xac] ss:$16 sps:$4 sm:$0xff]   ;;  %v9355_v13 = vld [vmem:[#allocation10 + $0x80] ss:$16 sps:$4 sm:$0xff]  }
 0x252   :  { %v9202_v11 = vadd.f32 %v1313_v10, %v1307_v9  ;;  %10807 = vst [vmem:[#allocation27_spill] sm:$0xff] %v9341_v6  ;;  %v9345_v9 = vld [vmem:[#allocation10 + $0xa8] ss:$16 sps:$4 sm:$0xff]   ;;  %v9351_v10 = vld [vmem:[#allocation10 + $0x84] ss:$16 sps:$4 sm:$0xff]   ;;  %10812 = vst [vmem:[#allocation32_spill] sm:$0xff] %v9355_v13 }
 0x253   :  { %10809 = vst [vmem:[#allocation29_spill] sm:$0xff] %v9345_v9  ;;  %10810 = vst [vmem:[#allocation30_spill] sm:$0xff] %v9351_v10 }
 0x254   :  { %8529 = vtanh.f32 %v9202_v11 }
 0x261   :  { %v8530_v15 = vpop.eup %8529 }
 0x262   :  { %v1320_v16 = vmul.f32 %v8530_v15, %v1318_v14  ;;  %v9357_v14 = vld [vmem:[#allocation10 + $0x88] ss:$16 sps:$4 sm:$0xff]   ;;  %v9363_v15 = vld [vmem:[#allocation10 + $0x64] ss:$16 sps:$4 sm:$0xff]  }
 0x263   :  { %10813 = vst [vmem:[#allocation33_spill] sm:$0xff] %v9357_v14  ;;  %10814 = vst [vmem:[#allocation34_spill] sm:$0xff] %v9363_v15 }
 0x264   :  { %v9205_v18 = vpack.c.bf16 %v1320_v16, %v1320_v16  ;;  %v9365_v16 = vld [vmem:[#allocation10 + $0x6c] ss:$16 sps:$4 sm:$0xff]  }
 0x265   :  { %10815 = vst [vmem:[#allocation35_spill] sm:$0xff] %v9365_v16 }
 0x266   :  { %1765 = vmatprep.mubr.bf16.mxu0 %v9205_v18  ;;  %1806 = vmatprep.mubr.bf16.mxu1 %v9205_v18 }
 0x267   :  { %1766 = vmatmul.mubr.bf16.vlgmr.msra.gmra.mxu0 %v1389_v21  ;;  %1807 = vmatmul.mubr.bf16.vlgmr.msra.gmra.mxu1 %v1389_v21  ;;  %v9375_v21 = vld [vmem:[#allocation10 + $0x44] ss:$16 sps:$4 sm:$0xff]  }
 0x268   :  { %2085 = vmatpush1.bf16.msra.mxu0 %v9207_v19  ;;  %2126 = vmatpush1.bf16.msra.mxu1 %v9209_v20  ;;  %10818 = vst [vmem:[#allocation38_spill] sm:$0xff] %v9375_v21 }
 0x269   :  { %2086 = vmatprep.subr.bf16.mxu0 %v9211_v22  ;;  %2127 = vmatprep.subr.bf16.mxu1 %v9213_v57 }
 0x26a   :  { %7307 = vmatprep.mubr.msk.bf16.mxu0 %vm352_vm0, %v1878_v23  ;;  %7308 = vmatprep.mubr.msk.bf16.mxu1 %vm352_vm0, %v1878_v23  ;;  %v9377_v23 = vld [vmem:[#allocation10 + $0x4c] ss:$16 sps:$4 sm:$0xff]  }
 0x26b   :  { %10819 = vst [vmem:[#allocation39_spill] sm:$0xff] %v9377_v23 }
 0x26c   :  { %2087 = vmatpush1.bf16.msra.mxu0 %v9219_v24  ;;  %2128 = vmatpush1.bf16.msra.mxu1 %v9221_v25 }
 0x26d   :  { %2088 = vmatprep.subr.bf16.mxu0 %v9225_v26  ;;  %2129 = vmatprep.subr.bf16.mxu1 %v9227_v27 }
 0x270   :  { %2089 = vmatpush1.bf16.msra.mxu0 %v9233_v28  ;;  %2130 = vmatpush1.bf16.msra.mxu1 %v9235_v29 }
 0x271   :  { %2090 = vmatprep.subr.bf16.mxu0 %v9239_v30  ;;  %2131 = vmatprep.subr.bf16.mxu1 %v9241_v31 }
 0x274   :  { %2091 = vmatpush1.bf16.msra.mxu0 %v9245_v32  ;;  %2132 = vmatpush1.bf16.msra.mxu1 %v9247_v34 }
 0x275   :  { %2092 = vmatprep.subr.bf16.mxu0 %v9251_v35  ;;  %2133 = vmatprep.subr.bf16.mxu1 %v9253_v36 }
 0x278   :  { %2093 = vmatpush1.bf16.msra.mxu0 %v9257_v37  ;;  %2134 = vmatpush1.bf16.msra.mxu1 %v9259_v40 }
 0x279   :  { %2094 = vmatprep.subr.bf16.mxu0 %v9263_v46  ;;  %2135 = vmatprep.subr.bf16.mxu1 %v9265_v42 }
 0x27c   :  { %2095 = vmatpush1.bf16.msra.mxu0 %v9269_v48  ;;  %2136 = vmatpush1.bf16.msra.mxu1 %v9271_v47 }
 0x27d   :  { %2096 = vmatprep.subr.bf16.mxu0 %v9275_v50  ;;  %2137 = vmatprep.subr.bf16.mxu1 %v9277_v51 }
 0x280   :  { %2097 = vmatpush1.bf16.msra.mxu0 %v9281_v49  ;;  %2138 = vmatpush1.bf16.msra.mxu1 %v9283_v53 }
 0x281   :  { %2098 = vmatprep.subr.bf16.mxu0 %v9287_v55  ;;  %2139 = vmatprep.subr.bf16.mxu1 %v9289_v56 }
 0x284   :  { %2099 = vmatpush1.bf16.msra.mxu0 %v9293_v52  ;;  %2140 = vmatpush1.bf16.msra.mxu1 %v9295_v38 }
 0x285   :  { %2114 = vmatprep.subr.bf16.mxu0 %v9299_v43  ;;  %2155 = vmatprep.subr.bf16.mxu1 %v9301_v54 }
 0x288   :  { %2115 = vmatpush2.bf16.msra.mxu0 %v9305_v39  ;;  %2156 = vmatpush2.bf16.msra.mxu1 %v9307_v44 }
 0x289   :  { %2596 = vmatprep.subr.bf16.mxu0 %v9315_v45  ;;  %2637 = vmatprep.subr.bf16.mxu1 %v9317_v58 }
 0x28b   :  { %2117 = vmatmul.mubr.bf16.vlgmr.msra.gmra.mxu0 %v9205_v18  ;;  %2158 = vmatmul.mubr.bf16.vlgmr.msra.gmra.mxu1 %v9205_v18  ;;  %v9369_v18 = vld [vmem:[#allocation10 + $0x68] ss:$16 sps:$4 sm:$0xff]  }
 0x28c   :  { %2597 = vmatpush1.bf16.msra.mxu0 %v9319_v59  ;;  %2638 = vmatpush1.bf16.msra.mxu1 %v9321_v60  ;;  %10817 = vst [vmem:[#allocation37_spill] sm:$0xff] %v9369_v18 }
 0x28d   :  { %2598 = vmatprep.subr.bf16.mxu0 %v9327_v61  ;;  %2639 = vmatprep.subr.bf16.mxu1 %v9329_v0 }
 0x290   :  { %2599 = vmatpush1.bf16.msra.mxu0 %v9331_v2  ;;  %2640 = vmatpush1.bf16.msra.mxu1 %v9333_v4 }
 0x291   :  { %2600 = vmatprep.subr.bf16.mxu0 %v9339_v5  ;;  %2641 = vmatprep.subr.bf16.mxu1 %v9341_v6 }
 0x294   :  { %2601 = vmatpush1.bf16.msra.mxu0 %v9343_v7  ;;  %2642 = vmatpush1.bf16.msra.mxu1 %v9345_v9 }
 0x295   :  { %2602 = vmatprep.subr.bf16.mxu0 %v9351_v10  ;;  %2643 = vmatprep.subr.bf16.mxu1 %v9353_v12  ;;  %v9467_v12 = vld [vmem:[#allocation10 + $0x144] ss:$16 sps:$4 sm:$0xff]   ;;  %v9470_v10 = vld [vmem:[#allocation10 + $0x14c] ss:$16 sps:$4 sm:$0xff]  }
 0x296   :  { %10850 = vst [vmem:[#allocation70_spill] sm:$0xff] %v9467_v12  ;;  %10851 = vst [vmem:[#allocation71_spill] sm:$0xff] %v9470_v10 }
 0x298   :  { %2603 = vmatpush1.bf16.msra.mxu0 %v9355_v13  ;;  %2644 = vmatpush1.bf16.msra.mxu1 %v9357_v14  ;;  %v9379_v14 = vld [vmem:[#allocation10 + $0x40] ss:$16 sps:$4 sm:$0xff]   ;;  %v9381_v13 = vld [vmem:[#allocation10 + $0x48] ss:$16 sps:$4 sm:$0xff]  }
 0x299   :  { %2604 = vmatprep.subr.bf16.mxu0 %v9363_v15  ;;  %2645 = vmatprep.subr.bf16.mxu1 %v9365_v16  ;;  %10820 = vst [vmem:[#allocation40_spill] sm:$0xff] %v9379_v14  ;;  %10821 = vst [vmem:[#allocation41_spill] sm:$0xff] %v9381_v13  ;;  %v9387_v16 = vld [vmem:[#allocation10 + $0x24] ss:$16 sps:$4 sm:$0xff]   ;;  %v9393_v15 = vld [vmem:[#allocation10 + $0x28] ss:$16 sps:$4 sm:$0xff]  }
 0x29a   :  { %10822 = vst [vmem:[#allocation42_spill] sm:$0xff] %v9387_v16  ;;  %10825 = vst [vmem:[#allocation45_spill] sm:$0xff] %v9393_v15 }
 0x29c   :  { %2605 = vmatpush1.bf16.msra.mxu0 %v9367_v17  ;;  %2646 = vmatpush1.bf16.msra.mxu1 %v9369_v18  ;;  %v9389_v17 = vld [vmem:[#allocation10 + $0x2c] ss:$16 sps:$4 sm:$0xff]   ;;  %v9391_v18 = vld [vmem:[#allocation10 + $0x20] ss:$16 sps:$4 sm:$0xff]  }
 0x29d   :  { %2606 = vmatprep.subr.bf16.mxu0 %v9375_v21  ;;  %2647 = vmatprep.subr.bf16.mxu1 %v9377_v23  ;;  %10823 = vst [vmem:[#allocation43_spill] sm:$0xff] %v9389_v17  ;;  %10824 = vst [vmem:[#allocation44_spill] sm:$0xff] %v9391_v18  ;;  %v9399_v23 = vld [vmem:[#allocation10 + $0x4] ss:$16 sps:$4 sm:$0xff]   ;;  %v9405_v21 = vld [vmem:[#allocation10 + $0x8] ss:$16 sps:$4 sm:$0xff]  }
 0x29e   :  { %10826 = vst [vmem:[#allocation46_spill] sm:$0xff] %v9399_v23  ;;  %10829 = vst [vmem:[#allocation49_spill] sm:$0xff] %v9405_v21 }
 0x2a0   :  { %2607 = vmatpush1.bf16.msra.mxu0 %v9379_v14  ;;  %2648 = vmatpush1.bf16.msra.mxu1 %v9381_v13  ;;  %v9401_v14 = vld [vmem:[#allocation10 + $0xc] ss:$16 sps:$4 sm:$0xff]   ;;  %v9403_v13 = vld [vmem:[#allocation10] ss:$16 sps:$4 sm:$0xff]  }
 0x2a1   :  { %2608 = vmatprep.subr.bf16.mxu0 %v9387_v16  ;;  %2649 = vmatprep.subr.bf16.mxu1 %v9389_v17  ;;  %10827 = vst [vmem:[#allocation47_spill] sm:$0xff] %v9401_v14  ;;  %10828 = vst [vmem:[#allocation48_spill] sm:$0xff] %v9403_v13  ;;  %v9411_v17 = vld [vmem:[#allocation10 + $0x1e4] ss:$16 sps:$4 sm:$0xff]   ;;  %v9417_v16 = vld [vmem:[#allocation10 + $0x1e8] ss:$16 sps:$4 sm:$0xff]  }
 0x2a2   :  { %10830 = vst [vmem:[#allocation50_spill] sm:$0xff] %v9411_v17  ;;  %10833 = vst [vmem:[#allocation53_spill] sm:$0xff] %v9417_v16 }
 0x2a4   :  { %2609 = vmatpush1.bf16.msra.mxu0 %v9391_v18  ;;  %2650 = vmatpush1.bf16.msra.mxu1 %v9393_v15  ;;  %v9413_v18 = vld [vmem:[#allocation10 + $0x1ec] ss:$16 sps:$4 sm:$0xff]   ;;  %v9415_v15 = vld [vmem:[#allocation10 + $0x1e0] ss:$16 sps:$4 sm:$0xff]  }
 0x2a5   :  { %2610 = vmatprep.subr.bf16.mxu0 %v9399_v23  ;;  %2651 = vmatprep.subr.bf16.mxu1 %v9401_v14  ;;  %10831 = vst [vmem:[#allocation51_spill] sm:$0xff] %v9413_v18  ;;  %10832 = vst [vmem:[#allocation52_spill] sm:$0xff] %v9415_v15  ;;  %v9423_v14 = vld [vmem:[#allocation10 + $0x1c4] ss:$16 sps:$4 sm:$0xff]   ;;  %v9429_v23 = vld [vmem:[#allocation10 + $0x1c8] ss:$16 sps:$4 sm:$0xff]  }
 0x2a6   :  { %10834 = vst [vmem:[#allocation54_spill] sm:$0xff] %v9423_v14  ;;  %10837 = vst [vmem:[#allocation57_spill] sm:$0xff] %v9429_v23 }
 0x2a8   :  { %2611 = vmatpush1.bf16.msra.mxu0 %v9403_v13  ;;  %2652 = vmatpush1.bf16.msra.mxu1 %v9405_v21  ;;  %v9425_v13 = vld [vmem:[#allocation10 + $0x1cc] ss:$16 sps:$4 sm:$0xff]   ;;  %v9427_v21 = vld [vmem:[#allocation10 + $0x1c0] ss:$16 sps:$4 sm:$0xff]  }
 0x2a9   :  { %2612 = vmatprep.subr.bf16.mxu0 %v9411_v17  ;;  %2653 = vmatprep.subr.bf16.mxu1 %v9413_v18  ;;  %10835 = vst [vmem:[#allocation55_spill] sm:$0xff] %v9425_v13  ;;  %10836 = vst [vmem:[#allocation56_spill] sm:$0xff] %v9427_v21  ;;  %v9435_v18 = vld [vmem:[#allocation10 + $0x1a4] ss:$16 sps:$4 sm:$0xff]   ;;  %v9441_v17 = vld [vmem:[#allocation10 + $0x1a8] ss:$16 sps:$4 sm:$0xff]  }
 0x2aa   :  { %10838 = vst [vmem:[#allocation58_spill] sm:$0xff] %v9435_v18  ;;  %10841 = vst [vmem:[#allocation61_spill] sm:$0xff] %v9441_v17 }
 0x2ac   :  { %2613 = vmatpush2.bf16.msra.mxu0 %v9415_v15  ;;  %2654 = vmatpush2.bf16.msra.mxu1 %v9417_v16  ;;  %v9437_v15 = vld [vmem:[#allocation10 + $0x1ac] ss:$16 sps:$4 sm:$0xff]   ;;  %v9439_v16 = vld [vmem:[#allocation10 + $0x1a0] ss:$16 sps:$4 sm:$0xff]  }
 0x2ad   :  { %2614 = vmatprep.subr.bf16.mxu0 %v9423_v14  ;;  %2655 = vmatprep.subr.bf16.mxu1 %v9425_v13  ;;  %10839 = vst [vmem:[#allocation59_spill] sm:$0xff] %v9437_v15  ;;  %10840 = vst [vmem:[#allocation60_spill] sm:$0xff] %v9439_v16  ;;  %v9447_v13 = vld [vmem:[#allocation10 + $0x184] ss:$16 sps:$4 sm:$0xff]   ;;  %v9453_v14 = vld [vmem:[#allocation10 + $0x188] ss:$16 sps:$4 sm:$0xff]  }
 0x2ae   :  { %10842 = vst [vmem:[#allocation62_spill] sm:$0xff] %v9447_v13  ;;  %10845 = vst [vmem:[#allocation65_spill] sm:$0xff] %v9453_v14 }
 0x2b0   :  { %2615 = vmatpush2.bf16.msra.mxu0 %v9427_v21  ;;  %2656 = vmatpush2.bf16.msra.mxu1 %v9429_v23  ;;  %v9449_v21 = vld [vmem:[#allocation10 + $0x18c] ss:$16 sps:$4 sm:$0xff]   ;;  %v9451_v23 = vld [vmem:[#allocation10 + $0x180] ss:$16 sps:$4 sm:$0xff]  }
 0x2b1   :  { %2616 = vmatprep.subr.bf16.mxu0 %v9435_v18  ;;  %2657 = vmatprep.subr.bf16.mxu1 %v9437_v15  ;;  %10843 = vst [vmem:[#allocation63_spill] sm:$0xff] %v9449_v21  ;;  %10844 = vst [vmem:[#allocation64_spill] sm:$0xff] %v9451_v23  ;;  %v9459_v15 = vld [vmem:[#allocation10 + $0x160] ss:$16 sps:$4 sm:$0xff]   ;;  %v9465_v18 = vld [vmem:[#allocation10 + $0x16c] ss:$16 sps:$4 sm:$0xff]  }
 0x2b2   :  { %10846 = vst [vmem:[#allocation66_spill] sm:$0xff] %v9459_v15  ;;  %10849 = vst [vmem:[#allocation69_spill] sm:$0xff] %v9465_v18 }
 0x2b4   :  { %2617 = vmatpush2.bf16.msra.mxu0 %v9439_v16  ;;  %2658 = vmatpush2.bf16.msra.mxu1 %v9441_v17  ;;  %v9461_v16 = vld [vmem:[#allocation10 + $0x164] ss:$16 sps:$4 sm:$0xff]   ;;  %v9463_v17 = vld [vmem:[#allocation10 + $0x168] ss:$16 sps:$4 sm:$0xff]  }
 0x2b5   :  { %2618 = vmatprep.subr.bf16.mxu0 %v9447_v13  ;;  %2659 = vmatprep.subr.bf16.mxu1 %v9449_v21  ;;  %10847 = vst [vmem:[#allocation67_spill] sm:$0xff] %v9461_v16  ;;  %10848 = vst [vmem:[#allocation68_spill] sm:$0xff] %v9463_v17  ;;  %v9481_v21 = vld [vmem:[#allocation10 + $0x124] ss:$16 sps:$4 sm:$0xff]   ;;  %v9483_v13 = vld [vmem:[#allocation10 + $0x12c] ss:$16 sps:$4 sm:$0xff]  }
 0x2b6   :  { %10854 = vst [vmem:[#allocation74_spill] sm:$0xff] %v9481_v21  ;;  %10855 = vst [vmem:[#allocation75_spill] sm:$0xff] %v9483_v13 }
 0x2b8   :  { %2619 = vmatpush2.bf16.msra.mxu0 %v9451_v23  ;;  %2660 = vmatpush2.bf16.msra.mxu1 %v9453_v14  ;;  %v9475_v14 = vld [vmem:[#allocation10 + $0x140] ss:$16 sps:$4 sm:$0xff]   ;;  %v9477_v23 = vld [vmem:[#allocation10 + $0x148] ss:$16 sps:$4 sm:$0xff]  }
 0x2b9   :  { %2620 = vmatprep.subr.bf16.mxu0 %v9461_v16  ;;  %2661 = vmatprep.subr.bf16.mxu1 %v9465_v18  ;;  %10852 = vst [vmem:[#allocation72_spill] sm:$0xff] %v9475_v14  ;;  %10853 = vst [vmem:[#allocation73_spill] sm:$0xff] %v9477_v23  ;;  %v9487_v18 = vld [vmem:[#allocation10 + $0x120] ss:$16 sps:$4 sm:$0xff]  }
 0x2ba   :  { %10856 = vst [vmem:[#allocation76_spill] sm:$0xff] %v9487_v18 }
 0x2bc   :  { %2621 = vmatpush2.bf16.msra.mxu0 %v9459_v15  ;;  %2662 = vmatpush2.bf16.msra.mxu1 %v9463_v17  ;;  %v9489_v15 = vld [vmem:[#allocation10 + $0x128] ss:$16 sps:$4 sm:$0xff]   ;;  %v9493_v17 = vld [vmem:[#allocation10 + $0x104] ss:$16 sps:$4 sm:$0xff]  }
 0x2bd   :  { %2622 = vmatprep.subr.bf16.mxu0 %v9467_v12  ;;  %2663 = vmatprep.subr.bf16.mxu1 %v9470_v10  ;;  %10857 = vst [vmem:[#allocation77_spill] sm:$0xff] %v9489_v15  ;;  %10858 = vst [vmem:[#allocation78_spill] sm:$0xff] %v9493_v17  ;;  %v9495_v12 = vld [vmem:[#allocation10 + $0x10c] ss:$16 sps:$4 sm:$0xff]   ;;  %v9499_v10 = vld [vmem:[#allocation10 + $0x100] ss:$16 sps:$4 sm:$0xff]  }
 0x2be   :  { %10859 = vst [vmem:[#allocation79_spill] sm:$0xff] %v9495_v12  ;;  %10860 = vst [vmem:[#allocation80_spill] sm:$0xff] %v9499_v10 }
 0x2c0   :  { %2623 = vmatpush2.bf16.msra.mxu0 %v9475_v14  ;;  %2664 = vmatpush2.bf16.msra.mxu1 %v9477_v23  ;;  %v9501_v14 = vld [vmem:[#allocation10 + $0x108] ss:$16 sps:$4 sm:$0xff]  }
 0x2c1   :  { %2624 = vmatprep.subr.bf16.mxu0 %v9481_v21  ;;  %2665 = vmatprep.subr.bf16.mxu1 %v9483_v13  ;;  %10861 = vst [vmem:[#allocation81_spill] sm:$0xff] %v9501_v14 }
 0x2c4   :  { %2625 = vmatpush2.bf16.msra.mxu0 %v9487_v18  ;;  %2666 = vmatpush2.bf16.msra.mxu1 %v9489_v15  ;;  %v7206_v15 = vld [vmem:[%s10589_s5 + $0x4] sm:$0xf] }
 0x2c5   :  { %2626 = vmatprep.subr.bf16.mxu0 %v9493_v17  ;;  %2667 = vmatprep.subr.bf16.mxu1 %v9495_v12  ;;  %v1396_v18 = vrot.slane %v7206_v15, %v10797_v1  ;;  %v1400_v13 = vrot.slane %v7206_v15, %v10798_v3  ;;  %v1408_v2 = vrot.slane %v7206_v15, %v9120_v41 }
 0x2c8   :  { %2627 = vmatpush2.bf16.msra.mxu0 %v9499_v10  ;;  %2668 = vmatpush2.bf16.msra.mxu1 %v9501_v14  ;;  %v1404_v14 = vrot.slane %v7206_v15, %v10799_v8 }
 0x2c9   :  { %2947 = vmatprep.subr.bf16.mxu0 %v9178_v62  ;;  %2988 = vmatprep.subr.bf16.mxu1 %v9180_v63 }
 0x327   :  { %v1767_v21 = vpop.f32.mrf.mxu0  ;;  %v1808_v17 = vpop.f32.mrf.mxu1 }
 0x328   :  { %v1768_v23 = vadd.f32 %v1767_v21, %v1396_v18  ;;  %v1809_v4 = vadd.f32 %v1808_v17, %v1404_v14 }
 0x329   :  { %v1769_v12 = vpop.f32.mrf.mxu0  ;;  %v1810_v16 = vpop.f32.mrf.mxu1 }
 0x32a   :  { %v1820_v10 = vmul.f32 0.5, %v1768_v23  ;;  %v1770_v9 = vadd.f32 %v1769_v12, %v1400_v13  ;;  %v1811_v0 = vadd.f32 %v1810_v16, %v1408_v2  ;;  %v1879_v2 = vld [vmem:[%s10589_s5] sm:$0xf] }
 0x32b   :  { %v1771_v62 = vpop.f32.mrf.mxu0  ;;  %v1812_v7 = vpop.f32.mrf.mxu1  ;;  %v1892_v16 = vrot.slane %v1879_v2, %v10799_v8 }
 0x32c   :  { %8531 = vtanh.f32 %v1820_v10  ;;  %v1815_v63 = vmul.f32 0.5, %v1770_v9  ;;  %v1827_v61 = vmul.f32 0.5, %v1811_v0  ;;  %v1884_v0 = vrot.slane %v1879_v2, %v10797_v1 }
 0x32d   :  { %v1772_v6 = vpop.f32.mrf.mxu0  ;;  %v1813_v5 = vpop.f32.mrf.mxu1 }
 0x32e   :  { %8533 = vtanh.f32 %v1815_v63  ;;  %v1888_v5 = vrot.slane %v1879_v2, %v10798_v3 }
 0x32f   :  { %8535 = vtanh.f32 %v1809_v4 }
 0x330   :  { %8537 = vtanh.f32 %v1827_v61 }
 0x339   :  { %v8532_v18 = vpop.eup %8531 }
 0x33a   :  { %v1822_v21 = vmul.f32 0.5, %v8532_v18 }
 0x33b   :  { %v8534_v60 = vpop.eup %8533 }
 0x33c   :  { %v1823_v23 = vadd.f32 0.5, %v1822_v21  ;;  %v1817_v59 = vmul.f32 0.5, %v8534_v60  ;;  %v8536_v13 = vpop.eup %8535 }
 0x33d   :  { %v8538_v4 = vpop.eup %8537 }
 0x33e   :  { %v1818_v12 = vadd.f32 0.5, %v1817_v59  ;;  %v1825_v9 = vmul.f32 %v8536_v13, %v1823_v23  ;;  %v1829_v59 = vmul.f32 0.5, %v8538_v4 }
 0x340   :  { %v1819_v7 = vmul.f32 %v1818_v12, %v9191_v33  ;;  %v1830_v18 = vadd.f32 0.5, %v1829_v59 }
 0x342   :  { %v9517_v6 = vadd.f32 %v1825_v9, %v1819_v7 }
 0x344   :  { %10862 = vst [vmem:[#allocation82_spill] sm:$0xff] %v9517_v6  ;;  %8539 = vtanh.f32 %v9517_v6 }
 0x34b   :  { %v2118_v60 = vpop.f32.mrf.mxu0  ;;  %v2159_v61 = vpop.f32.mrf.mxu1 }
 0x34c   :  { %v2119_v10 = vadd.f32 %v2118_v60, %v1884_v0  ;;  %v2160_v9 = vadd.f32 %v2159_v61, %v1892_v16  ;;  %v1896_v0 = vrot.slane %v1879_v2, %v9120_v41 }
 0x34d   :  { %v2120_v14 = vpop.f32.mrf.mxu0  ;;  %v2161_v33 = vpop.f32.mrf.mxu1 }
 0x34e   :  { %v2171_v15 = vmul.f32 0.5, %v2119_v10  ;;  %v2121_v17 = vadd.f32 %v2120_v14, %v1888_v5  ;;  %v2162_v4 = vadd.f32 %v2161_v33, %v1896_v0  ;;  %v10902_v0 = vld [vmem:[#allocation59_spill] sm:$0xff] }
 0x34f   :  { %v2122_v62 = vpop.f32.mrf.mxu0  ;;  %v2163_v63 = vpop.f32.mrf.mxu1 }
 0x350   :  { %8541 = vtanh.f32 %v2171_v15  ;;  %v2166_v21 = vmul.f32 0.5, %v2121_v17  ;;  %v2178_v60 = vmul.f32 0.5, %v2162_v4  ;;  %v10903_v4 = vld [vmem:[#allocation60_spill] sm:$0xff] }
 0x351   :  { %v8540_v23 = vpop.eup %8539  ;;  %v2123_v12 = vpop.f32.mrf.mxu0 }
 0x352   :  { %v2164_v13 = vpop.f32.mrf.mxu1  ;;  %v1832_v7 = vmul.f32 %v8540_v23, %v1830_v18  ;;  %8543 = vtanh.f32 %v2166_v21  ;;  %v2701_v23 = vld [vmem:[#allocation2 + $0x18] sm:$0xff] }
 0x353   :  { %8545 = vtanh.f32 %v2160_v9  ;;  %v10901_v9 = vld [vmem:[#allocation58_spill] sm:$0xff] }
 0x354   :  { %1836 = vst [vmem:[#allocation11 + $0x8] sm:$0xff] %v1832_v7  ;;  %8547 = vtanh.f32 %v2178_v60  ;;  %v2252_v13 = vpack.c.bf16 %v1832_v7, %v1832_v7  ;;  %v10900_v7 = vld [vmem:[#allocation57_spill] sm:$0xff] }
 0x355   :  { %v10904_v60 = vld [vmem:[#allocation61_spill] sm:$0xff] }
 0x35d   :  { %v8542_v10 = vpop.eup %8541 }
 0x35e   :  { %v2173_v6 = vmul.f32 0.5, %v8542_v10  ;;  %v10905_v10 = vld [vmem:[#allocation62_spill] sm:$0xff] }
 0x35f   :  { %v8544_v5 = vpop.eup %8543 }
 0x360   :  { %v2174_v14 = vadd.f32 0.5, %v2173_v6  ;;  %v2168_v62 = vmul.f32 0.5, %v8544_v5  ;;  %v8546_v15 = vpop.eup %8545  ;;  %v2741_v6 = vpack.c.bf16 %v2701_v23, %v2701_v23  ;;  %v10906_v5 = vld [vmem:[#allocation63_spill] sm:$0xff] }
 0x361   :  { %v8548_v61 = vpop.eup %8547  ;;  %v10918_v23 = vld [vmem:[#allocation75_spill] sm:$0xff] }
 0x362   :  { %v2169_v59 = vadd.f32 0.5, %v2168_v62  ;;  %v2176_v63 = vmul.f32 %v8546_v15, %v2174_v14  ;;  %v2180_v2 = vmul.f32 0.5, %v8548_v61  ;;  %v10907_v14 = vld [vmem:[#allocation64_spill] sm:$0xff]  ;;  %v10908_v62 = vld [vmem:[#allocation65_spill] sm:$0xff]  ;;  %v10913_v61 = vld [vmem:[#allocation70_spill] sm:$0xff] }
 0x363   :  { %v10910_v15 = vld [vmem:[#allocation69_spill] sm:$0xff] }
 0x364   :  { %v2170_v17 = vmul.f32 %v2169_v59, %v9202_v11  ;;  %v2181_v16 = vadd.f32 0.5, %v2180_v2  ;;  %v10863_v11 = vld [vmem:[#allocation20_spill] sm:$0xff]  ;;  %v10909_v59 = vld [vmem:[#allocation67_spill] sm:$0xff] }
 0x365   :  { %v10914_v2 = vld [vmem:[#allocation71_spill] sm:$0xff] }
 0x366   :  { %v9528_v18 = vadd.f32 %v2176_v63, %v2170_v17  ;;  %v10911_v17 = vld [vmem:[#allocation66_spill] sm:$0xff]  ;;  %v10912_v63 = vld [vmem:[#allocation68_spill] sm:$0xff] }
 0x368   :  { %8549 = vtanh.f32 %v9528_v18 }
 0x375   :  { %v8550_v33 = vpop.eup %8549 }
 0x376   :  { %v2183_v21 = vmul.f32 %v8550_v33, %v2181_v16  ;;  %v10915_v16 = vld [vmem:[#allocation72_spill] sm:$0xff]  ;;  %v10916_v33 = vld [vmem:[#allocation73_spill] sm:$0xff] }
 0x378   :  { %v2253_v12 = vpack.c.bf16 %v2183_v21, %v2183_v21  ;;  %v10917_v21 = vld [vmem:[#allocation74_spill] sm:$0xff] }
 0x37a   :  { %2628 = vmatprep.mubr.bf16.mxu0 %v2253_v12  ;;  %2669 = vmatprep.mubr.bf16.mxu1 %v2253_v12 }
 0x37b   :  { %2629 = vmatmul.mubr.bf16.vlgmr.msra.gmra.mxu0 %v2252_v13  ;;  %2670 = vmatmul.mubr.bf16.vlgmr.msra.gmra.mxu1 %v2252_v13  ;;  %v10920_v13 = vld [vmem:[#allocation77_spill] sm:$0xff] }
 0x37c   :  { %2948 = vmatpush1.bf16.msra.mxu0 %v9207_v19  ;;  %2989 = vmatpush1.bf16.msra.mxu1 %v9209_v20  ;;  %v10864_v19 = vld [vmem:[#allocation21_spill] sm:$0xff]  ;;  %v10865_v20 = vld [vmem:[#allocation22_spill] sm:$0xff] }
 0x37d   :  { %2949 = vmatprep.subr.bf16.mxu0 %v9211_v22  ;;  %2990 = vmatprep.subr.bf16.mxu1 %v9213_v57  ;;  %v10866_v22 = vld [vmem:[#allocation23_spill] sm:$0xff]  ;;  %v10867_v57 = vld [vmem:[#allocation24_spill] sm:$0xff] }
 0x37e   :  { %7410 = vmatprep.mubr.msk.bf16.mxu0 %vm352_vm0, %v2741_v6  ;;  %7411 = vmatprep.mubr.msk.bf16.mxu1 %vm352_vm0, %v2741_v6  ;;  %v10921_v6 = vld [vmem:[#allocation78_spill] sm:$0xff] }
 0x380   :  { %2950 = vmatpush1.bf16.msra.mxu0 %v9219_v24  ;;  %2991 = vmatpush1.bf16.msra.mxu1 %v9221_v25  ;;  %v10868_v24 = vld [vmem:[#allocation25_spill] sm:$0xff]  ;;  %v10869_v25 = vld [vmem:[#allocation26_spill] sm:$0xff] }
 0x381   :  { %2951 = vmatprep.subr.bf16.mxu0 %v9225_v26  ;;  %2992 = vmatprep.subr.bf16.mxu1 %v9227_v27  ;;  %v10870_v26 = vld [vmem:[#allocation27_spill] sm:$0xff]  ;;  %v10871_v27 = vld [vmem:[#allocation28_spill] sm:$0xff] }
 0x384   :  { %2952 = vmatpush1.bf16.msra.mxu0 %v9233_v28  ;;  %2993 = vmatpush1.bf16.msra.mxu1 %v9235_v29  ;;  %v10872_v28 = vld [vmem:[#allocation29_spill] sm:$0xff]  ;;  %v10873_v29 = vld [vmem:[#allocation30_spill] sm:$0xff] }
 0x385   :  { %2953 = vmatprep.subr.bf16.mxu0 %v9239_v30  ;;  %2994 = vmatprep.subr.bf16.mxu1 %v9241_v31  ;;  %v10874_v30 = vld [vmem:[#allocation31_spill] sm:$0xff]  ;;  %v10875_v31 = vld [vmem:[#allocation32_spill] sm:$0xff] }
 0x388   :  { %2954 = vmatpush1.bf16.msra.mxu0 %v9245_v32  ;;  %2995 = vmatpush1.bf16.msra.mxu1 %v9247_v34  ;;  %v10876_v32 = vld [vmem:[#allocation33_spill] sm:$0xff]  ;;  %v10877_v34 = vld [vmem:[#allocation34_spill] sm:$0xff] }
 0x389   :  { %2955 = vmatprep.subr.bf16.mxu0 %v9251_v35  ;;  %2996 = vmatprep.subr.bf16.mxu1 %v9253_v36  ;;  %v10878_v35 = vld [vmem:[#allocation35_spill] sm:$0xff]  ;;  %v10879_v36 = vld [vmem:[#allocation36_spill] sm:$0xff] }
 0x38c   :  { %2956 = vmatpush1.bf16.msra.mxu0 %v9257_v37  ;;  %2997 = vmatpush1.bf16.msra.mxu1 %v9259_v40  ;;  %v10880_v37 = vld [vmem:[#allocation37_spill] sm:$0xff]  ;;  %v10881_v40 = vld [vmem:[#allocation38_spill] sm:$0xff] }
 0x38d   :  { %2957 = vmatprep.subr.bf16.mxu0 %v9263_v46  ;;  %2998 = vmatprep.subr.bf16.mxu1 %v9265_v42  ;;  %v10882_v46 = vld [vmem:[#allocation39_spill] sm:$0xff]  ;;  %v10883_v42 = vld [vmem:[#allocation40_spill] sm:$0xff] }
 0x390   :  { %2958 = vmatpush1.bf16.msra.mxu0 %v9269_v48  ;;  %2999 = vmatpush1.bf16.msra.mxu1 %v9271_v47  ;;  %v10884_v48 = vld [vmem:[#allocation41_spill] sm:$0xff]  ;;  %v10885_v47 = vld [vmem:[#allocation42_spill] sm:$0xff] }
 0x391   :  { %2959 = vmatprep.subr.bf16.mxu0 %v9275_v50  ;;  %3000 = vmatprep.subr.bf16.mxu1 %v9277_v51  ;;  %v10886_v50 = vld [vmem:[#allocation43_spill] sm:$0xff]  ;;  %v10887_v51 = vld [vmem:[#allocation44_spill] sm:$0xff] }
 0x394   :  { %2960 = vmatpush1.bf16.msra.mxu0 %v9281_v49  ;;  %3001 = vmatpush1.bf16.msra.mxu1 %v9283_v53  ;;  %v10888_v49 = vld [vmem:[#allocation45_spill] sm:$0xff]  ;;  %v10889_v53 = vld [vmem:[#allocation46_spill] sm:$0xff] }
 0x395   :  { %2961 = vmatprep.subr.bf16.mxu0 %v9287_v55  ;;  %3002 = vmatprep.subr.bf16.mxu1 %v9289_v56  ;;  %v10890_v55 = vld [vmem:[#allocation47_spill] sm:$0xff]  ;;  %v10891_v56 = vld [vmem:[#allocation48_spill] sm:$0xff] }
 0x398   :  { %2962 = vmatpush1.bf16.msra.mxu0 %v9293_v52  ;;  %3003 = vmatpush1.bf16.msra.mxu1 %v9295_v38  ;;  %v10892_v52 = vld [vmem:[#allocation49_spill] sm:$0xff]  ;;  %v10893_v38 = vld [vmem:[#allocation50_spill] sm:$0xff] }
 0x399   :  { %2977 = vmatprep.subr.bf16.mxu0 %v9299_v43  ;;  %3018 = vmatprep.subr.bf16.mxu1 %v9301_v54  ;;  %v10894_v43 = vld [vmem:[#allocation51_spill] sm:$0xff]  ;;  %v10895_v54 = vld [vmem:[#allocation52_spill] sm:$0xff] }
 0x39c   :  { %2978 = vmatpush2.bf16.msra.mxu0 %v9305_v39  ;;  %3019 = vmatpush2.bf16.msra.mxu1 %v9307_v44  ;;  %v10896_v39 = vld [vmem:[#allocation53_spill] sm:$0xff]  ;;  %v10897_v44 = vld [vmem:[#allocation54_spill] sm:$0xff] }
 0x39d   :  { %3459 = vmatprep.subr.bf16.mxu0 %v9315_v45  ;;  %3500 = vmatprep.subr.bf16.mxu1 %v9317_v58  ;;  %v10898_v45 = vld [vmem:[#allocation55_spill] sm:$0xff]  ;;  %v10899_v58 = vld [vmem:[#allocation56_spill] sm:$0xff] }
 0x39f   :  { %2980 = vmatmul.mubr.bf16.vlgmr.msra.gmra.mxu0 %v2253_v12  ;;  %3021 = vmatmul.mubr.bf16.vlgmr.msra.gmra.mxu1 %v2253_v12  ;;  %v10919_v12 = vld [vmem:[#allocation76_spill] sm:$0xff] }
 0x3a0   :  { %3460 = vmatpush1.bf16.msra.mxu0 %v10863_v11  ;;  %3501 = vmatpush1.bf16.msra.mxu1 %v10864_v19  ;;  %v10922_v11 = vld [vmem:[#allocation79_spill] sm:$0xff]  ;;  %v10923_v19 = vld [vmem:[#allocation80_spill] sm:$0xff] }
 0x3a1   :  { %3461 = vmatprep.subr.bf16.mxu0 %v10865_v20  ;;  %3502 = vmatprep.subr.bf16.mxu1 %v10866_v22  ;;  %v10924_v20 = vld [vmem:[#allocation81_spill] sm:$0xff]  ;;  %v9631_v22 = vld [vmem:[#allocation8 + $0xe4] ss:$16 sps:$4 sm:$0xff]  }
 0x3a4   :  { %3462 = vmatpush1.bf16.msra.mxu0 %v10867_v57  ;;  %3503 = vmatpush1.bf16.msra.mxu1 %v10868_v24  ;;  %v9633_v57 = vld [vmem:[#allocation8 + $0xec] ss:$16 sps:$4 sm:$0xff]   ;;  %v7309_v24 = vld [vmem:[%s10589_s5 + $0x4] sm:$0xf] }
 0x3a5   :  { %3463 = vmatprep.subr.bf16.mxu0 %v10869_v25  ;;  %3504 = vmatprep.subr.bf16.mxu1 %v10870_v26  ;;  %v2259_v25 = vrot.slane %v7309_v24, %v10797_v1  ;;  %v2263_v26 = vrot.slane %v7309_v24, %v10798_v3 }
 0x3a8   :  { %3464 = vmatpush1.bf16.msra.mxu0 %v10871_v27  ;;  %3505 = vmatpush1.bf16.msra.mxu1 %v10872_v28 }
 0x3a9   :  { %3465 = vmatprep.subr.bf16.mxu0 %v10873_v29  ;;  %3506 = vmatprep.subr.bf16.mxu1 %v10874_v30 }
 0x3ac   :  { %3466 = vmatpush1.bf16.msra.mxu0 %v10875_v31  ;;  %3507 = vmatpush1.bf16.msra.mxu1 %v10876_v32 }
 0x3ad   :  { %3467 = vmatprep.subr.bf16.mxu0 %v10877_v34  ;;  %3508 = vmatprep.subr.bf16.mxu1 %v10878_v35  ;;  %v2267_v34 = vrot.slane %v7309_v24, %v10799_v8 }
 0x3b0   :  { %3468 = vmatpush1.bf16.msra.mxu0 %v10879_v36  ;;  %3509 = vmatpush1.bf16.msra.mxu1 %v10880_v37 }
 0x3b1   :  { %3469 = vmatprep.subr.bf16.mxu0 %v10881_v40  ;;  %3510 = vmatprep.subr.bf16.mxu1 %v10882_v46 }
 0x3b4   :  { %3470 = vmatpush1.bf16.msra.mxu0 %v10883_v42  ;;  %3511 = vmatpush1.bf16.msra.mxu1 %v10884_v48 }
 0x3b5   :  { %3471 = vmatprep.subr.bf16.mxu0 %v10885_v47  ;;  %3512 = vmatprep.subr.bf16.mxu1 %v10886_v50  ;;  %v2271_v47 = vrot.slane %v7309_v24, %v9120_v41 }
 0x3b8   :  { %3472 = vmatpush1.bf16.msra.mxu0 %v10887_v51  ;;  %3513 = vmatpush1.bf16.msra.mxu1 %v10888_v49 }
 0x3b9   :  { %3473 = vmatprep.subr.bf16.mxu0 %v10889_v53  ;;  %3514 = vmatprep.subr.bf16.mxu1 %v10890_v55 }
 0x3bc   :  { %3474 = vmatpush1.bf16.msra.mxu0 %v10891_v56  ;;  %3515 = vmatpush1.bf16.msra.mxu1 %v10892_v52 }
 0x3bd   :  { %3475 = vmatprep.subr.bf16.mxu0 %v10893_v38  ;;  %3516 = vmatprep.subr.bf16.mxu1 %v10894_v43 }
 0x3c0   :  { %3476 = vmatpush2.bf16.msra.mxu0 %v10895_v54  ;;  %3517 = vmatpush2.bf16.msra.mxu1 %v10896_v39  ;;  %v10925_v54 = vld [vmem:[#allocation82_spill] sm:$0xff] }
 0x3c1   :  { %3477 = vmatprep.subr.bf16.mxu0 %v10897_v44  ;;  %3518 = vmatprep.subr.bf16.mxu1 %v10898_v45 }
 0x3c4   :  { %3478 = vmatpush2.bf16.msra.mxu0 %v10899_v58  ;;  %3519 = vmatpush2.bf16.msra.mxu1 %v10900_v7  ;;  %v2742_v58 = vld [vmem:[%s10589_s5] sm:$0xf] }
 0x3c5   :  { %3479 = vmatprep.subr.bf16.mxu0 %v10901_v9  ;;  %3520 = vmatprep.subr.bf16.mxu1 %v10902_v0  ;;  %v2747_v7 = vrot.slane %v2742_v58, %v10797_v1  ;;  %v2751_v0 = vrot.slane %v2742_v58, %v10798_v3 }
 0x3c8   :  { %3480 = vmatpush2.bf16.msra.mxu0 %v10903_v4  ;;  %3521 = vmatpush2.bf16.msra.mxu1 %v10904_v60 }
 0x3c9   :  { %3481 = vmatprep.subr.bf16.mxu0 %v10905_v10  ;;  %3522 = vmatprep.subr.bf16.mxu1 %v10906_v5 }
 0x3cc   :  { %3482 = vmatpush2.bf16.msra.mxu0 %v10907_v14  ;;  %3523 = vmatpush2.bf16.msra.mxu1 %v10908_v62 }
 0x3cd   :  { %3483 = vmatprep.subr.bf16.mxu0 %v10909_v59  ;;  %3524 = vmatprep.subr.bf16.mxu1 %v10910_v15  ;;  %v2755_v15 = vrot.slane %v2742_v58, %v10799_v8 }
 0x3d0   :  { %3484 = vmatpush2.bf16.msra.mxu0 %v10911_v17  ;;  %3525 = vmatpush2.bf16.msra.mxu1 %v10912_v63 }
 0x3d1   :  { %3485 = vmatprep.subr.bf16.mxu0 %v10913_v61  ;;  %3526 = vmatprep.subr.bf16.mxu1 %v10914_v2 }
 0x3d4   :  { %3486 = vmatpush2.bf16.msra.mxu0 %v10915_v16  ;;  %3527 = vmatpush2.bf16.msra.mxu1 %v10916_v33 }
 0x3d5   :  { %3487 = vmatprep.subr.bf16.mxu0 %v10917_v21  ;;  %3528 = vmatprep.subr.bf16.mxu1 %v10918_v23 }
 0x3d8   :  { %3488 = vmatpush2.bf16.msra.mxu0 %v10919_v12  ;;  %3529 = vmatpush2.bf16.msra.mxu1 %v10920_v13 }
 0x3d9   :  { %3489 = vmatprep.subr.bf16.mxu0 %v10921_v6  ;;  %3530 = vmatprep.subr.bf16.mxu1 %v10922_v11  ;;  %v2759_v6 = vrot.slane %v2742_v58, %v9120_v41  ;;  %v9701_v58 = vld [vmem:[#allocation8 + $0x88] ss:$16 sps:$4 sm:$0xff]  }
 0x3dc   :  { %3490 = vmatpush2.bf16.msra.mxu0 %v10923_v19  ;;  %3531 = vmatpush2.bf16.msra.mxu1 %v10924_v20 }
 0x3dd   :  { %3810 = vmatprep.subr.bf16.mxu0 %v9631_v22  ;;  %3851 = vmatprep.subr.bf16.mxu1 %v9633_v57 }
 0x43b   :  { %v2630_v27 = vpop.f32.mrf.mxu0  ;;  %v2671_v28 = vpop.f32.mrf.mxu1 }
 0x43c   :  { %v2631_v29 = vadd.f32 %v2630_v27, %v2259_v25  ;;  %v2672_v48 = vadd.f32 %v2671_v28, %v2267_v34 }
 0x43d   :  { %v2632_v30 = vpop.f32.mrf.mxu0  ;;  %v2673_v31 = vpop.f32.mrf.mxu1 }
 0x43e   :  { %v2683_v32 = vmul.f32 0.5, %v2631_v29  ;;  %v2633_v35 = vadd.f32 %v2632_v30, %v2263_v26  ;;  %v2674_v50 = vadd.f32 %v2673_v31, %v2271_v47  ;;  %v9663_v47 = vld [vmem:[#allocation8 + $0xe8] ss:$16 sps:$4 sm:$0xff]  }
 0x43f   :  { %v2634_v36 = vpop.f32.mrf.mxu0  ;;  %v2675_v37 = vpop.f32.mrf.mxu1 }
 0x440   :  { %8551 = vtanh.f32 %v2683_v32  ;;  %v2678_v40 = vmul.f32 0.5, %v2633_v35  ;;  %v2690_v51 = vmul.f32 0.5, %v2674_v50 }
 0x441   :  { %v2635_v46 = vpop.f32.mrf.mxu0  ;;  %v2676_v42 = vpop.f32.mrf.mxu1 }
 0x442   :  { %8553 = vtanh.f32 %v2678_v40  ;;  %v3564_v46 = vld [vmem:[#allocation2 + $0x20] sm:$0xff] }
 0x443   :  { %8555 = vtanh.f32 %v2672_v48  ;;  %v9661_v48 = vld [vmem:[#allocation8 + $0xe0] ss:$16 sps:$4 sm:$0xff]  }
 0x444   :  { %8557 = vtanh.f32 %v2690_v51  ;;  %v9665_v51 = vld [vmem:[#allocation8 + $0xc4] ss:$16 sps:$4 sm:$0xff]  }
 0x44d   :  { %v8552_v49 = vpop.eup %8551 }
 0x44e   :  { %v2685_v53 = vmul.f32 0.5, %v8552_v49  ;;  %v3604_v49 = vpack.c.bf16 %v3564_v46, %v3564_v46  ;;  %v9821_v46 = vld [vmem:[#allocation10 + $0x60] ss:$16 sps:$4 sm:$0xff]  }
 0x44f   :  { %v8554_v55 = vpop.eup %8553  ;;  %10942 = vst [vmem:[#allocation36_spill] sm:$0xff] %v9821_v46 }
 0x450   :  { %v2686_v56 = vadd.f32 0.5, %v2685_v53  ;;  %v2680_v52 = vmul.f32 0.5, %v8554_v55  ;;  %v8556_v43 = vpop.eup %8555  ;;  %v9673_v53 = vld [vmem:[#allocation8 + $0xc0] ss:$16 sps:$4 sm:$0xff]   ;;  %v9675_v55 = vld [vmem:[#allocation8 + $0xc8] ss:$16 sps:$4 sm:$0xff]  }
 0x451   :  { %v8558_v9 = vpop.eup %8557 }
 0x452   :  { %v2681_v38 = vadd.f32 0.5, %v2680_v52  ;;  %v2688_v44 = vmul.f32 %v8556_v43, %v2686_v56  ;;  %v2692_v10 = vmul.f32 0.5, %v8558_v9  ;;  %v9679_v56 = vld [vmem:[#allocation8 + $0xa4] ss:$16 sps:$4 sm:$0xff]   ;;  %v9681_v52 = vld [vmem:[#allocation8 + $0xac] ss:$16 sps:$4 sm:$0xff]  }
 0x453   :  { %v9689_v43 = vld [vmem:[#allocation8 + $0xa8] ss:$16 sps:$4 sm:$0xff]   ;;  %v9707_v9 = vld [vmem:[#allocation8 + $0x6c] ss:$16 sps:$4 sm:$0xff]  }
 0x454   :  { %v2682_v39 = vmul.f32 %v2681_v38, %v10925_v54  ;;  %v2693_v2 = vadd.f32 0.5, %v2692_v10  ;;  %v9687_v38 = vld [vmem:[#allocation8 + $0xa0] ss:$16 sps:$4 sm:$0xff]   ;;  %v9693_v54 = vld [vmem:[#allocation8 + $0x84] ss:$16 sps:$4 sm:$0xff]  }
 0x455   :  { %v9719_v10 = vld [vmem:[#allocation8 + $0x4c] ss:$16 sps:$4 sm:$0xff]  }
 0x456   :  { %v9645_v45 = vadd.f32 %v2688_v44, %v2682_v39  ;;  %v9695_v39 = vld [vmem:[#allocation8 + $0x8c] ss:$16 sps:$4 sm:$0xff]   ;;  %v9699_v44 = vld [vmem:[#allocation8 + $0x80] ss:$16 sps:$4 sm:$0xff]  }
 0x458   :  { %8559 = vtanh.f32 %v9645_v45 }
 0x45f   :  { %v2981_v4 = vpop.f32.mrf.mxu0  ;;  %v3022_v60 = vpop.f32.mrf.mxu1 }
 0x460   :  { %v2982_v5 = vadd.f32 %v2981_v4, %v2747_v7  ;;  %v3023_v13 = vadd.f32 %v3022_v60, %v2755_v15  ;;  %v9705_v7 = vld [vmem:[#allocation8 + $0x64] ss:$16 sps:$4 sm:$0xff]   ;;  %v9713_v4 = vld [vmem:[#allocation8 + $0x68] ss:$16 sps:$4 sm:$0xff]   ;;  %v9735_v15 = vld [vmem:[#allocation8 + $0x20] ss:$16 sps:$4 sm:$0xff]  }
 0x461   :  { %v2983_v14 = vpop.f32.mrf.mxu0  ;;  %v3024_v62 = vpop.f32.mrf.mxu1  ;;  %v9717_v60 = vld [vmem:[#allocation8 + $0x44] ss:$16 sps:$4 sm:$0xff]  }
 0x462   :  { %v3034_v59 = vmul.f32 0.5, %v2982_v5  ;;  %v2984_v17 = vadd.f32 %v2983_v14, %v2751_v0  ;;  %v3025_v11 = vadd.f32 %v3024_v62, %v2759_v6  ;;  %v9711_v0 = vld [vmem:[#allocation8 + $0x60] ss:$16 sps:$4 sm:$0xff]   ;;  %v9725_v14 = vld [vmem:[#allocation8 + $0x48] ss:$16 sps:$4 sm:$0xff]  }
 0x463   :  { %v2985_v63 = vpop.f32.mrf.mxu0  ;;  %v3026_v61 = vpop.f32.mrf.mxu1  ;;  %v9723_v5 = vld [vmem:[#allocation8 + $0x40] ss:$16 sps:$4 sm:$0xff]   ;;  %v9729_v62 = vld [vmem:[#allocation8 + $0x24] ss:$16 sps:$4 sm:$0xff]   ;;  %v9771_v6 = vld [vmem:[#allocation10 + $0xec] ss:$16 sps:$4 sm:$0xff]  }
 0x464   :  { %8561 = vtanh.f32 %v3034_v59  ;;  %v3029_v16 = vmul.f32 0.5, %v2984_v17  ;;  %v3041_v19 = vmul.f32 0.5, %v3025_v11  ;;  %v9731_v59 = vld [vmem:[#allocation8 + $0x2c] ss:$16 sps:$4 sm:$0xff]   ;;  %v9737_v17 = vld [vmem:[#allocation8 + $0x28] ss:$16 sps:$4 sm:$0xff]  }
 0x465   :  { %v8560_v33 = vpop.eup %8559  ;;  %v2986_v21 = vpop.f32.mrf.mxu0  ;;  %v9741_v63 = vld [vmem:[#allocation8 + $0x4] ss:$16 sps:$4 sm:$0xff]   ;;  %v9743_v61 = vld [vmem:[#allocation8 + $0xc] ss:$16 sps:$4 sm:$0xff]   ;;  %v9773_v11 = vld [vmem:[#allocation10 + $0xe0] ss:$16 sps:$4 sm:$0xff]  }
 0x466   :  { %v3027_v23 = vpop.f32.mrf.mxu1  ;;  %v2695_v12 = vmul.f32 %v8560_v33, %v2693_v2  ;;  %8563 = vtanh.f32 %v3029_v16  ;;  %v9747_v2 = vld [vmem:[#allocation8] ss:$16 sps:$4 sm:$0xff]   ;;  %v9749_v16 = vld [vmem:[#allocation8 + $0x8] ss:$16 sps:$4 sm:$0xff]   ;;  %v9753_v33 = vld [vmem:[#allocation8 + $0x104] ss:$16 sps:$4 sm:$0xff]  }
 0x467   :  { %8565 = vtanh.f32 %v3023_v13  ;;  %v9755_v21 = vld [vmem:[#allocation8 + $0x10c] ss:$16 sps:$4 sm:$0xff]   ;;  %v9759_v23 = vld [vmem:[#allocation8 + $0x100] ss:$16 sps:$4 sm:$0xff]   ;;  %v9769_v13 = vld [vmem:[#allocation10 + $0xe4] ss:$16 sps:$4 sm:$0xff]  }
 0x468   :  { %2699 = vst [vmem:[#allocation11 + $0x10] sm:$0xff] %v2695_v12  ;;  %8567 = vtanh.f32 %v3041_v19  ;;  %v3115_v50 = vpack.c.bf16 %v2695_v12, %v2695_v12  ;;  %v9761_v12 = vld [vmem:[#allocation8 + $0x108] ss:$16 sps:$4 sm:$0xff]   ;;  %10926 = vst [vmem:[#allocation20_spill] sm:$0xff] %v9773_v11 }
 0x469   :  { %v9775_v19 = vld [vmem:[#allocation10 + $0xe8] ss:$16 sps:$4 sm:$0xff]  }
 0x46a   :  { %10927 = vst [vmem:[#allocation21_spill] sm:$0xff] %v9775_v19 }
 0x471   :  { %v8562_v20 = vpop.eup %8561 }
 0x472   :  { %v3036_v24 = vmul.f32 0.5, %v8562_v20  ;;  %v9781_v20 = vld [vmem:[#allocation10 + $0xc4] ss:$16 sps:$4 sm:$0xff]  }
 0x473   :  { %v8564_v25 = vpop.eup %8563  ;;  %10928 = vst [vmem:[#allocation22_spill] sm:$0xff] %v9781_v20 }
 0x474   :  { %v3037_v26 = vadd.f32 0.5, %v3036_v24  ;;  %v3031_v27 = vmul.f32 0.5, %v8564_v25  ;;  %v8566_v29 = vpop.eup %8565  ;;  %v9783_v24 = vld [vmem:[#allocation10 + $0xcc] ss:$16 sps:$4 sm:$0xff]   ;;  %v9785_v25 = vld [vmem:[#allocation10 + $0xc0] ss:$16 sps:$4 sm:$0xff]  }
 0x475   :  { %v8568_v34 = vpop.eup %8567  ;;  %10929 = vst [vmem:[#allocation23_spill] sm:$0xff] %v9783_v24  ;;  %10930 = vst [vmem:[#allocation24_spill] sm:$0xff] %v9785_v25 }
 0x476   :  { %v3032_v28 = vadd.f32 0.5, %v3031_v27  ;;  %v3039_v31 = vmul.f32 %v8566_v29, %v3037_v26  ;;  %v3043_v35 = vmul.f32 0.5, %v8568_v34  ;;  %v9787_v26 = vld [vmem:[#allocation10 + $0xc8] ss:$16 sps:$4 sm:$0xff]   ;;  %v9793_v27 = vld [vmem:[#allocation10 + $0xa4] ss:$16 sps:$4 sm:$0xff]  }
 0x477   :  { %10931 = vst [vmem:[#allocation25_spill] sm:$0xff] %v9787_v26  ;;  %10932 = vst [vmem:[#allocation26_spill] sm:$0xff] %v9793_v27  ;;  %v9797_v29 = vld [vmem:[#allocation10 + $0xa0] ss:$16 sps:$4 sm:$0xff]   ;;  %v9807_v34 = vld [vmem:[#allocation10 + $0x8c] ss:$16 sps:$4 sm:$0xff]  }
 0x478   :  { %v3033_v30 = vmul.f32 %v3032_v28, %v9528_v18  ;;  %v3044_v36 = vadd.f32 0.5, %v3043_v35  ;;  %v9667_v18 = vld [vmem:[#allocation8 + $0xcc] ss:$16 sps:$4 sm:$0xff]   ;;  %10934 = vst [vmem:[#allocation28_spill] sm:$0xff] %v9797_v29  ;;  %10937 = vst [vmem:[#allocation31_spill] sm:$0xff] %v9807_v34 }
 0x479   :  { %v9795_v28 = vld [vmem:[#allocation10 + $0xac] ss:$16 sps:$4 sm:$0xff]   ;;  %v9809_v35 = vld [vmem:[#allocation10 + $0x80] ss:$16 sps:$4 sm:$0xff]  }
 0x47a   :  { %v9656_v32 = vadd.f32 %v3039_v31, %v3033_v30  ;;  %10933 = vst [vmem:[#allocation27_spill] sm:$0xff] %v9795_v28  ;;  %v9799_v30 = vld [vmem:[#allocation10 + $0xa8] ss:$16 sps:$4 sm:$0xff]   ;;  %v9805_v31 = vld [vmem:[#allocation10 + $0x84] ss:$16 sps:$4 sm:$0xff]   ;;  %10938 = vst [vmem:[#allocation32_spill] sm:$0xff] %v9809_v35 }
 0x47b   :  { %10935 = vst [vmem:[#allocation29_spill] sm:$0xff] %v9799_v30  ;;  %10936 = vst [vmem:[#allocation30_spill] sm:$0xff] %v9805_v31 }
 0x47c   :  { %8569 = vtanh.f32 %v9656_v32 }
 0x489   :  { %v8570_v37 = vpop.eup %8569 }
 0x48a   :  { %v3046_v40 = vmul.f32 %v8570_v37, %v3044_v36  ;;  %v9811_v36 = vld [vmem:[#allocation10 + $0x88] ss:$16 sps:$4 sm:$0xff]   ;;  %v9817_v37 = vld [vmem:[#allocation10 + $0x64] ss:$16 sps:$4 sm:$0xff]  }
 0x48b   :  { %10939 = vst [vmem:[#allocation33_spill] sm:$0xff] %v9811_v36  ;;  %10940 = vst [vmem:[#allocation34_spill] sm:$0xff] %v9817_v37 }
 0x48c   :  { %v9659_v42 = vpack.c.bf16 %v3046_v40, %v3046_v40  ;;  %v9819_v40 = vld [vmem:[#allocation10 + $0x6c] ss:$16 sps:$4 sm:$0xff]  }
 0x48d   :  { %10941 = vst [vmem:[#allocation35_spill] sm:$0xff] %v9819_v40 }
 0x48e   :  { %3491 = vmatprep.mubr.bf16.mxu0 %v9659_v42  ;;  %3532 = vmatprep.mubr.bf16.mxu1 %v9659_v42 }
 0x48f   :  { %3492 = vmatmul.mubr.bf16.vlgmr.msra.gmra.mxu0 %v3115_v50  ;;  %3533 = vmatmul.mubr.bf16.vlgmr.msra.gmra.mxu1 %v3115_v50  ;;  %v9829_v50 = vld [vmem:[#allocation10 + $0x44] ss:$16 sps:$4 sm:$0xff]  }
 0x490   :  { %3811 = vmatpush1.bf16.msra.mxu0 %v9661_v48  ;;  %3852 = vmatpush1.bf16.msra.mxu1 %v9663_v47  ;;  %10944 = vst [vmem:[#allocation38_spill] sm:$0xff] %v9829_v50 }
 0x491   :  { %3812 = vmatprep.subr.bf16.mxu0 %v9665_v51  ;;  %3853 = vmatprep.subr.bf16.mxu1 %v9667_v18 }
 0x492   :  { %7513 = vmatprep.mubr.msk.bf16.mxu0 %vm352_vm0, %v3604_v49  ;;  %7514 = vmatprep.mubr.msk.bf16.mxu1 %vm352_vm0, %v3604_v49  ;;  %v9831_v49 = vld [vmem:[#allocation10 + $0x4c] ss:$16 sps:$4 sm:$0xff]  }
 0x493   :  { %10945 = vst [vmem:[#allocation39_spill] sm:$0xff] %v9831_v49 }
 0x494   :  { %3813 = vmatpush1.bf16.msra.mxu0 %v9673_v53  ;;  %3854 = vmatpush1.bf16.msra.mxu1 %v9675_v55 }
 0x495   :  { %3814 = vmatprep.subr.bf16.mxu0 %v9679_v56  ;;  %3855 = vmatprep.subr.bf16.mxu1 %v9681_v52 }
 0x498   :  { %3815 = vmatpush1.bf16.msra.mxu0 %v9687_v38  ;;  %3856 = vmatpush1.bf16.msra.mxu1 %v9689_v43 }
 0x499   :  { %3816 = vmatprep.subr.bf16.mxu0 %v9693_v54  ;;  %3857 = vmatprep.subr.bf16.mxu1 %v9695_v39 }
 0x49c   :  { %3817 = vmatpush1.bf16.msra.mxu0 %v9699_v44  ;;  %3858 = vmatpush1.bf16.msra.mxu1 %v9701_v58 }
 0x49d   :  { %3818 = vmatprep.subr.bf16.mxu0 %v9705_v7  ;;  %3859 = vmatprep.subr.bf16.mxu1 %v9707_v9 }
 0x4a0   :  { %3819 = vmatpush1.bf16.msra.mxu0 %v9711_v0  ;;  %3860 = vmatpush1.bf16.msra.mxu1 %v9713_v4 }
 0x4a1   :  { %3820 = vmatprep.subr.bf16.mxu0 %v9717_v60  ;;  %3861 = vmatprep.subr.bf16.mxu1 %v9719_v10 }
 0x4a4   :  { %3821 = vmatpush1.bf16.msra.mxu0 %v9723_v5  ;;  %3862 = vmatpush1.bf16.msra.mxu1 %v9725_v14 }
 0x4a5   :  { %3822 = vmatprep.subr.bf16.mxu0 %v9729_v62  ;;  %3863 = vmatprep.subr.bf16.mxu1 %v9731_v59 }
 0x4a8   :  { %3823 = vmatpush1.bf16.msra.mxu0 %v9735_v15  ;;  %3864 = vmatpush1.bf16.msra.mxu1 %v9737_v17 }
 0x4a9   :  { %3824 = vmatprep.subr.bf16.mxu0 %v9741_v63  ;;  %3865 = vmatprep.subr.bf16.mxu1 %v9743_v61 }
 0x4ac   :  { %3825 = vmatpush1.bf16.msra.mxu0 %v9747_v2  ;;  %3866 = vmatpush1.bf16.msra.mxu1 %v9749_v16 }
 0x4ad   :  { %3840 = vmatprep.subr.bf16.mxu0 %v9753_v33  ;;  %3881 = vmatprep.subr.bf16.mxu1 %v9755_v21 }
 0x4b0   :  { %3841 = vmatpush2.bf16.msra.mxu0 %v9759_v23  ;;  %3882 = vmatpush2.bf16.msra.mxu1 %v9761_v12 }
 0x4b1   :  { %4322 = vmatprep.subr.bf16.mxu0 %v9769_v13  ;;  %4363 = vmatprep.subr.bf16.mxu1 %v9771_v6 }
 0x4b3   :  { %3843 = vmatmul.mubr.bf16.vlgmr.msra.gmra.mxu0 %v9659_v42  ;;  %3884 = vmatmul.mubr.bf16.vlgmr.msra.gmra.mxu1 %v9659_v42  ;;  %v9823_v42 = vld [vmem:[#allocation10 + $0x68] ss:$16 sps:$4 sm:$0xff]  }
 0x4b4   :  { %4323 = vmatpush1.bf16.msra.mxu0 %v9773_v11  ;;  %4364 = vmatpush1.bf16.msra.mxu1 %v9775_v19  ;;  %10943 = vst [vmem:[#allocation37_spill] sm:$0xff] %v9823_v42 }
 0x4b5   :  { %4324 = vmatprep.subr.bf16.mxu0 %v9781_v20  ;;  %4365 = vmatprep.subr.bf16.mxu1 %v9783_v24 }
 0x4b8   :  { %4325 = vmatpush1.bf16.msra.mxu0 %v9785_v25  ;;  %4366 = vmatpush1.bf16.msra.mxu1 %v9787_v26 }
 0x4b9   :  { %4326 = vmatprep.subr.bf16.mxu0 %v9793_v27  ;;  %4367 = vmatprep.subr.bf16.mxu1 %v9795_v28 }
 0x4bc   :  { %4327 = vmatpush1.bf16.msra.mxu0 %v9797_v29  ;;  %4368 = vmatpush1.bf16.msra.mxu1 %v9799_v30 }
 0x4bd   :  { %4328 = vmatprep.subr.bf16.mxu0 %v9805_v31  ;;  %4369 = vmatprep.subr.bf16.mxu1 %v9807_v34  ;;  %v9921_v34 = vld [vmem:[#allocation10 + $0x144] ss:$16 sps:$4 sm:$0xff]   ;;  %v9924_v31 = vld [vmem:[#allocation10 + $0x14c] ss:$16 sps:$4 sm:$0xff]  }
 0x4be   :  { %10976 = vst [vmem:[#allocation70_spill] sm:$0xff] %v9921_v34  ;;  %10977 = vst [vmem:[#allocation71_spill] sm:$0xff] %v9924_v31 }
 0x4c0   :  { %4329 = vmatpush1.bf16.msra.mxu0 %v9809_v35  ;;  %4370 = vmatpush1.bf16.msra.mxu1 %v9811_v36  ;;  %v9833_v36 = vld [vmem:[#allocation10 + $0x40] ss:$16 sps:$4 sm:$0xff]   ;;  %v9835_v35 = vld [vmem:[#allocation10 + $0x48] ss:$16 sps:$4 sm:$0xff]  }
 0x4c1   :  { %4330 = vmatprep.subr.bf16.mxu0 %v9817_v37  ;;  %4371 = vmatprep.subr.bf16.mxu1 %v9819_v40  ;;  %10946 = vst [vmem:[#allocation40_spill] sm:$0xff] %v9833_v36  ;;  %10947 = vst [vmem:[#allocation41_spill] sm:$0xff] %v9835_v35  ;;  %v9841_v40 = vld [vmem:[#allocation10 + $0x24] ss:$16 sps:$4 sm:$0xff]   ;;  %v9847_v37 = vld [vmem:[#allocation10 + $0x28] ss:$16 sps:$4 sm:$0xff]  }
 0x4c2   :  { %10948 = vst [vmem:[#allocation42_spill] sm:$0xff] %v9841_v40  ;;  %10951 = vst [vmem:[#allocation45_spill] sm:$0xff] %v9847_v37 }
 0x4c4   :  { %4331 = vmatpush1.bf16.msra.mxu0 %v9821_v46  ;;  %4372 = vmatpush1.bf16.msra.mxu1 %v9823_v42  ;;  %v9843_v46 = vld [vmem:[#allocation10 + $0x2c] ss:$16 sps:$4 sm:$0xff]   ;;  %v9845_v42 = vld [vmem:[#allocation10 + $0x20] ss:$16 sps:$4 sm:$0xff]  }
 0x4c5   :  { %4332 = vmatprep.subr.bf16.mxu0 %v9829_v50  ;;  %4373 = vmatprep.subr.bf16.mxu1 %v9831_v49  ;;  %10949 = vst [vmem:[#allocation43_spill] sm:$0xff] %v9843_v46  ;;  %10950 = vst [vmem:[#allocation44_spill] sm:$0xff] %v9845_v42  ;;  %v9853_v49 = vld [vmem:[#allocation10 + $0x4] ss:$16 sps:$4 sm:$0xff]   ;;  %v9859_v50 = vld [vmem:[#allocation10 + $0x8] ss:$16 sps:$4 sm:$0xff]  }
 0x4c6   :  { %10952 = vst [vmem:[#allocation46_spill] sm:$0xff] %v9853_v49  ;;  %10955 = vst [vmem:[#allocation49_spill] sm:$0xff] %v9859_v50 }
 0x4c8   :  { %4333 = vmatpush1.bf16.msra.mxu0 %v9833_v36  ;;  %4374 = vmatpush1.bf16.msra.mxu1 %v9835_v35  ;;  %v9855_v36 = vld [vmem:[#allocation10 + $0xc] ss:$16 sps:$4 sm:$0xff]   ;;  %v9857_v35 = vld [vmem:[#allocation10] ss:$16 sps:$4 sm:$0xff]  }
 0x4c9   :  { %4334 = vmatprep.subr.bf16.mxu0 %v9841_v40  ;;  %4375 = vmatprep.subr.bf16.mxu1 %v9843_v46  ;;  %10953 = vst [vmem:[#allocation47_spill] sm:$0xff] %v9855_v36  ;;  %10954 = vst [vmem:[#allocation48_spill] sm:$0xff] %v9857_v35  ;;  %v9865_v46 = vld [vmem:[#allocation10 + $0x1e4] ss:$16 sps:$4 sm:$0xff]   ;;  %v9871_v40 = vld [vmem:[#allocation10 + $0x1e8] ss:$16 sps:$4 sm:$0xff]  }
 0x4ca   :  { %10956 = vst [vmem:[#allocation50_spill] sm:$0xff] %v9865_v46  ;;  %10959 = vst [vmem:[#allocation53_spill] sm:$0xff] %v9871_v40 }
 0x4cc   :  { %4335 = vmatpush1.bf16.msra.mxu0 %v9845_v42  ;;  %4376 = vmatpush1.bf16.msra.mxu1 %v9847_v37  ;;  %v9867_v42 = vld [vmem:[#allocation10 + $0x1ec] ss:$16 sps:$4 sm:$0xff]   ;;  %v9869_v37 = vld [vmem:[#allocation10 + $0x1e0] ss:$16 sps:$4 sm:$0xff]  }
 0x4cd   :  { %4336 = vmatprep.subr.bf16.mxu0 %v9853_v49  ;;  %4377 = vmatprep.subr.bf16.mxu1 %v9855_v36  ;;  %10957 = vst [vmem:[#allocation51_spill] sm:$0xff] %v9867_v42  ;;  %10958 = vst [vmem:[#allocation52_spill] sm:$0xff] %v9869_v37  ;;  %v9877_v36 = vld [vmem:[#allocation10 + $0x1c4] ss:$16 sps:$4 sm:$0xff]   ;;  %v9883_v49 = vld [vmem:[#allocation10 + $0x1c8] ss:$16 sps:$4 sm:$0xff]  }
 0x4ce   :  { %10960 = vst [vmem:[#allocation54_spill] sm:$0xff] %v9877_v36  ;;  %10963 = vst [vmem:[#allocation57_spill] sm:$0xff] %v9883_v49 }
 0x4d0   :  { %4337 = vmatpush1.bf16.msra.mxu0 %v9857_v35  ;;  %4378 = vmatpush1.bf16.msra.mxu1 %v9859_v50  ;;  %v9879_v35 = vld [vmem:[#allocation10 + $0x1cc] ss:$16 sps:$4 sm:$0xff]   ;;  %v9881_v50 = vld [vmem:[#allocation10 + $0x1c0] ss:$16 sps:$4 sm:$0xff]  }
 0x4d1   :  { %4338 = vmatprep.subr.bf16.mxu0 %v9865_v46  ;;  %4379 = vmatprep.subr.bf16.mxu1 %v9867_v42  ;;  %10961 = vst [vmem:[#allocation55_spill] sm:$0xff] %v9879_v35  ;;  %10962 = vst [vmem:[#allocation56_spill] sm:$0xff] %v9881_v50  ;;  %v9889_v42 = vld [vmem:[#allocation10 + $0x1a4] ss:$16 sps:$4 sm:$0xff]   ;;  %v9895_v46 = vld [vmem:[#allocation10 + $0x1a8] ss:$16 sps:$4 sm:$0xff]  }
 0x4d2   :  { %10964 = vst [vmem:[#allocation58_spill] sm:$0xff] %v9889_v42  ;;  %10967 = vst [vmem:[#allocation61_spill] sm:$0xff] %v9895_v46 }
 0x4d4   :  { %4339 = vmatpush2.bf16.msra.mxu0 %v9869_v37  ;;  %4380 = vmatpush2.bf16.msra.mxu1 %v9871_v40  ;;  %v9891_v37 = vld [vmem:[#allocation10 + $0x1ac] ss:$16 sps:$4 sm:$0xff]   ;;  %v9893_v40 = vld [vmem:[#allocation10 + $0x1a0] ss:$16 sps:$4 sm:$0xff]  }
 0x4d5   :  { %4340 = vmatprep.subr.bf16.mxu0 %v9877_v36  ;;  %4381 = vmatprep.subr.bf16.mxu1 %v9879_v35  ;;  %10965 = vst [vmem:[#allocation59_spill] sm:$0xff] %v9891_v37  ;;  %10966 = vst [vmem:[#allocation60_spill] sm:$0xff] %v9893_v40  ;;  %v9901_v35 = vld [vmem:[#allocation10 + $0x184] ss:$16 sps:$4 sm:$0xff]   ;;  %v9907_v36 = vld [vmem:[#allocation10 + $0x188] ss:$16 sps:$4 sm:$0xff]  }
 0x4d6   :  { %10968 = vst [vmem:[#allocation62_spill] sm:$0xff] %v9901_v35  ;;  %10971 = vst [vmem:[#allocation65_spill] sm:$0xff] %v9907_v36 }
 0x4d8   :  { %4341 = vmatpush2.bf16.msra.mxu0 %v9881_v50  ;;  %4382 = vmatpush2.bf16.msra.mxu1 %v9883_v49  ;;  %v9903_v50 = vld [vmem:[#allocation10 + $0x18c] ss:$16 sps:$4 sm:$0xff]   ;;  %v9905_v49 = vld [vmem:[#allocation10 + $0x180] ss:$16 sps:$4 sm:$0xff]  }
 0x4d9   :  { %4342 = vmatprep.subr.bf16.mxu0 %v9889_v42  ;;  %4383 = vmatprep.subr.bf16.mxu1 %v9891_v37  ;;  %10969 = vst [vmem:[#allocation63_spill] sm:$0xff] %v9903_v50  ;;  %10970 = vst [vmem:[#allocation64_spill] sm:$0xff] %v9905_v49  ;;  %v9913_v37 = vld [vmem:[#allocation10 + $0x160] ss:$16 sps:$4 sm:$0xff]   ;;  %v9919_v42 = vld [vmem:[#allocation10 + $0x16c] ss:$16 sps:$4 sm:$0xff]  }
 0x4da   :  { %10972 = vst [vmem:[#allocation67_spill] sm:$0xff] %v9913_v37  ;;  %10975 = vst [vmem:[#allocation68_spill] sm:$0xff] %v9919_v42 }
 0x4dc   :  { %4343 = vmatpush2.bf16.msra.mxu0 %v9893_v40  ;;  %4384 = vmatpush2.bf16.msra.mxu1 %v9895_v46  ;;  %v9915_v40 = vld [vmem:[#allocation10 + $0x164] ss:$16 sps:$4 sm:$0xff]   ;;  %v9917_v46 = vld [vmem:[#allocation10 + $0x168] ss:$16 sps:$4 sm:$0xff]  }
 0x4dd   :  { %4344 = vmatprep.subr.bf16.mxu0 %v9901_v35  ;;  %4385 = vmatprep.subr.bf16.mxu1 %v9903_v50  ;;  %10973 = vst [vmem:[#allocation69_spill] sm:$0xff] %v9915_v40  ;;  %10974 = vst [vmem:[#allocation66_spill] sm:$0xff] %v9917_v46  ;;  %v9935_v50 = vld [vmem:[#allocation10 + $0x124] ss:$16 sps:$4 sm:$0xff]   ;;  %v9937_v35 = vld [vmem:[#allocation10 + $0x12c] ss:$16 sps:$4 sm:$0xff]  }
 0x4de   :  { %10980 = vst [vmem:[#allocation74_spill] sm:$0xff] %v9935_v50  ;;  %10981 = vst [vmem:[#allocation75_spill] sm:$0xff] %v9937_v35 }
 0x4e0   :  { %4345 = vmatpush2.bf16.msra.mxu0 %v9905_v49  ;;  %4386 = vmatpush2.bf16.msra.mxu1 %v9907_v36  ;;  %v9929_v36 = vld [vmem:[#allocation10 + $0x140] ss:$16 sps:$4 sm:$0xff]   ;;  %v9931_v49 = vld [vmem:[#allocation10 + $0x148] ss:$16 sps:$4 sm:$0xff]  }
 0x4e1   :  { %4346 = vmatprep.subr.bf16.mxu0 %v9915_v40  ;;  %4387 = vmatprep.subr.bf16.mxu1 %v9919_v42  ;;  %10978 = vst [vmem:[#allocation72_spill] sm:$0xff] %v9929_v36  ;;  %10979 = vst [vmem:[#allocation73_spill] sm:$0xff] %v9931_v49  ;;  %v9941_v42 = vld [vmem:[#allocation10 + $0x120] ss:$16 sps:$4 sm:$0xff]  }
 0x4e2   :  { %10982 = vst [vmem:[#allocation76_spill] sm:$0xff] %v9941_v42 }
 0x4e4   :  { %4347 = vmatpush2.bf16.msra.mxu0 %v9913_v37  ;;  %4388 = vmatpush2.bf16.msra.mxu1 %v9917_v46  ;;  %v9943_v37 = vld [vmem:[#allocation10 + $0x128] ss:$16 sps:$4 sm:$0xff]   ;;  %v9947_v46 = vld [vmem:[#allocation10 + $0x104] ss:$16 sps:$4 sm:$0xff]  }
 0x4e5   :  { %4348 = vmatprep.subr.bf16.mxu0 %v9921_v34  ;;  %4389 = vmatprep.subr.bf16.mxu1 %v9924_v31  ;;  %10983 = vst [vmem:[#allocation77_spill] sm:$0xff] %v9943_v37  ;;  %10984 = vst [vmem:[#allocation78_spill] sm:$0xff] %v9947_v46  ;;  %v9949_v34 = vld [vmem:[#allocation10 + $0x10c] ss:$16 sps:$4 sm:$0xff]   ;;  %v9953_v31 = vld [vmem:[#allocation10 + $0x100] ss:$16 sps:$4 sm:$0xff]  }
 0x4e6   :  { %10985 = vst [vmem:[#allocation79_spill] sm:$0xff] %v9949_v34  ;;  %10986 = vst [vmem:[#allocation80_spill] sm:$0xff] %v9953_v31 }
 0x4e8   :  { %4349 = vmatpush2.bf16.msra.mxu0 %v9929_v36  ;;  %4390 = vmatpush2.bf16.msra.mxu1 %v9931_v49  ;;  %v9955_v36 = vld [vmem:[#allocation10 + $0x108] ss:$16 sps:$4 sm:$0xff]  }
 0x4e9   :  { %4350 = vmatprep.subr.bf16.mxu0 %v9935_v50  ;;  %4391 = vmatprep.subr.bf16.mxu1 %v9937_v35  ;;  %10987 = vst [vmem:[#allocation81_spill] sm:$0xff] %v9955_v36 }
 0x4ec   :  { %4351 = vmatpush2.bf16.msra.mxu0 %v9941_v42  ;;  %4392 = vmatpush2.bf16.msra.mxu1 %v9943_v37  ;;  %v7412_v37 = vld [vmem:[%s10589_s5 + $0x4] sm:$0xf] }
 0x4ed   :  { %4352 = vmatprep.subr.bf16.mxu0 %v9947_v46  ;;  %4393 = vmatprep.subr.bf16.mxu1 %v9949_v34  ;;  %v3122_v42 = vrot.slane %v7412_v37, %v10797_v1  ;;  %v3126_v35 = vrot.slane %v7412_v37, %v10798_v3  ;;  %v3134_v25 = vrot.slane %v7412_v37, %v9120_v41 }
 0x4f0   :  { %4353 = vmatpush2.bf16.msra.mxu0 %v9953_v31  ;;  %4394 = vmatpush2.bf16.msra.mxu1 %v9955_v36  ;;  %v3130_v36 = vrot.slane %v7412_v37, %v10799_v8 }
 0x4f1   :  { %4673 = vmatprep.subr.bf16.mxu0 %v9631_v22  ;;  %4714 = vmatprep.subr.bf16.mxu1 %v9633_v57 }
 0x54f   :  { %v3493_v50 = vpop.f32.mrf.mxu0  ;;  %v3534_v46 = vpop.f32.mrf.mxu1 }
 0x550   :  { %v3494_v49 = vadd.f32 %v3493_v50, %v3122_v42  ;;  %v3535_v26 = vadd.f32 %v3534_v46, %v3130_v36 }
 0x551   :  { %v3495_v34 = vpop.f32.mrf.mxu0  ;;  %v3536_v40 = vpop.f32.mrf.mxu1 }
 0x552   :  { %v3546_v31 = vmul.f32 0.5, %v3494_v49  ;;  %v3496_v30 = vadd.f32 %v3495_v34, %v3126_v35  ;;  %v3537_v24 = vadd.f32 %v3536_v40, %v3134_v25  ;;  %v3605_v25 = vld [vmem:[%s10589_s5] sm:$0xf] }
 0x553   :  { %v3497_v22 = vpop.f32.mrf.mxu0  ;;  %v3538_v29 = vpop.f32.mrf.mxu1  ;;  %v3618_v40 = vrot.slane %v3605_v25, %v10799_v8 }
 0x554   :  { %8571 = vtanh.f32 %v3546_v31  ;;  %v3541_v57 = vmul.f32 0.5, %v3496_v30  ;;  %v3553_v20 = vmul.f32 0.5, %v3537_v24  ;;  %v3610_v24 = vrot.slane %v3605_v25, %v10797_v1 }
 0x555   :  { %v3498_v28 = vpop.f32.mrf.mxu0  ;;  %v3539_v27 = vpop.f32.mrf.mxu1 }
 0x556   :  { %8573 = vtanh.f32 %v3541_v57  ;;  %v3614_v27 = vrot.slane %v3605_v25, %v10798_v3 }
 0x557   :  { %8575 = vtanh.f32 %v3535_v26 }
 0x558   :  { %8577 = vtanh.f32 %v3553_v20 }
 0x561   :  { %v8572_v42 = vpop.eup %8571 }
 0x562   :  { %v3548_v50 = vmul.f32 0.5, %v8572_v42 }
 0x563   :  { %v8574_v19 = vpop.eup %8573 }
 0x564   :  { %v3549_v49 = vadd.f32 0.5, %v3548_v50  ;;  %v3543_v11 = vmul.f32 0.5, %v8574_v19  ;;  %v8576_v35 = vpop.eup %8575 }
 0x565   :  { %v8578_v26 = vpop.eup %8577 }
 0x566   :  { %v3544_v34 = vadd.f32 0.5, %v3543_v11  ;;  %v3551_v30 = vmul.f32 %v8576_v35, %v3549_v49  ;;  %v3555_v11 = vmul.f32 0.5, %v8578_v26 }
 0x568   :  { %v3545_v29 = vmul.f32 %v3544_v34, %v9645_v45  ;;  %v3556_v42 = vadd.f32 0.5, %v3555_v11 }
 0x56a   :  { %v9971_v28 = vadd.f32 %v3551_v30, %v3545_v29 }
 0x56c   :  { %10988 = vst [vmem:[#allocation82_spill] sm:$0xff] %v9971_v28  ;;  %8579 = vtanh.f32 %v9971_v28 }
 0x573   :  { %v3844_v19 = vpop.f32.mrf.mxu0  ;;  %v3885_v20 = vpop.f32.mrf.mxu1 }
 0x574   :  { %v3845_v31 = vadd.f32 %v3844_v19, %v3610_v24  ;;  %v3886_v30 = vadd.f32 %v3885_v20, %v3618_v40  ;;  %v3622_v24 = vrot.slane %v3605_v25, %v9120_v41 }
 0x575   :  { %v3846_v36 = vpop.f32.mrf.mxu0  ;;  %v3887_v45 = vpop.f32.mrf.mxu1 }
 0x576   :  { %v3897_v37 = vmul.f32 0.5, %v3845_v31  ;;  %v3847_v46 = vadd.f32 %v3846_v36, %v3614_v27  ;;  %v3888_v26 = vadd.f32 %v3887_v45, %v3622_v24  ;;  %v11028_v24 = vld [vmem:[#allocation59_spill] sm:$0xff] }
 0x577   :  { %v3848_v22 = vpop.f32.mrf.mxu0  ;;  %v3889_v57 = vpop.f32.mrf.mxu1 }
 0x578   :  { %8581 = vtanh.f32 %v3897_v37  ;;  %v3892_v50 = vmul.f32 0.5, %v3847_v46  ;;  %v3904_v19 = vmul.f32 0.5, %v3888_v26  ;;  %v11029_v26 = vld [vmem:[#allocation60_spill] sm:$0xff] }
 0x579   :  { %v8580_v49 = vpop.eup %8579  ;;  %v3849_v34 = vpop.f32.mrf.mxu0 }
 0x57a   :  { %v3890_v35 = vpop.f32.mrf.mxu1  ;;  %v3558_v29 = vmul.f32 %v8580_v49, %v3556_v42  ;;  %8583 = vtanh.f32 %v3892_v50  ;;  %v4427_v49 = vld [vmem:[#allocation2 + $0x28] sm:$0xff] }
 0x57b   :  { %8585 = vtanh.f32 %v3886_v30  ;;  %v11027_v30 = vld [vmem:[#allocation58_spill] sm:$0xff] }
 0x57c   :  { %3562 = vst [vmem:[#allocation11 + $0x18] sm:$0xff] %v3558_v29  ;;  %8587 = vtanh.f32 %v3904_v19  ;;  %v3978_v35 = vpack.c.bf16 %v3558_v29, %v3558_v29  ;;  %v11026_v29 = vld [vmem:[#allocation57_spill] sm:$0xff] }
 0x57d   :  { %v11030_v19 = vld [vmem:[#allocation61_spill] sm:$0xff] }
 0x585   :  { %v8582_v31 = vpop.eup %8581 }
 0x586   :  { %v3899_v28 = vmul.f32 0.5, %v8582_v31  ;;  %v11031_v31 = vld [vmem:[#allocation62_spill] sm:$0xff] }
 0x587   :  { %v8584_v27 = vpop.eup %8583 }
 0x588   :  { %v3900_v36 = vadd.f32 0.5, %v3899_v28  ;;  %v3894_v22 = vmul.f32 0.5, %v8584_v27  ;;  %v8586_v37 = vpop.eup %8585  ;;  %v4467_v28 = vpack.c.bf16 %v4427_v49, %v4427_v49  ;;  %v11032_v27 = vld [vmem:[#allocation63_spill] sm:$0xff] }
 0x589   :  { %v8588_v20 = vpop.eup %8587  ;;  %v11044_v49 = vld [vmem:[#allocation75_spill] sm:$0xff] }
 0x58a   :  { %v3895_v11 = vadd.f32 0.5, %v3894_v22  ;;  %v3902_v57 = vmul.f32 %v8586_v37, %v3900_v36  ;;  %v3906_v25 = vmul.f32 0.5, %v8588_v20  ;;  %v11033_v36 = vld [vmem:[#allocation64_spill] sm:$0xff]  ;;  %v11034_v22 = vld [vmem:[#allocation65_spill] sm:$0xff]  ;;  %v11039_v20 = vld [vmem:[#allocation70_spill] sm:$0xff] }
 0x58b   :  { %v11036_v37 = vld [vmem:[#allocation68_spill] sm:$0xff] }
 0x58c   :  { %v3896_v46 = vmul.f32 %v3895_v11, %v9656_v32  ;;  %v3907_v40 = vadd.f32 0.5, %v3906_v25  ;;  %v10989_v32 = vld [vmem:[#allocation20_spill] sm:$0xff]  ;;  %v11035_v11 = vld [vmem:[#allocation69_spill] sm:$0xff]  ;;  %v11040_v25 = vld [vmem:[#allocation71_spill] sm:$0xff] }
 0x58e   :  { %v9982_v42 = vadd.f32 %v3902_v57, %v3896_v46  ;;  %v11037_v46 = vld [vmem:[#allocation67_spill] sm:$0xff]  ;;  %v11038_v57 = vld [vmem:[#allocation66_spill] sm:$0xff] }
 0x590   :  { %8589 = vtanh.f32 %v9982_v42 }
 0x59d   :  { %v8590_v45 = vpop.eup %8589 }
 0x59e   :  { %v3909_v50 = vmul.f32 %v8590_v45, %v3907_v40  ;;  %v11041_v40 = vld [vmem:[#allocation72_spill] sm:$0xff]  ;;  %v11042_v45 = vld [vmem:[#allocation73_spill] sm:$0xff] }
 0x5a0   :  { %v3979_v34 = vpack.c.bf16 %v3909_v50, %v3909_v50  ;;  %v11043_v50 = vld [vmem:[#allocation74_spill] sm:$0xff] }
 0x5a2   :  { %4354 = vmatprep.mubr.bf16.mxu0 %v3979_v34  ;;  %4395 = vmatprep.mubr.bf16.mxu1 %v3979_v34 }
 0x5a3   :  { %4355 = vmatmul.mubr.bf16.vlgmr.msra.gmra.mxu0 %v3978_v35  ;;  %4396 = vmatmul.mubr.bf16.vlgmr.msra.gmra.mxu1 %v3978_v35  ;;  %v11046_v35 = vld [vmem:[#allocation77_spill] sm:$0xff] }
 0x5a4   :  { %4674 = vmatpush1.bf16.msra.mxu0 %v9661_v48  ;;  %4715 = vmatpush1.bf16.msra.mxu1 %v9663_v47  ;;  %v10990_v48 = vld [vmem:[#allocation21_spill] sm:$0xff]  ;;  %v10991_v47 = vld [vmem:[#allocation22_spill] sm:$0xff] }
 0x5a5   :  { %4675 = vmatprep.subr.bf16.mxu0 %v9665_v51  ;;  %4716 = vmatprep.subr.bf16.mxu1 %v9667_v18  ;;  %v10992_v51 = vld [vmem:[#allocation23_spill] sm:$0xff]  ;;  %v10993_v18 = vld [vmem:[#allocation24_spill] sm:$0xff] }
 0x5a6   :  { %7616 = vmatprep.mubr.msk.bf16.mxu0 %vm352_vm0, %v4467_v28  ;;  %7617 = vmatprep.mubr.msk.bf16.mxu1 %vm352_vm0, %v4467_v28  ;;  %v11047_v28 = vld [vmem:[#allocation78_spill] sm:$0xff] }
 0x5a8   :  { %4676 = vmatpush1.bf16.msra.mxu0 %v9673_v53  ;;  %4717 = vmatpush1.bf16.msra.mxu1 %v9675_v55  ;;  %v10994_v53 = vld [vmem:[#allocation25_spill] sm:$0xff]  ;;  %v10995_v55 = vld [vmem:[#allocation26_spill] sm:$0xff] }
 0x5a9   :  { %4677 = vmatprep.subr.bf16.mxu0 %v9679_v56  ;;  %4718 = vmatprep.subr.bf16.mxu1 %v9681_v52  ;;  %v10996_v56 = vld [vmem:[#allocation27_spill] sm:$0xff]  ;;  %v10997_v52 = vld [vmem:[#allocation28_spill] sm:$0xff] }
 0x5ac   :  { %4678 = vmatpush1.bf16.msra.mxu0 %v9687_v38  ;;  %4719 = vmatpush1.bf16.msra.mxu1 %v9689_v43  ;;  %v10998_v38 = vld [vmem:[#allocation29_spill] sm:$0xff]  ;;  %v10999_v43 = vld [vmem:[#allocation30_spill] sm:$0xff] }
 0x5ad   :  { %4679 = vmatprep.subr.bf16.mxu0 %v9693_v54  ;;  %4720 = vmatprep.subr.bf16.mxu1 %v9695_v39  ;;  %v11000_v54 = vld [vmem:[#allocation31_spill] sm:$0xff]  ;;  %v11001_v39 = vld [vmem:[#allocation32_spill] sm:$0xff] }
 0x5b0   :  { %4680 = vmatpush1.bf16.msra.mxu0 %v9699_v44  ;;  %4721 = vmatpush1.bf16.msra.mxu1 %v9701_v58  ;;  %v11002_v44 = vld [vmem:[#allocation33_spill] sm:$0xff]  ;;  %v11003_v58 = vld [vmem:[#allocation34_spill] sm:$0xff] }
 0x5b1   :  { %4681 = vmatprep.subr.bf16.mxu0 %v9705_v7  ;;  %4722 = vmatprep.subr.bf16.mxu1 %v9707_v9  ;;  %v11004_v7 = vld [vmem:[#allocation35_spill] sm:$0xff]  ;;  %v11005_v9 = vld [vmem:[#allocation36_spill] sm:$0xff] }
 0x5b4   :  { %4682 = vmatpush1.bf16.msra.mxu0 %v9711_v0  ;;  %4723 = vmatpush1.bf16.msra.mxu1 %v9713_v4  ;;  %v11006_v0 = vld [vmem:[#allocation37_spill] sm:$0xff]  ;;  %v11007_v4 = vld [vmem:[#allocation38_spill] sm:$0xff] }
 0x5b5   :  { %4683 = vmatprep.subr.bf16.mxu0 %v9717_v60  ;;  %4724 = vmatprep.subr.bf16.mxu1 %v9719_v10  ;;  %v11008_v60 = vld [vmem:[#allocation39_spill] sm:$0xff]  ;;  %v11009_v10 = vld [vmem:[#allocation40_spill] sm:$0xff] }
 0x5b8   :  { %4684 = vmatpush1.bf16.msra.mxu0 %v9723_v5  ;;  %4725 = vmatpush1.bf16.msra.mxu1 %v9725_v14  ;;  %v11010_v5 = vld [vmem:[#allocation41_spill] sm:$0xff]  ;;  %v11011_v14 = vld [vmem:[#allocation42_spill] sm:$0xff] }
 0x5b9   :  { %4685 = vmatprep.subr.bf16.mxu0 %v9729_v62  ;;  %4726 = vmatprep.subr.bf16.mxu1 %v9731_v59  ;;  %v11012_v62 = vld [vmem:[#allocation43_spill] sm:$0xff]  ;;  %v11013_v59 = vld [vmem:[#allocation44_spill] sm:$0xff] }
 0x5bc   :  { %4686 = vmatpush1.bf16.msra.mxu0 %v9735_v15  ;;  %4727 = vmatpush1.bf16.msra.mxu1 %v9737_v17  ;;  %v11014_v15 = vld [vmem:[#allocation45_spill] sm:$0xff]  ;;  %v11015_v17 = vld [vmem:[#allocation46_spill] sm:$0xff] }
 0x5bd   :  { %4687 = vmatprep.subr.bf16.mxu0 %v9741_v63  ;;  %4728 = vmatprep.subr.bf16.mxu1 %v9743_v61  ;;  %v11016_v63 = vld [vmem:[#allocation47_spill] sm:$0xff]  ;;  %v11017_v61 = vld [vmem:[#allocation48_spill] sm:$0xff] }
 0x5c0   :  { %4688 = vmatpush1.bf16.msra.mxu0 %v9747_v2  ;;  %4729 = vmatpush1.bf16.msra.mxu1 %v9749_v16  ;;  %v11018_v2 = vld [vmem:[#allocation49_spill] sm:$0xff]  ;;  %v11019_v16 = vld [vmem:[#allocation50_spill] sm:$0xff] }
 0x5c1   :  { %4703 = vmatprep.subr.bf16.mxu0 %v9753_v33  ;;  %4744 = vmatprep.subr.bf16.mxu1 %v9755_v21  ;;  %v11020_v33 = vld [vmem:[#allocation51_spill] sm:$0xff]  ;;  %v11021_v21 = vld [vmem:[#allocation52_spill] sm:$0xff] }
 0x5c4   :  { %4704 = vmatpush2.bf16.msra.mxu0 %v9759_v23  ;;  %4745 = vmatpush2.bf16.msra.mxu1 %v9761_v12  ;;  %v11022_v23 = vld [vmem:[#allocation53_spill] sm:$0xff]  ;;  %v11023_v12 = vld [vmem:[#allocation54_spill] sm:$0xff] }
 0x5c5   :  { %5185 = vmatprep.subr.bf16.mxu0 %v9769_v13  ;;  %5226 = vmatprep.subr.bf16.mxu1 %v9771_v6  ;;  %v11024_v13 = vld [vmem:[#allocation55_spill] sm:$0xff]  ;;  %v11025_v6 = vld [vmem:[#allocation56_spill] sm:$0xff] }
 0x5c7   :  { %4706 = vmatmul.mubr.bf16.vlgmr.msra.gmra.mxu0 %v3979_v34  ;;  %4747 = vmatmul.mubr.bf16.vlgmr.msra.gmra.mxu1 %v3979_v34  ;;  %v11045_v34 = vld [vmem:[#allocation76_spill] sm:$0xff] }
 0x5c8   :  { %5186 = vmatpush1.bf16.msra.mxu0 %v10989_v32  ;;  %5227 = vmatpush1.bf16.msra.mxu1 %v10990_v48  ;;  %v11048_v32 = vld [vmem:[#allocation79_spill] sm:$0xff]  ;;  %v11049_v48 = vld [vmem:[#allocation80_spill] sm:$0xff] }
 0x5c9   :  { %5187 = vmatprep.subr.bf16.mxu0 %v10991_v47  ;;  %5228 = vmatprep.subr.bf16.mxu1 %v10992_v51  ;;  %v11050_v47 = vld [vmem:[#allocation81_spill] sm:$0xff]  ;;  %v10085_v51 = vld [vmem:[#allocation8 + $0xe4] ss:$16 sps:$4 sm:$0xff]  }
 0x5cc   :  { %5188 = vmatpush1.bf16.msra.mxu0 %v10993_v18  ;;  %5229 = vmatpush1.bf16.msra.mxu1 %v10994_v53  ;;  %v10087_v18 = vld [vmem:[#allocation8 + $0xec] ss:$16 sps:$4 sm:$0xff]   ;;  %v7515_v53 = vld [vmem:[%s10589_s5 + $0x4] sm:$0xf] }
 0x5cd   :  { %5189 = vmatprep.subr.bf16.mxu0 %v10995_v55  ;;  %5230 = vmatprep.subr.bf16.mxu1 %v10996_v56  ;;  %v3985_v55 = vrot.slane %v7515_v53, %v10797_v1  ;;  %v3989_v56 = vrot.slane %v7515_v53, %v10798_v3 }
 0x5d0   :  { %5190 = vmatpush1.bf16.msra.mxu0 %v10997_v52  ;;  %5231 = vmatpush1.bf16.msra.mxu1 %v10998_v38 }
 0x5d1   :  { %5191 = vmatprep.subr.bf16.mxu0 %v10999_v43  ;;  %5232 = vmatprep.subr.bf16.mxu1 %v11000_v54 }
 0x5d4   :  { %5192 = vmatpush1.bf16.msra.mxu0 %v11001_v39  ;;  %5233 = vmatpush1.bf16.msra.mxu1 %v11002_v44 }
 0x5d5   :  { %5193 = vmatprep.subr.bf16.mxu0 %v11003_v58  ;;  %5234 = vmatprep.subr.bf16.mxu1 %v11004_v7  ;;  %v3993_v58 = vrot.slane %v7515_v53, %v10799_v8 }
 0x5d8   :  { %5194 = vmatpush1.bf16.msra.mxu0 %v11005_v9  ;;  %5235 = vmatpush1.bf16.msra.mxu1 %v11006_v0 }
 0x5d9   :  { %5195 = vmatprep.subr.bf16.mxu0 %v11007_v4  ;;  %5236 = vmatprep.subr.bf16.mxu1 %v11008_v60 }
 0x5dc   :  { %5196 = vmatpush1.bf16.msra.mxu0 %v11009_v10  ;;  %5237 = vmatpush1.bf16.msra.mxu1 %v11010_v5 }
 0x5dd   :  { %5197 = vmatprep.subr.bf16.mxu0 %v11011_v14  ;;  %5238 = vmatprep.subr.bf16.mxu1 %v11012_v62  ;;  %v3997_v14 = vrot.slane %v7515_v53, %v9120_v41 }
 0x5e0   :  { %5198 = vmatpush1.bf16.msra.mxu0 %v11013_v59  ;;  %5239 = vmatpush1.bf16.msra.mxu1 %v11014_v15 }
 0x5e1   :  { %5199 = vmatprep.subr.bf16.mxu0 %v11015_v17  ;;  %5240 = vmatprep.subr.bf16.mxu1 %v11016_v63 }
 0x5e4   :  { %5200 = vmatpush1.bf16.msra.mxu0 %v11017_v61  ;;  %5241 = vmatpush1.bf16.msra.mxu1 %v11018_v2 }
 0x5e5   :  { %5201 = vmatprep.subr.bf16.mxu0 %v11019_v16  ;;  %5242 = vmatprep.subr.bf16.mxu1 %v11020_v33 }
 0x5e8   :  { %5202 = vmatpush2.bf16.msra.mxu0 %v11021_v21  ;;  %5243 = vmatpush2.bf16.msra.mxu1 %v11022_v23  ;;  %v11051_v21 = vld [vmem:[#allocation82_spill] sm:$0xff] }
 0x5e9   :  { %5203 = vmatprep.subr.bf16.mxu0 %v11023_v12  ;;  %5244 = vmatprep.subr.bf16.mxu1 %v11024_v13 }
 0x5ec   :  { %5204 = vmatpush2.bf16.msra.mxu0 %v11025_v6  ;;  %5245 = vmatpush2.bf16.msra.mxu1 %v11026_v29  ;;  %v4468_v6 = vld [vmem:[%s10589_s5] sm:$0xf] }
 0x5ed   :  { %5205 = vmatprep.subr.bf16.mxu0 %v11027_v30  ;;  %5246 = vmatprep.subr.bf16.mxu1 %v11028_v24  ;;  %v4473_v29 = vrot.slane %v4468_v6, %v10797_v1  ;;  %v4477_v24 = vrot.slane %v4468_v6, %v10798_v3 }
 0x5f0   :  { %5206 = vmatpush2.bf16.msra.mxu0 %v11029_v26  ;;  %5247 = vmatpush2.bf16.msra.mxu1 %v11030_v19 }
 0x5f1   :  { %5207 = vmatprep.subr.bf16.mxu0 %v11031_v31  ;;  %5248 = vmatprep.subr.bf16.mxu1 %v11032_v27 }
 0x5f4   :  { %5208 = vmatpush2.bf16.msra.mxu0 %v11033_v36  ;;  %5249 = vmatpush2.bf16.msra.mxu1 %v11034_v22 }
 0x5f5   :  { %5209 = vmatprep.subr.bf16.mxu0 %v11035_v11  ;;  %5250 = vmatprep.subr.bf16.mxu1 %v11036_v37  ;;  %v4481_v37 = vrot.slane %v4468_v6, %v10799_v8 }
 0x5f8   :  { %5210 = vmatpush2.bf16.msra.mxu0 %v11037_v46  ;;  %5251 = vmatpush2.bf16.msra.mxu1 %v11038_v57 }
 0x5f9   :  { %5211 = vmatprep.subr.bf16.mxu0 %v11039_v20  ;;  %5252 = vmatprep.subr.bf16.mxu1 %v11040_v25 }
 0x5fc   :  { %5212 = vmatpush2.bf16.msra.mxu0 %v11041_v40  ;;  %5253 = vmatpush2.bf16.msra.mxu1 %v11042_v45 }
 0x5fd   :  { %5213 = vmatprep.subr.bf16.mxu0 %v11043_v50  ;;  %5254 = vmatprep.subr.bf16.mxu1 %v11044_v49 }
 0x600   :  { %5214 = vmatpush2.bf16.msra.mxu0 %v11045_v34  ;;  %5255 = vmatpush2.bf16.msra.mxu1 %v11046_v35 }
 0x601   :  { %5215 = vmatprep.subr.bf16.mxu0 %v11047_v28  ;;  %5256 = vmatprep.subr.bf16.mxu1 %v11048_v32  ;;  %v4485_v28 = vrot.slane %v4468_v6, %v9120_v41  ;;  %v10155_v6 = vld [vmem:[#allocation8 + $0x88] ss:$16 sps:$4 sm:$0xff]  }
 0x604   :  { %5216 = vmatpush2.bf16.msra.mxu0 %v11049_v48  ;;  %5257 = vmatpush2.bf16.msra.mxu1 %v11050_v47 }
 0x605   :  { %5536 = vmatprep.subr.bf16.mxu0 %v10085_v51  ;;  %5577 = vmatprep.subr.bf16.mxu1 %v10087_v18 }
 0x663   :  { %v4356_v52 = vpop.f32.mrf.mxu0  ;;  %v4397_v38 = vpop.f32.mrf.mxu1 }
 0x664   :  { %v4357_v43 = vadd.f32 %v4356_v52, %v3985_v55  ;;  %v4398_v5 = vadd.f32 %v4397_v38, %v3993_v58 }
 0x665   :  { %v4358_v54 = vpop.f32.mrf.mxu0  ;;  %v4399_v39 = vpop.f32.mrf.mxu1 }
 0x666   :  { %v4409_v44 = vmul.f32 0.5, %v4357_v43  ;;  %v4359_v7 = vadd.f32 %v4358_v54, %v3989_v56  ;;  %v4400_v62 = vadd.f32 %v4399_v39, %v3997_v14  ;;  %v10117_v14 = vld [vmem:[#allocation8 + $0xe8] ss:$16 sps:$4 sm:$0xff]  }
 0x667   :  { %v4360_v9 = vpop.f32.mrf.mxu0  ;;  %v4401_v0 = vpop.f32.mrf.mxu1 }
 0x668   :  { %8591 = vtanh.f32 %v4409_v44  ;;  %v4404_v4 = vmul.f32 0.5, %v4359_v7  ;;  %v4416_v59 = vmul.f32 0.5, %v4400_v62 }
 0x669   :  { %v4361_v60 = vpop.f32.mrf.mxu0  ;;  %v4402_v10 = vpop.f32.mrf.mxu1 }
 0x66a   :  { %8593 = vtanh.f32 %v4404_v4  ;;  %v5290_v60 = vld [vmem:[#allocation2 + $0x30] sm:$0xff] }
 0x66b   :  { %8595 = vtanh.f32 %v4398_v5  ;;  %v10115_v5 = vld [vmem:[#allocation8 + $0xe0] ss:$16 sps:$4 sm:$0xff]  }
 0x66c   :  { %8597 = vtanh.f32 %v4416_v59  ;;  %v10119_v59 = vld [vmem:[#allocation8 + $0xc4] ss:$16 sps:$4 sm:$0xff]  }
 0x675   :  { %v8592_v15 = vpop.eup %8591 }
 0x676   :  { %v4411_v17 = vmul.f32 0.5, %v8592_v15  ;;  %v5330_v15 = vpack.c.bf16 %v5290_v60, %v5290_v60  ;;  %v10275_v60 = vld [vmem:[#allocation10 + $0x60] ss:$16 sps:$4 sm:$0xff]  }
 0x677   :  { %v8594_v63 = vpop.eup %8593  ;;  %11068 = vst [vmem:[#allocation36_spill] sm:$0xff] %v10275_v60 }
 0x678   :  { %v4412_v61 = vadd.f32 0.5, %v4411_v17  ;;  %v4406_v2 = vmul.f32 0.5, %v8594_v63  ;;  %v8596_v33 = vpop.eup %8595  ;;  %v10127_v17 = vld [vmem:[#allocation8 + $0xc0] ss:$16 sps:$4 sm:$0xff]   ;;  %v10129_v63 = vld [vmem:[#allocation8 + $0xc8] ss:$16 sps:$4 sm:$0xff]  }
 0x679   :  { %v8598_v30 = vpop.eup %8597 }
 0x67a   :  { %v4407_v16 = vadd.f32 0.5, %v4406_v2  ;;  %v4414_v12 = vmul.f32 %v8596_v33, %v4412_v61  ;;  %v4418_v31 = vmul.f32 0.5, %v8598_v30  ;;  %v10133_v61 = vld [vmem:[#allocation8 + $0xa4] ss:$16 sps:$4 sm:$0xff]   ;;  %v10135_v2 = vld [vmem:[#allocation8 + $0xac] ss:$16 sps:$4 sm:$0xff]  }
 0x67b   :  { %v10143_v33 = vld [vmem:[#allocation8 + $0xa8] ss:$16 sps:$4 sm:$0xff]   ;;  %v10161_v30 = vld [vmem:[#allocation8 + $0x6c] ss:$16 sps:$4 sm:$0xff]  }
 0x67c   :  { %v4408_v23 = vmul.f32 %v4407_v16, %v11051_v21  ;;  %v4419_v25 = vadd.f32 0.5, %v4418_v31  ;;  %v10141_v16 = vld [vmem:[#allocation8 + $0xa0] ss:$16 sps:$4 sm:$0xff]   ;;  %v10147_v21 = vld [vmem:[#allocation8 + $0x84] ss:$16 sps:$4 sm:$0xff]  }
 0x67d   :  { %v10173_v31 = vld [vmem:[#allocation8 + $0x4c] ss:$16 sps:$4 sm:$0xff]  }
 0x67e   :  { %v10099_v13 = vadd.f32 %v4414_v12, %v4408_v23  ;;  %v10149_v23 = vld [vmem:[#allocation8 + $0x8c] ss:$16 sps:$4 sm:$0xff]   ;;  %v10153_v12 = vld [vmem:[#allocation8 + $0x80] ss:$16 sps:$4 sm:$0xff]  }
 0x680   :  { %8599 = vtanh.f32 %v10099_v13 }
 0x687   :  { %v4707_v26 = vpop.f32.mrf.mxu0  ;;  %v4748_v19 = vpop.f32.mrf.mxu1 }
 0x688   :  { %v4708_v27 = vadd.f32 %v4707_v26, %v4473_v29  ;;  %v4749_v35 = vadd.f32 %v4748_v19, %v4481_v37  ;;  %v10159_v29 = vld [vmem:[#allocation8 + $0x64] ss:$16 sps:$4 sm:$0xff]   ;;  %v10167_v26 = vld [vmem:[#allocation8 + $0x68] ss:$16 sps:$4 sm:$0xff]   ;;  %v10189_v37 = vld [vmem:[#allocation8 + $0x20] ss:$16 sps:$4 sm:$0xff]  }
 0x689   :  { %v4709_v36 = vpop.f32.mrf.mxu0  ;;  %v4750_v22 = vpop.f32.mrf.mxu1  ;;  %v10171_v19 = vld [vmem:[#allocation8 + $0x44] ss:$16 sps:$4 sm:$0xff]  }
 0x68a   :  { %v4760_v11 = vmul.f32 0.5, %v4708_v27  ;;  %v4710_v46 = vadd.f32 %v4709_v36, %v4477_v24  ;;  %v4751_v32 = vadd.f32 %v4750_v22, %v4485_v28  ;;  %v10165_v24 = vld [vmem:[#allocation8 + $0x60] ss:$16 sps:$4 sm:$0xff]   ;;  %v10179_v36 = vld [vmem:[#allocation8 + $0x48] ss:$16 sps:$4 sm:$0xff]  }
 0x68b   :  { %v4711_v57 = vpop.f32.mrf.mxu0  ;;  %v4752_v20 = vpop.f32.mrf.mxu1  ;;  %v10177_v27 = vld [vmem:[#allocation8 + $0x40] ss:$16 sps:$4 sm:$0xff]   ;;  %v10183_v22 = vld [vmem:[#allocation8 + $0x24] ss:$16 sps:$4 sm:$0xff]   ;;  %v10225_v28 = vld [vmem:[#allocation10 + $0xec] ss:$16 sps:$4 sm:$0xff]  }
 0x68c   :  { %8601 = vtanh.f32 %v4760_v11  ;;  %v4755_v40 = vmul.f32 0.5, %v4710_v46  ;;  %v4767_v48 = vmul.f32 0.5, %v4751_v32  ;;  %v10185_v11 = vld [vmem:[#allocation8 + $0x2c] ss:$16 sps:$4 sm:$0xff]   ;;  %v10191_v46 = vld [vmem:[#allocation8 + $0x28] ss:$16 sps:$4 sm:$0xff]  }
 0x68d   :  { %v8600_v45 = vpop.eup %8599  ;;  %v4712_v50 = vpop.f32.mrf.mxu0  ;;  %v10195_v57 = vld [vmem:[#allocation8 + $0x4] ss:$16 sps:$4 sm:$0xff]   ;;  %v10197_v20 = vld [vmem:[#allocation8 + $0xc] ss:$16 sps:$4 sm:$0xff]   ;;  %v10227_v32 = vld [vmem:[#allocation10 + $0xe0] ss:$16 sps:$4 sm:$0xff]  }
 0x68e   :  { %v4753_v49 = vpop.f32.mrf.mxu1  ;;  %v4421_v34 = vmul.f32 %v8600_v45, %v4419_v25  ;;  %8603 = vtanh.f32 %v4755_v40  ;;  %v10201_v25 = vld [vmem:[#allocation8] ss:$16 sps:$4 sm:$0xff]   ;;  %v10203_v40 = vld [vmem:[#allocation8 + $0x8] ss:$16 sps:$4 sm:$0xff]   ;;  %v10207_v45 = vld [vmem:[#allocation8 + $0x104] ss:$16 sps:$4 sm:$0xff]  }
 0x68f   :  { %8605 = vtanh.f32 %v4749_v35  ;;  %v10209_v50 = vld [vmem:[#allocation8 + $0x10c] ss:$16 sps:$4 sm:$0xff]   ;;  %v10213_v49 = vld [vmem:[#allocation8 + $0x100] ss:$16 sps:$4 sm:$0xff]   ;;  %v10223_v35 = vld [vmem:[#allocation10 + $0xe4] ss:$16 sps:$4 sm:$0xff]  }
 0x690   :  { %4425 = vst [vmem:[#allocation11 + $0x20] sm:$0xff] %v4421_v34  ;;  %8607 = vtanh.f32 %v4767_v48  ;;  %v4841_v62 = vpack.c.bf16 %v4421_v34, %v4421_v34  ;;  %v10215_v34 = vld [vmem:[#allocation8 + $0x108] ss:$16 sps:$4 sm:$0xff]   ;;  %11052 = vst [vmem:[#allocation20_spill] sm:$0xff] %v10227_v32 }
 0x691   :  { %v10229_v48 = vld [vmem:[#allocation10 + $0xe8] ss:$16 sps:$4 sm:$0xff]  }
 0x692   :  { %11053 = vst [vmem:[#allocation21_spill] sm:$0xff] %v10229_v48 }
 0x699   :  { %v8602_v47 = vpop.eup %8601 }
 0x69a   :  { %v4762_v53 = vmul.f32 0.5, %v8602_v47  ;;  %v10235_v47 = vld [vmem:[#allocation10 + $0xc4] ss:$16 sps:$4 sm:$0xff]  }
 0x69b   :  { %v8604_v55 = vpop.eup %8603  ;;  %11054 = vst [vmem:[#allocation22_spill] sm:$0xff] %v10235_v47 }
 0x69c   :  { %v4763_v56 = vadd.f32 0.5, %v4762_v53  ;;  %v4757_v52 = vmul.f32 0.5, %v8604_v55  ;;  %v8606_v43 = vpop.eup %8605  ;;  %v10237_v53 = vld [vmem:[#allocation10 + $0xcc] ss:$16 sps:$4 sm:$0xff]   ;;  %v10239_v55 = vld [vmem:[#allocation10 + $0xc0] ss:$16 sps:$4 sm:$0xff]  }
 0x69d   :  { %v8608_v58 = vpop.eup %8607  ;;  %11055 = vst [vmem:[#allocation23_spill] sm:$0xff] %v10237_v53  ;;  %11056 = vst [vmem:[#allocation24_spill] sm:$0xff] %v10239_v55 }
 0x69e   :  { %v4758_v38 = vadd.f32 0.5, %v4757_v52  ;;  %v4765_v39 = vmul.f32 %v8606_v43, %v4763_v56  ;;  %v4769_v7 = vmul.f32 0.5, %v8608_v58  ;;  %v10241_v56 = vld [vmem:[#allocation10 + $0xc8] ss:$16 sps:$4 sm:$0xff]   ;;  %v10247_v52 = vld [vmem:[#allocation10 + $0xa4] ss:$16 sps:$4 sm:$0xff]  }
 0x69f   :  { %11057 = vst [vmem:[#allocation25_spill] sm:$0xff] %v10241_v56  ;;  %11058 = vst [vmem:[#allocation26_spill] sm:$0xff] %v10247_v52  ;;  %v10251_v43 = vld [vmem:[#allocation10 + $0xa0] ss:$16 sps:$4 sm:$0xff]   ;;  %v10261_v58 = vld [vmem:[#allocation10 + $0x8c] ss:$16 sps:$4 sm:$0xff]  }
 0x6a0   :  { %v4759_v54 = vmul.f32 %v4758_v38, %v9982_v42  ;;  %v4770_v9 = vadd.f32 0.5, %v4769_v7  ;;  %v10121_v42 = vld [vmem:[#allocation8 + $0xcc] ss:$16 sps:$4 sm:$0xff]   ;;  %11060 = vst [vmem:[#allocation28_spill] sm:$0xff] %v10251_v43  ;;  %11063 = vst [vmem:[#allocation31_spill] sm:$0xff] %v10261_v58 }
 0x6a1   :  { %v10249_v38 = vld [vmem:[#allocation10 + $0xac] ss:$16 sps:$4 sm:$0xff]   ;;  %v10263_v7 = vld [vmem:[#allocation10 + $0x80] ss:$16 sps:$4 sm:$0xff]  }
 0x6a2   :  { %v10110_v44 = vadd.f32 %v4765_v39, %v4759_v54  ;;  %11059 = vst [vmem:[#allocation27_spill] sm:$0xff] %v10249_v38  ;;  %v10253_v54 = vld [vmem:[#allocation10 + $0xa8] ss:$16 sps:$4 sm:$0xff]   ;;  %v10259_v39 = vld [vmem:[#allocation10 + $0x84] ss:$16 sps:$4 sm:$0xff]   ;;  %11064 = vst [vmem:[#allocation32_spill] sm:$0xff] %v10263_v7 }
 0x6a3   :  { %11061 = vst [vmem:[#allocation29_spill] sm:$0xff] %v10253_v54  ;;  %11062 = vst [vmem:[#allocation30_spill] sm:$0xff] %v10259_v39 }
 0x6a4   :  { %8609 = vtanh.f32 %v10110_v44 }
 0x6b1   :  { %v8610_v0 = vpop.eup %8609 }
 0x6b2   :  { %v4772_v4 = vmul.f32 %v8610_v0, %v4770_v9  ;;  %v10265_v9 = vld [vmem:[#allocation10 + $0x88] ss:$16 sps:$4 sm:$0xff]   ;;  %v10271_v0 = vld [vmem:[#allocation10 + $0x64] ss:$16 sps:$4 sm:$0xff]  }
 0x6b3   :  { %11065 = vst [vmem:[#allocation33_spill] sm:$0xff] %v10265_v9  ;;  %11066 = vst [vmem:[#allocation34_spill] sm:$0xff] %v10271_v0 }
 0x6b4   :  { %v10113_v10 = vpack.c.bf16 %v4772_v4, %v4772_v4  ;;  %v10273_v4 = vld [vmem:[#allocation10 + $0x6c] ss:$16 sps:$4 sm:$0xff]  }
 0x6b5   :  { %11067 = vst [vmem:[#allocation35_spill] sm:$0xff] %v10273_v4 }
 0x6b6   :  { %5217 = vmatprep.mubr.bf16.mxu0 %v10113_v10  ;;  %5258 = vmatprep.mubr.bf16.mxu1 %v10113_v10 }
 0x6b7   :  { %5218 = vmatmul.mubr.bf16.vlgmr.msra.gmra.mxu0 %v4841_v62  ;;  %5259 = vmatmul.mubr.bf16.vlgmr.msra.gmra.mxu1 %v4841_v62  ;;  %v10283_v62 = vld [vmem:[#allocation10 + $0x44] ss:$16 sps:$4 sm:$0xff]  }
 0x6b8   :  { %5537 = vmatpush1.bf16.msra.mxu0 %v10115_v5  ;;  %5578 = vmatpush1.bf16.msra.mxu1 %v10117_v14  ;;  %11070 = vst [vmem:[#allocation38_spill] sm:$0xff] %v10283_v62 }
 0x6b9   :  { %5538 = vmatprep.subr.bf16.mxu0 %v10119_v59  ;;  %5579 = vmatprep.subr.bf16.mxu1 %v10121_v42 }
 0x6ba   :  { %7719 = vmatprep.mubr.msk.bf16.mxu0 %vm352_vm0, %v5330_v15  ;;  %7720 = vmatprep.mubr.msk.bf16.mxu1 %vm352_vm0, %v5330_v15  ;;  %v10285_v15 = vld [vmem:[#allocation10 + $0x4c] ss:$16 sps:$4 sm:$0xff]  }
 0x6bb   :  { %11071 = vst [vmem:[#allocation39_spill] sm:$0xff] %v10285_v15 }
 0x6bc   :  { %5539 = vmatpush1.bf16.msra.mxu0 %v10127_v17  ;;  %5580 = vmatpush1.bf16.msra.mxu1 %v10129_v63 }
 0x6bd   :  { %5540 = vmatprep.subr.bf16.mxu0 %v10133_v61  ;;  %5581 = vmatprep.subr.bf16.mxu1 %v10135_v2 }
 0x6c0   :  { %5541 = vmatpush1.bf16.msra.mxu0 %v10141_v16  ;;  %5582 = vmatpush1.bf16.msra.mxu1 %v10143_v33 }
 0x6c1   :  { %5542 = vmatprep.subr.bf16.mxu0 %v10147_v21  ;;  %5583 = vmatprep.subr.bf16.mxu1 %v10149_v23 }
 0x6c4   :  { %5543 = vmatpush1.bf16.msra.mxu0 %v10153_v12  ;;  %5584 = vmatpush1.bf16.msra.mxu1 %v10155_v6 }
 0x6c5   :  { %5544 = vmatprep.subr.bf16.mxu0 %v10159_v29  ;;  %5585 = vmatprep.subr.bf16.mxu1 %v10161_v30 }
 0x6c8   :  { %5545 = vmatpush1.bf16.msra.mxu0 %v10165_v24  ;;  %5586 = vmatpush1.bf16.msra.mxu1 %v10167_v26 }
 0x6c9   :  { %5546 = vmatprep.subr.bf16.mxu0 %v10171_v19  ;;  %5587 = vmatprep.subr.bf16.mxu1 %v10173_v31 }
 0x6cc   :  { %5547 = vmatpush1.bf16.msra.mxu0 %v10177_v27  ;;  %5588 = vmatpush1.bf16.msra.mxu1 %v10179_v36 }
 0x6cd   :  { %5548 = vmatprep.subr.bf16.mxu0 %v10183_v22  ;;  %5589 = vmatprep.subr.bf16.mxu1 %v10185_v11 }
 0x6d0   :  { %5549 = vmatpush1.bf16.msra.mxu0 %v10189_v37  ;;  %5590 = vmatpush1.bf16.msra.mxu1 %v10191_v46 }
 0x6d1   :  { %5550 = vmatprep.subr.bf16.mxu0 %v10195_v57  ;;  %5591 = vmatprep.subr.bf16.mxu1 %v10197_v20 }
 0x6d4   :  { %5551 = vmatpush1.bf16.msra.mxu0 %v10201_v25  ;;  %5592 = vmatpush1.bf16.msra.mxu1 %v10203_v40 }
 0x6d5   :  { %5566 = vmatprep.subr.bf16.mxu0 %v10207_v45  ;;  %5607 = vmatprep.subr.bf16.mxu1 %v10209_v50 }
 0x6d8   :  { %5567 = vmatpush2.bf16.msra.mxu0 %v10213_v49  ;;  %5608 = vmatpush2.bf16.msra.mxu1 %v10215_v34 }
 0x6d9   :  { %6048 = vmatprep.subr.bf16.mxu0 %v10223_v35  ;;  %6089 = vmatprep.subr.bf16.mxu1 %v10225_v28 }
 0x6db   :  { %5569 = vmatmul.mubr.bf16.vlgmr.msra.gmra.mxu0 %v10113_v10  ;;  %5610 = vmatmul.mubr.bf16.vlgmr.msra.gmra.mxu1 %v10113_v10  ;;  %v10277_v10 = vld [vmem:[#allocation10 + $0x68] ss:$16 sps:$4 sm:$0xff]  }
 0x6dc   :  { %6049 = vmatpush1.bf16.msra.mxu0 %v10227_v32  ;;  %6090 = vmatpush1.bf16.msra.mxu1 %v10229_v48  ;;  %11069 = vst [vmem:[#allocation37_spill] sm:$0xff] %v10277_v10 }
 0x6dd   :  { %6050 = vmatprep.subr.bf16.mxu0 %v10235_v47  ;;  %6091 = vmatprep.subr.bf16.mxu1 %v10237_v53 }
 0x6e0   :  { %6051 = vmatpush1.bf16.msra.mxu0 %v10239_v55  ;;  %6092 = vmatpush1.bf16.msra.mxu1 %v10241_v56 }
 0x6e1   :  { %6052 = vmatprep.subr.bf16.mxu0 %v10247_v52  ;;  %6093 = vmatprep.subr.bf16.mxu1 %v10249_v38 }
 0x6e4   :  { %6053 = vmatpush1.bf16.msra.mxu0 %v10251_v43  ;;  %6094 = vmatpush1.bf16.msra.mxu1 %v10253_v54 }
 0x6e5   :  { %6054 = vmatprep.subr.bf16.mxu0 %v10259_v39  ;;  %6095 = vmatprep.subr.bf16.mxu1 %v10261_v58  ;;  %v10375_v58 = vld [vmem:[#allocation10 + $0x144] ss:$16 sps:$4 sm:$0xff]   ;;  %v10378_v39 = vld [vmem:[#allocation10 + $0x14c] ss:$16 sps:$4 sm:$0xff]  }
 0x6e6   :  { %11102 = vst [vmem:[#allocation70_spill] sm:$0xff] %v10375_v58  ;;  %11103 = vst [vmem:[#allocation71_spill] sm:$0xff] %v10378_v39 }
 0x6e8   :  { %6055 = vmatpush1.bf16.msra.mxu0 %v10263_v7  ;;  %6096 = vmatpush1.bf16.msra.mxu1 %v10265_v9  ;;  %v10287_v9 = vld [vmem:[#allocation10 + $0x40] ss:$16 sps:$4 sm:$0xff]   ;;  %v10289_v7 = vld [vmem:[#allocation10 + $0x48] ss:$16 sps:$4 sm:$0xff]  }
 0x6e9   :  { %6056 = vmatprep.subr.bf16.mxu0 %v10271_v0  ;;  %6097 = vmatprep.subr.bf16.mxu1 %v10273_v4  ;;  %11072 = vst [vmem:[#allocation40_spill] sm:$0xff] %v10287_v9  ;;  %11073 = vst [vmem:[#allocation41_spill] sm:$0xff] %v10289_v7  ;;  %v10295_v4 = vld [vmem:[#allocation10 + $0x24] ss:$16 sps:$4 sm:$0xff]   ;;  %v10301_v0 = vld [vmem:[#allocation10 + $0x28] ss:$16 sps:$4 sm:$0xff]  }
 0x6ea   :  { %11074 = vst [vmem:[#allocation42_spill] sm:$0xff] %v10295_v4  ;;  %11077 = vst [vmem:[#allocation45_spill] sm:$0xff] %v10301_v0 }
 0x6ec   :  { %6057 = vmatpush1.bf16.msra.mxu0 %v10275_v60  ;;  %6098 = vmatpush1.bf16.msra.mxu1 %v10277_v10  ;;  %v10297_v60 = vld [vmem:[#allocation10 + $0x2c] ss:$16 sps:$4 sm:$0xff]   ;;  %v10299_v10 = vld [vmem:[#allocation10 + $0x20] ss:$16 sps:$4 sm:$0xff]  }
 0x6ed   :  { %6058 = vmatprep.subr.bf16.mxu0 %v10283_v62  ;;  %6099 = vmatprep.subr.bf16.mxu1 %v10285_v15  ;;  %11075 = vst [vmem:[#allocation43_spill] sm:$0xff] %v10297_v60  ;;  %11076 = vst [vmem:[#allocation44_spill] sm:$0xff] %v10299_v10  ;;  %v10307_v15 = vld [vmem:[#allocation10 + $0x4] ss:$16 sps:$4 sm:$0xff]   ;;  %v10313_v62 = vld [vmem:[#allocation10 + $0x8] ss:$16 sps:$4 sm:$0xff]  }
 0x6ee   :  { %11078 = vst [vmem:[#allocation46_spill] sm:$0xff] %v10307_v15  ;;  %11081 = vst [vmem:[#allocation49_spill] sm:$0xff] %v10313_v62 }
 0x6f0   :  { %6059 = vmatpush1.bf16.msra.mxu0 %v10287_v9  ;;  %6100 = vmatpush1.bf16.msra.mxu1 %v10289_v7  ;;  %v10309_v9 = vld [vmem:[#allocation10 + $0xc] ss:$16 sps:$4 sm:$0xff]   ;;  %v10311_v7 = vld [vmem:[#allocation10] ss:$16 sps:$4 sm:$0xff]  }
 0x6f1   :  { %6060 = vmatprep.subr.bf16.mxu0 %v10295_v4  ;;  %6101 = vmatprep.subr.bf16.mxu1 %v10297_v60  ;;  %11079 = vst [vmem:[#allocation47_spill] sm:$0xff] %v10309_v9  ;;  %11080 = vst [vmem:[#allocation48_spill] sm:$0xff] %v10311_v7  ;;  %v10319_v60 = vld [vmem:[#allocation10 + $0x1e4] ss:$16 sps:$4 sm:$0xff]   ;;  %v10325_v4 = vld [vmem:[#allocation10 + $0x1e8] ss:$16 sps:$4 sm:$0xff]  }
 0x6f2   :  { %11082 = vst [vmem:[#allocation50_spill] sm:$0xff] %v10319_v60  ;;  %11085 = vst [vmem:[#allocation53_spill] sm:$0xff] %v10325_v4 }
 0x6f4   :  { %6061 = vmatpush1.bf16.msra.mxu0 %v10299_v10  ;;  %6102 = vmatpush1.bf16.msra.mxu1 %v10301_v0  ;;  %v10321_v10 = vld [vmem:[#allocation10 + $0x1ec] ss:$16 sps:$4 sm:$0xff]   ;;  %v10323_v0 = vld [vmem:[#allocation10 + $0x1e0] ss:$16 sps:$4 sm:$0xff]  }
 0x6f5   :  { %6062 = vmatprep.subr.bf16.mxu0 %v10307_v15  ;;  %6103 = vmatprep.subr.bf16.mxu1 %v10309_v9  ;;  %11083 = vst [vmem:[#allocation51_spill] sm:$0xff] %v10321_v10  ;;  %11084 = vst [vmem:[#allocation52_spill] sm:$0xff] %v10323_v0  ;;  %v10331_v9 = vld [vmem:[#allocation10 + $0x1c4] ss:$16 sps:$4 sm:$0xff]   ;;  %v10337_v15 = vld [vmem:[#allocation10 + $0x1c8] ss:$16 sps:$4 sm:$0xff]  }
 0x6f6   :  { %11086 = vst [vmem:[#allocation54_spill] sm:$0xff] %v10331_v9  ;;  %11089 = vst [vmem:[#allocation57_spill] sm:$0xff] %v10337_v15 }
 0x6f8   :  { %6063 = vmatpush1.bf16.msra.mxu0 %v10311_v7  ;;  %6104 = vmatpush1.bf16.msra.mxu1 %v10313_v62  ;;  %v10333_v7 = vld [vmem:[#allocation10 + $0x1cc] ss:$16 sps:$4 sm:$0xff]   ;;  %v10335_v62 = vld [vmem:[#allocation10 + $0x1c0] ss:$16 sps:$4 sm:$0xff]  }
 0x6f9   :  { %6064 = vmatprep.subr.bf16.mxu0 %v10319_v60  ;;  %6105 = vmatprep.subr.bf16.mxu1 %v10321_v10  ;;  %11087 = vst [vmem:[#allocation55_spill] sm:$0xff] %v10333_v7  ;;  %11088 = vst [vmem:[#allocation56_spill] sm:$0xff] %v10335_v62  ;;  %v10343_v10 = vld [vmem:[#allocation10 + $0x1a4] ss:$16 sps:$4 sm:$0xff]   ;;  %v10349_v60 = vld [vmem:[#allocation10 + $0x1a8] ss:$16 sps:$4 sm:$0xff]  }
 0x6fa   :  { %11090 = vst [vmem:[#allocation58_spill] sm:$0xff] %v10343_v10  ;;  %11093 = vst [vmem:[#allocation61_spill] sm:$0xff] %v10349_v60 }
 0x6fc   :  { %6065 = vmatpush2.bf16.msra.mxu0 %v10323_v0  ;;  %6106 = vmatpush2.bf16.msra.mxu1 %v10325_v4  ;;  %v10345_v0 = vld [vmem:[#allocation10 + $0x1ac] ss:$16 sps:$4 sm:$0xff]   ;;  %v10347_v4 = vld [vmem:[#allocation10 + $0x1a0] ss:$16 sps:$4 sm:$0xff]  }
 0x6fd   :  { %6066 = vmatprep.subr.bf16.mxu0 %v10331_v9  ;;  %6107 = vmatprep.subr.bf16.mxu1 %v10333_v7  ;;  %11091 = vst [vmem:[#allocation59_spill] sm:$0xff] %v10345_v0  ;;  %11092 = vst [vmem:[#allocation60_spill] sm:$0xff] %v10347_v4  ;;  %v10355_v7 = vld [vmem:[#allocation10 + $0x184] ss:$16 sps:$4 sm:$0xff]   ;;  %v10361_v9 = vld [vmem:[#allocation10 + $0x188] ss:$16 sps:$4 sm:$0xff]  }
 0x6fe   :  { %11094 = vst [vmem:[#allocation62_spill] sm:$0xff] %v10355_v7  ;;  %11097 = vst [vmem:[#allocation65_spill] sm:$0xff] %v10361_v9 }
 0x700   :  { %6067 = vmatpush2.bf16.msra.mxu0 %v10335_v62  ;;  %6108 = vmatpush2.bf16.msra.mxu1 %v10337_v15  ;;  %v10357_v62 = vld [vmem:[#allocation10 + $0x18c] ss:$16 sps:$4 sm:$0xff]   ;;  %v10359_v15 = vld [vmem:[#allocation10 + $0x180] ss:$16 sps:$4 sm:$0xff]  }
 0x701   :  { %6068 = vmatprep.subr.bf16.mxu0 %v10343_v10  ;;  %6109 = vmatprep.subr.bf16.mxu1 %v10345_v0  ;;  %11095 = vst [vmem:[#allocation63_spill] sm:$0xff] %v10357_v62  ;;  %11096 = vst [vmem:[#allocation64_spill] sm:$0xff] %v10359_v15  ;;  %v10367_v0 = vld [vmem:[#allocation10 + $0x160] ss:$16 sps:$4 sm:$0xff]   ;;  %v10373_v10 = vld [vmem:[#allocation10 + $0x16c] ss:$16 sps:$4 sm:$0xff]  }
 0x702   :  { %11098 = vst [vmem:[#allocation69_spill] sm:$0xff] %v10367_v0  ;;  %11101 = vst [vmem:[#allocation66_spill] sm:$0xff] %v10373_v10 }
 0x704   :  { %6069 = vmatpush2.bf16.msra.mxu0 %v10347_v4  ;;  %6110 = vmatpush2.bf16.msra.mxu1 %v10349_v60  ;;  %v10369_v4 = vld [vmem:[#allocation10 + $0x164] ss:$16 sps:$4 sm:$0xff]   ;;  %v10371_v60 = vld [vmem:[#allocation10 + $0x168] ss:$16 sps:$4 sm:$0xff]  }
 0x705   :  { %6070 = vmatprep.subr.bf16.mxu0 %v10355_v7  ;;  %6111 = vmatprep.subr.bf16.mxu1 %v10357_v62  ;;  %11099 = vst [vmem:[#allocation68_spill] sm:$0xff] %v10369_v4  ;;  %11100 = vst [vmem:[#allocation67_spill] sm:$0xff] %v10371_v60  ;;  %v10389_v62 = vld [vmem:[#allocation10 + $0x124] ss:$16 sps:$4 sm:$0xff]   ;;  %v10391_v7 = vld [vmem:[#allocation10 + $0x12c] ss:$16 sps:$4 sm:$0xff]  }
 0x706   :  { %11106 = vst [vmem:[#allocation74_spill] sm:$0xff] %v10389_v62  ;;  %11107 = vst [vmem:[#allocation75_spill] sm:$0xff] %v10391_v7 }
 0x708   :  { %6071 = vmatpush2.bf16.msra.mxu0 %v10359_v15  ;;  %6112 = vmatpush2.bf16.msra.mxu1 %v10361_v9  ;;  %v10383_v9 = vld [vmem:[#allocation10 + $0x140] ss:$16 sps:$4 sm:$0xff]   ;;  %v10385_v15 = vld [vmem:[#allocation10 + $0x148] ss:$16 sps:$4 sm:$0xff]  }
 0x709   :  { %6072 = vmatprep.subr.bf16.mxu0 %v10369_v4  ;;  %6113 = vmatprep.subr.bf16.mxu1 %v10373_v10  ;;  %11104 = vst [vmem:[#allocation72_spill] sm:$0xff] %v10383_v9  ;;  %11105 = vst [vmem:[#allocation73_spill] sm:$0xff] %v10385_v15  ;;  %v10395_v10 = vld [vmem:[#allocation10 + $0x120] ss:$16 sps:$4 sm:$0xff]  }
 0x70a   :  { %11108 = vst [vmem:[#allocation76_spill] sm:$0xff] %v10395_v10 }
 0x70c   :  { %6073 = vmatpush2.bf16.msra.mxu0 %v10367_v0  ;;  %6114 = vmatpush2.bf16.msra.mxu1 %v10371_v60  ;;  %v10397_v0 = vld [vmem:[#allocation10 + $0x128] ss:$16 sps:$4 sm:$0xff]   ;;  %v10401_v60 = vld [vmem:[#allocation10 + $0x104] ss:$16 sps:$4 sm:$0xff]  }
 0x70d   :  { %6074 = vmatprep.subr.bf16.mxu0 %v10375_v58  ;;  %6115 = vmatprep.subr.bf16.mxu1 %v10378_v39  ;;  %11109 = vst [vmem:[#allocation77_spill] sm:$0xff] %v10397_v0  ;;  %11110 = vst [vmem:[#allocation78_spill] sm:$0xff] %v10401_v60  ;;  %v10403_v58 = vld [vmem:[#allocation10 + $0x10c] ss:$16 sps:$4 sm:$0xff]   ;;  %v10407_v39 = vld [vmem:[#allocation10 + $0x100] ss:$16 sps:$4 sm:$0xff]  }
 0x70e   :  { %11111 = vst [vmem:[#allocation79_spill] sm:$0xff] %v10403_v58  ;;  %11112 = vst [vmem:[#allocation80_spill] sm:$0xff] %v10407_v39 }
 0x710   :  { %6075 = vmatpush2.bf16.msra.mxu0 %v10383_v9  ;;  %6116 = vmatpush2.bf16.msra.mxu1 %v10385_v15  ;;  %v10409_v9 = vld [vmem:[#allocation10 + $0x108] ss:$16 sps:$4 sm:$0xff]  }
 0x711   :  { %6076 = vmatprep.subr.bf16.mxu0 %v10389_v62  ;;  %6117 = vmatprep.subr.bf16.mxu1 %v10391_v7  ;;  %11113 = vst [vmem:[#allocation81_spill] sm:$0xff] %v10409_v9 }
 0x714   :  { %6077 = vmatpush2.bf16.msra.mxu0 %v10395_v10  ;;  %6118 = vmatpush2.bf16.msra.mxu1 %v10397_v0  ;;  %v7618_v0 = vld [vmem:[%s10589_s5 + $0x4] sm:$0xf] }
 0x715   :  { %6078 = vmatprep.subr.bf16.mxu0 %v10401_v60  ;;  %6119 = vmatprep.subr.bf16.mxu1 %v10403_v58  ;;  %v4848_v10 = vrot.slane %v7618_v0, %v10797_v1  ;;  %v4852_v7 = vrot.slane %v7618_v0, %v10798_v3  ;;  %v4860_v55 = vrot.slane %v7618_v0, %v9120_v41 }
 0x718   :  { %6079 = vmatpush2.bf16.msra.mxu0 %v10407_v39  ;;  %6120 = vmatpush2.bf16.msra.mxu1 %v10409_v9  ;;  %v4856_v9 = vrot.slane %v7618_v0, %v10799_v8 }
 0x719   :  { %6399 = vmatprep.subr.bf16.mxu0 %v10085_v51  ;;  %6440 = vmatprep.subr.bf16.mxu1 %v10087_v18 }
 0x777   :  { %v5219_v62 = vpop.f32.mrf.mxu0  ;;  %v5260_v60 = vpop.f32.mrf.mxu1 }
 0x778   :  { %v5220_v15 = vadd.f32 %v5219_v62, %v4848_v10  ;;  %v5261_v56 = vadd.f32 %v5260_v60, %v4856_v9 }
 0x779   :  { %v5221_v58 = vpop.f32.mrf.mxu0  ;;  %v5262_v4 = vpop.f32.mrf.mxu1 }
 0x77a   :  { %v5272_v39 = vmul.f32 0.5, %v5220_v15  ;;  %v5222_v54 = vadd.f32 %v5221_v58, %v4852_v7  ;;  %v5263_v53 = vadd.f32 %v5262_v4, %v4860_v55  ;;  %v5331_v55 = vld [vmem:[%s10589_s5] sm:$0xf] }
 0x77b   :  { %v5223_v51 = vpop.f32.mrf.mxu0  ;;  %v5264_v43 = vpop.f32.mrf.mxu1  ;;  %v5344_v4 = vrot.slane %v5331_v55, %v10799_v8 }
 0x77c   :  { %8611 = vtanh.f32 %v5272_v39  ;;  %v5267_v18 = vmul.f32 0.5, %v5222_v54  ;;  %v5279_v47 = vmul.f32 0.5, %v5263_v53  ;;  %v5336_v53 = vrot.slane %v5331_v55, %v10797_v1 }
 0x77d   :  { %v5224_v38 = vpop.f32.mrf.mxu0  ;;  %v5265_v52 = vpop.f32.mrf.mxu1 }
 0x77e   :  { %8613 = vtanh.f32 %v5267_v18  ;;  %v5340_v52 = vrot.slane %v5331_v55, %v10798_v3 }
 0x77f   :  { %8615 = vtanh.f32 %v5261_v56 }
 0x780   :  { %8617 = vtanh.f32 %v5279_v47 }
 0x789   :  { %v8612_v10 = vpop.eup %8611 }
 0x78a   :  { %v5274_v62 = vmul.f32 0.5, %v8612_v10 }
 0x78b   :  { %v8614_v48 = vpop.eup %8613 }
 0x78c   :  { %v5275_v15 = vadd.f32 0.5, %v5274_v62  ;;  %v5269_v32 = vmul.f32 0.5, %v8614_v48  ;;  %v8616_v7 = vpop.eup %8615 }
 0x78d   :  { %v8618_v56 = vpop.eup %8617 }
 0x78e   :  { %v5270_v58 = vadd.f32 0.5, %v5269_v32  ;;  %v5277_v54 = vmul.f32 %v8616_v7, %v5275_v15  ;;  %v5281_v32 = vmul.f32 0.5, %v8618_v56 }
 0x790   :  { %v5271_v43 = vmul.f32 %v5270_v58, %v10099_v13  ;;  %v5282_v10 = vadd.f32 0.5, %v5281_v32 }
 0x792   :  { %v10425_v38 = vadd.f32 %v5277_v54, %v5271_v43 }
 0x794   :  { %11114 = vst [vmem:[#allocation82_spill] sm:$0xff] %v10425_v38  ;;  %8619 = vtanh.f32 %v10425_v38 }
 0x79b   :  { %v5570_v48 = vpop.f32.mrf.mxu0  ;;  %v5611_v47 = vpop.f32.mrf.mxu1 }
 0x79c   :  { %v5571_v39 = vadd.f32 %v5570_v48, %v5336_v53  ;;  %v5612_v54 = vadd.f32 %v5611_v47, %v5344_v4  ;;  %v5348_v53 = vrot.slane %v5331_v55, %v9120_v41 }
 0x79d   :  { %v5572_v9 = vpop.f32.mrf.mxu0  ;;  %v5613_v13 = vpop.f32.mrf.mxu1 }
 0x79e   :  { %v5623_v0 = vmul.f32 0.5, %v5571_v39  ;;  %v5573_v60 = vadd.f32 %v5572_v9, %v5340_v52  ;;  %v5614_v56 = vadd.f32 %v5613_v13, %v5348_v53  ;;  %v11154_v53 = vld [vmem:[#allocation59_spill] sm:$0xff] }
 0x79f   :  { %v5574_v51 = vpop.f32.mrf.mxu0  ;;  %v5615_v18 = vpop.f32.mrf.mxu1 }
 0x7a0   :  { %8621 = vtanh.f32 %v5623_v0  ;;  %v5618_v62 = vmul.f32 0.5, %v5573_v60  ;;  %v5630_v48 = vmul.f32 0.5, %v5614_v56  ;;  %v11155_v56 = vld [vmem:[#allocation60_spill] sm:$0xff] }
 0x7a1   :  { %v8620_v15 = vpop.eup %8619  ;;  %v5575_v58 = vpop.f32.mrf.mxu0 }
 0x7a2   :  { %v5616_v7 = vpop.f32.mrf.mxu1  ;;  %v5284_v43 = vmul.f32 %v8620_v15, %v5282_v10  ;;  %8623 = vtanh.f32 %v5618_v62  ;;  %v6153_v15 = vld [vmem:[#allocation2 + $0x38] sm:$0xff] }
 0x7a3   :  { %8625 = vtanh.f32 %v5612_v54  ;;  %v11153_v54 = vld [vmem:[#allocation58_spill] sm:$0xff] }
 0x7a4   :  { %5288 = vst [vmem:[#allocation11 + $0x28] sm:$0xff] %v5284_v43  ;;  %8627 = vtanh.f32 %v5630_v48  ;;  %v5704_v7 = vpack.c.bf16 %v5284_v43, %v5284_v43  ;;  %v11152_v43 = vld [vmem:[#allocation57_spill] sm:$0xff] }
 0x7a5   :  { %v11156_v48 = vld [vmem:[#allocation61_spill] sm:$0xff] }
 0x7ad   :  { %v8622_v39 = vpop.eup %8621 }
 0x7ae   :  { %v5625_v38 = vmul.f32 0.5, %v8622_v39  ;;  %v11157_v39 = vld [vmem:[#allocation62_spill] sm:$0xff] }
 0x7af   :  { %v8624_v52 = vpop.eup %8623 }
 0x7b0   :  { %v5626_v9 = vadd.f32 0.5, %v5625_v38  ;;  %v5620_v51 = vmul.f32 0.5, %v8624_v52  ;;  %v8626_v0 = vpop.eup %8625  ;;  %v6193_v38 = vpack.c.bf16 %v6153_v15, %v6153_v15  ;;  %v11158_v52 = vld [vmem:[#allocation63_spill] sm:$0xff] }
 0x7b1   :  { %v8628_v47 = vpop.eup %8627  ;;  %v11170_v15 = vld [vmem:[#allocation75_spill] sm:$0xff] }
 0x7b2   :  { %v5621_v32 = vadd.f32 0.5, %v5620_v51  ;;  %v5628_v18 = vmul.f32 %v8626_v0, %v5626_v9  ;;  %v5632_v55 = vmul.f32 0.5, %v8628_v47  ;;  %v11159_v9 = vld [vmem:[#allocation64_spill] sm:$0xff]  ;;  %v11160_v51 = vld [vmem:[#allocation65_spill] sm:$0xff]  ;;  %v11162_v0 = vld [vmem:[#allocation66_spill] sm:$0xff] }
 0x7b3   :  { %v11165_v47 = vld [vmem:[#allocation70_spill] sm:$0xff] }
 0x7b4   :  { %v5622_v60 = vmul.f32 %v5621_v32, %v10110_v44  ;;  %v5633_v4 = vadd.f32 0.5, %v5632_v55  ;;  %v11115_v44 = vld [vmem:[#allocation20_spill] sm:$0xff]  ;;  %v11166_v55 = vld [vmem:[#allocation71_spill] sm:$0xff] }
 0x7b5   :  { %v11161_v32 = vld [vmem:[#allocation68_spill] sm:$0xff] }
 0x7b6   :  { %v10436_v10 = vadd.f32 %v5628_v18, %v5622_v60  ;;  %v11163_v60 = vld [vmem:[#allocation69_spill] sm:$0xff]  ;;  %v11164_v18 = vld [vmem:[#allocation67_spill] sm:$0xff] }
 0x7b8   :  { %8629 = vtanh.f32 %v10436_v10 }
 0x7c5   :  { %v8630_v13 = vpop.eup %8629 }
 0x7c6   :  { %v5635_v62 = vmul.f32 %v8630_v13, %v5633_v4  ;;  %v11167_v4 = vld [vmem:[#allocation72_spill] sm:$0xff]  ;;  %v11168_v13 = vld [vmem:[#allocation73_spill] sm:$0xff] }
 0x7c8   :  { %v5705_v58 = vpack.c.bf16 %v5635_v62, %v5635_v62  ;;  %v11169_v62 = vld [vmem:[#allocation74_spill] sm:$0xff] }
 0x7ca   :  { %6080 = vmatprep.mubr.bf16.mxu0 %v5705_v58  ;;  %6121 = vmatprep.mubr.bf16.mxu1 %v5705_v58 }
 0x7cb   :  { %6081 = vmatmul.mubr.bf16.vlgmr.msra.gmra.mxu0 %v5704_v7  ;;  %6122 = vmatmul.mubr.bf16.vlgmr.msra.gmra.mxu1 %v5704_v7  ;;  %v11172_v7 = vld [vmem:[#allocation77_spill] sm:$0xff] }
 0x7cc   :  { %6400 = vmatpush1.bf16.msra.mxu0 %v10115_v5  ;;  %6441 = vmatpush1.bf16.msra.mxu1 %v10117_v14  ;;  %v11116_v5 = vld [vmem:[#allocation21_spill] sm:$0xff]  ;;  %v11117_v14 = vld [vmem:[#allocation22_spill] sm:$0xff] }
 0x7cd   :  { %6401 = vmatprep.subr.bf16.mxu0 %v10119_v59  ;;  %6442 = vmatprep.subr.bf16.mxu1 %v10121_v42  ;;  %v11118_v59 = vld [vmem:[#allocation23_spill] sm:$0xff]  ;;  %v11119_v42 = vld [vmem:[#allocation24_spill] sm:$0xff] }
 0x7ce   :  { %7822 = vmatprep.mubr.msk.bf16.mxu0 %vm352_vm0, %v6193_v38  ;;  %7823 = vmatprep.mubr.msk.bf16.mxu1 %vm352_vm0, %v6193_v38  ;;  %v11173_v38 = vld [vmem:[#allocation78_spill] sm:$0xff] }
 0x7d0   :  { %6402 = vmatpush1.bf16.msra.mxu0 %v10127_v17  ;;  %6443 = vmatpush1.bf16.msra.mxu1 %v10129_v63  ;;  %v11120_v17 = vld [vmem:[#allocation25_spill] sm:$0xff]  ;;  %v11121_v63 = vld [vmem:[#allocation26_spill] sm:$0xff] }
 0x7d1   :  { %6403 = vmatprep.subr.bf16.mxu0 %v10133_v61  ;;  %6444 = vmatprep.subr.bf16.mxu1 %v10135_v2  ;;  %v11122_v61 = vld [vmem:[#allocation27_spill] sm:$0xff]  ;;  %v11123_v2 = vld [vmem:[#allocation28_spill] sm:$0xff] }
 0x7d4   :  { %6404 = vmatpush1.bf16.msra.mxu0 %v10141_v16  ;;  %6445 = vmatpush1.bf16.msra.mxu1 %v10143_v33  ;;  %v11124_v16 = vld [vmem:[#allocation29_spill] sm:$0xff]  ;;  %v11125_v33 = vld [vmem:[#allocation30_spill] sm:$0xff] }
 0x7d5   :  { %6405 = vmatprep.subr.bf16.mxu0 %v10147_v21  ;;  %6446 = vmatprep.subr.bf16.mxu1 %v10149_v23  ;;  %v11126_v21 = vld [vmem:[#allocation31_spill] sm:$0xff]  ;;  %v11127_v23 = vld [vmem:[#allocation32_spill] sm:$0xff] }
 0x7d8   :  { %6406 = vmatpush1.bf16.msra.mxu0 %v10153_v12  ;;  %6447 = vmatpush1.bf16.msra.mxu1 %v10155_v6  ;;  %v11128_v12 = vld [vmem:[#allocation33_spill] sm:$0xff]  ;;  %v11129_v6 = vld [vmem:[#allocation34_spill] sm:$0xff] }
 0x7d9   :  { %6407 = vmatprep.subr.bf16.mxu0 %v10159_v29  ;;  %6448 = vmatprep.subr.bf16.mxu1 %v10161_v30  ;;  %v11130_v29 = vld [vmem:[#allocation35_spill] sm:$0xff]  ;;  %v11131_v30 = vld [vmem:[#allocation36_spill] sm:$0xff] }
 0x7dc   :  { %6408 = vmatpush1.bf16.msra.mxu0 %v10165_v24  ;;  %6449 = vmatpush1.bf16.msra.mxu1 %v10167_v26  ;;  %v11132_v24 = vld [vmem:[#allocation37_spill] sm:$0xff]  ;;  %v11133_v26 = vld [vmem:[#allocation38_spill] sm:$0xff] }
 0x7dd   :  { %6409 = vmatprep.subr.bf16.mxu0 %v10171_v19  ;;  %6450 = vmatprep.subr.bf16.mxu1 %v10173_v31  ;;  %v11134_v19 = vld [vmem:[#allocation39_spill] sm:$0xff]  ;;  %v11135_v31 = vld [vmem:[#allocation40_spill] sm:$0xff] }
 0x7e0   :  { %6410 = vmatpush1.bf16.msra.mxu0 %v10177_v27  ;;  %6451 = vmatpush1.bf16.msra.mxu1 %v10179_v36  ;;  %v11136_v27 = vld [vmem:[#allocation41_spill] sm:$0xff]  ;;  %v11137_v36 = vld [vmem:[#allocation42_spill] sm:$0xff] }
 0x7e1   :  { %6411 = vmatprep.subr.bf16.mxu0 %v10183_v22  ;;  %6452 = vmatprep.subr.bf16.mxu1 %v10185_v11  ;;  %v11138_v22 = vld [vmem:[#allocation43_spill] sm:$0xff]  ;;  %v11139_v11 = vld [vmem:[#allocation44_spill] sm:$0xff] }
 0x7e4   :  { %6412 = vmatpush1.bf16.msra.mxu0 %v10189_v37  ;;  %6453 = vmatpush1.bf16.msra.mxu1 %v10191_v46  ;;  %v11140_v37 = vld [vmem:[#allocation45_spill] sm:$0xff]  ;;  %v11141_v46 = vld [vmem:[#allocation46_spill] sm:$0xff] }
 0x7e5   :  { %6413 = vmatprep.subr.bf16.mxu0 %v10195_v57  ;;  %6454 = vmatprep.subr.bf16.mxu1 %v10197_v20  ;;  %v11142_v57 = vld [vmem:[#allocation47_spill] sm:$0xff]  ;;  %v11143_v20 = vld [vmem:[#allocation48_spill] sm:$0xff] }
 0x7e8   :  { %6414 = vmatpush1.bf16.msra.mxu0 %v10201_v25  ;;  %6455 = vmatpush1.bf16.msra.mxu1 %v10203_v40  ;;  %v11144_v25 = vld [vmem:[#allocation49_spill] sm:$0xff]  ;;  %v11145_v40 = vld [vmem:[#allocation50_spill] sm:$0xff] }
 0x7e9   :  { %6429 = vmatprep.subr.bf16.mxu0 %v10207_v45  ;;  %6470 = vmatprep.subr.bf16.mxu1 %v10209_v50  ;;  %v11146_v45 = vld [vmem:[#allocation51_spill] sm:$0xff]  ;;  %v11147_v50 = vld [vmem:[#allocation52_spill] sm:$0xff] }
 0x7ec   :  { %6430 = vmatpush2.bf16.msra.mxu0 %v10213_v49  ;;  %6471 = vmatpush2.bf16.msra.mxu1 %v10215_v34  ;;  %v11148_v49 = vld [vmem:[#allocation53_spill] sm:$0xff]  ;;  %v11149_v34 = vld [vmem:[#allocation54_spill] sm:$0xff] }
 0x7ed   :  { %6911 = vmatprep.subr.bf16.mxu0 %v10223_v35  ;;  %6952 = vmatprep.subr.bf16.mxu1 %v10225_v28  ;;  %v11150_v35 = vld [vmem:[#allocation55_spill] sm:$0xff]  ;;  %v11151_v28 = vld [vmem:[#allocation56_spill] sm:$0xff] }
 0x7ef   :  { %6432 = vmatmul.mubr.bf16.vlgmr.msra.gmra.mxu0 %v5705_v58  ;;  %6473 = vmatmul.mubr.bf16.vlgmr.msra.gmra.mxu1 %v5705_v58  ;;  %v11171_v58 = vld [vmem:[#allocation76_spill] sm:$0xff] }
 0x7f0   :  { %6912 = vmatpush1.bf16.msra.mxu0 %v11115_v44  ;;  %6953 = vmatpush1.bf16.msra.mxu1 %v11116_v5  ;;  %v11174_v44 = vld [vmem:[#allocation79_spill] sm:$0xff]  ;;  %v11175_v5 = vld [vmem:[#allocation80_spill] sm:$0xff] }
 0x7f1   :  { %6913 = vmatprep.subr.bf16.mxu0 %v11117_v14  ;;  %6954 = vmatprep.subr.bf16.mxu1 %v11118_v59  ;;  %v11176_v14 = vld [vmem:[#allocation81_spill] sm:$0xff]  ;;  %v7721_v59 = vld [vmem:[%s10589_s5 + $0x4] sm:$0xf] }
 0x7f4   :  { %6914 = vmatpush1.bf16.msra.mxu0 %v11119_v42  ;;  %6955 = vmatpush1.bf16.msra.mxu1 %v11120_v17  ;;  %v5711_v42 = vrot.slane %v7721_v59, %v10797_v1  ;;  %v5715_v17 = vrot.slane %v7721_v59, %v10798_v3 }
 0x7f5   :  { %6915 = vmatprep.subr.bf16.mxu0 %v11121_v63  ;;  %6956 = vmatprep.subr.bf16.mxu1 %v11122_v61 }
 0x7f8   :  { %6916 = vmatpush1.bf16.msra.mxu0 %v11123_v2  ;;  %6957 = vmatpush1.bf16.msra.mxu1 %v11124_v16 }
 0x7f9   :  { %6917 = vmatprep.subr.bf16.mxu0 %v11125_v33  ;;  %6958 = vmatprep.subr.bf16.mxu1 %v11126_v21 }
 0x7fc   :  { %6918 = vmatpush1.bf16.msra.mxu0 %v11127_v23  ;;  %6959 = vmatpush1.bf16.msra.mxu1 %v11128_v12  ;;  %v5719_v23 = vrot.slane %v7721_v59, %v10799_v8 }
 0x7fd   :  { %6919 = vmatprep.subr.bf16.mxu0 %v11129_v6  ;;  %6960 = vmatprep.subr.bf16.mxu1 %v11130_v29 }
 0x800   :  { %6920 = vmatpush1.bf16.msra.mxu0 %v11131_v30  ;;  %6961 = vmatpush1.bf16.msra.mxu1 %v11132_v24 }
 0x801   :  { %6921 = vmatprep.subr.bf16.mxu0 %v11133_v26  ;;  %6962 = vmatprep.subr.bf16.mxu1 %v11134_v19 }
 0x804   :  { %6922 = vmatpush1.bf16.msra.mxu0 %v11135_v31  ;;  %6963 = vmatpush1.bf16.msra.mxu1 %v11136_v27  ;;  %v5723_v31 = vrot.slane %v7721_v59, %v9120_v41 }
 0x805   :  { %6923 = vmatprep.subr.bf16.mxu0 %v11137_v36  ;;  %6964 = vmatprep.subr.bf16.mxu1 %v11138_v22 }
 0x808   :  { %6924 = vmatpush1.bf16.msra.mxu0 %v11139_v11  ;;  %6965 = vmatpush1.bf16.msra.mxu1 %v11140_v37 }
 0x809   :  { %6925 = vmatprep.subr.bf16.mxu0 %v11141_v46  ;;  %6966 = vmatprep.subr.bf16.mxu1 %v11142_v57 }
 0x80c   :  { %6926 = vmatpush1.bf16.msra.mxu0 %v11143_v20  ;;  %6967 = vmatpush1.bf16.msra.mxu1 %v11144_v25 }
 0x80d   :  { %6927 = vmatprep.subr.bf16.mxu0 %v11145_v40  ;;  %6968 = vmatprep.subr.bf16.mxu1 %v11146_v45  ;;  %v11177_v40 = vld [vmem:[#allocation82_spill] sm:$0xff] }
 0x810   :  { %6928 = vmatpush2.bf16.msra.mxu0 %v11147_v50  ;;  %6969 = vmatpush2.bf16.msra.mxu1 %v11148_v49 }
 0x811   :  { %6929 = vmatprep.subr.bf16.mxu0 %v11149_v34  ;;  %6970 = vmatprep.subr.bf16.mxu1 %v11150_v35  ;;  %v6194_v34 = vld [vmem:[%s10589_s5] sm:$0xf] }
 0x812   :  { %v6199_v35 = vrot.slane %v6194_v34, %v10797_v1 }
 0x814   :  { %6930 = vmatpush2.bf16.msra.mxu0 %v11151_v28  ;;  %6971 = vmatpush2.bf16.msra.mxu1 %v11152_v43  ;;  %v6203_v43 = vrot.slane %v6194_v34, %v10798_v3 }
 0x815   :  { %6931 = vmatprep.subr.bf16.mxu0 %v11153_v54  ;;  %6972 = vmatprep.subr.bf16.mxu1 %v11154_v53 }
 0x818   :  { %6932 = vmatpush2.bf16.msra.mxu0 %v11155_v56  ;;  %6973 = vmatpush2.bf16.msra.mxu1 %v11156_v48 }
 0x819   :  { %6933 = vmatprep.subr.bf16.mxu0 %v11157_v39  ;;  %6974 = vmatprep.subr.bf16.mxu1 %v11158_v52 }
 0x81c   :  { %6934 = vmatpush2.bf16.msra.mxu0 %v11159_v9  ;;  %6975 = vmatpush2.bf16.msra.mxu1 %v11160_v51  ;;  %v6207_v51 = vrot.slane %v6194_v34, %v10799_v8 }
 0x81d   :  { %6935 = vmatprep.subr.bf16.mxu0 %v11161_v32  ;;  %6976 = vmatprep.subr.bf16.mxu1 %v11162_v0 }
 0x820   :  { %6936 = vmatpush2.bf16.msra.mxu0 %v11163_v60  ;;  %6977 = vmatpush2.bf16.msra.mxu1 %v11164_v18 }
 0x821   :  { %6937 = vmatprep.subr.bf16.mxu0 %v11165_v47  ;;  %6978 = vmatprep.subr.bf16.mxu1 %v11166_v55 }
 0x824   :  { %6938 = vmatpush2.bf16.msra.mxu0 %v11167_v4  ;;  %6979 = vmatpush2.bf16.msra.mxu1 %v11168_v13 }
 0x825   :  { %6939 = vmatprep.subr.bf16.mxu0 %v11169_v62  ;;  %6980 = vmatprep.subr.bf16.mxu1 %v11170_v15 }
 0x828   :  { %6940 = vmatpush2.bf16.msra.mxu0 %v11171_v58  ;;  %6981 = vmatpush2.bf16.msra.mxu1 %v11172_v7  ;;  %v6211_v58 = vrot.slane %v6194_v34, %v9120_v41 }
 0x829   :  { %6941 = vmatprep.subr.bf16.mxu0 %v11173_v38  ;;  %6982 = vmatprep.subr.bf16.mxu1 %v11174_v44 }
 0x82c   :  { %6942 = vmatpush2.bf16.msra.mxu0 %v11175_v5  ;;  %6983 = vmatpush2.bf16.msra.mxu1 %v11176_v14 }
 0x88b   :  { %v6082_v63 = vpop.f32.mrf.mxu0  ;;  %v6123_v61 = vpop.f32.mrf.mxu1 }
 0x88c   :  { %v6083_v2 = vadd.f32 %v6082_v63, %v5711_v42  ;;  %v6124_v19 = vadd.f32 %v6123_v61, %v5719_v23 }
 0x88d   :  { %v6084_v16 = vpop.f32.mrf.mxu0  ;;  %v6125_v33 = vpop.f32.mrf.mxu1 }
 0x88e   :  { %v6135_v21 = vmul.f32 0.5, %v6083_v2  ;;  %v6085_v12 = vadd.f32 %v6084_v16, %v5715_v17  ;;  %v6126_v27 = vadd.f32 %v6125_v33, %v5723_v31 }
 0x88f   :  { %v6086_v6 = vpop.f32.mrf.mxu0  ;;  %v6127_v29 = vpop.f32.mrf.mxu1 }
 0x890   :  { %8631 = vtanh.f32 %v6135_v21  ;;  %v6130_v30 = vmul.f32 0.5, %v6085_v12  ;;  %v6142_v36 = vmul.f32 0.5, %v6126_v27 }
 0x891   :  { %v6087_v24 = vpop.f32.mrf.mxu0  ;;  %v6128_v26 = vpop.f32.mrf.mxu1 }
 0x892   :  { %8633 = vtanh.f32 %v6130_v30 }
 0x893   :  { %8635 = vtanh.f32 %v6124_v19 }
 0x894   :  { %8637 = vtanh.f32 %v6142_v36 }
 0x89d   :  { %v8632_v22 = vpop.eup %8631 }
 0x89e   :  { %v6137_v11 = vmul.f32 0.5, %v8632_v22 }
 0x89f   :  { %v8634_v37 = vpop.eup %8633 }
 0x8a0   :  { %v6138_v46 = vadd.f32 0.5, %v6137_v11  ;;  %v6132_v57 = vmul.f32 0.5, %v8634_v37  ;;  %v8636_v25 = vpop.eup %8635 }
 0x8a1   :  { %v8638_v28 = vpop.eup %8637 }
 0x8a2   :  { %v6133_v20 = vadd.f32 0.5, %v6132_v57  ;;  %v6140_v50 = vmul.f32 %v8636_v25, %v6138_v46  ;;  %v6144_v56 = vmul.f32 0.5, %v8638_v28 }
 0x8a4   :  { %v6134_v45 = vmul.f32 %v6133_v20, %v11177_v40  ;;  %v6145_v18 = vadd.f32 0.5, %v6144_v56 }
 0x8a6   :  { %v10547_v49 = vadd.f32 %v6140_v50, %v6134_v45 }
 0x8a8   :  { %8639 = vtanh.f32 %v10547_v49 }
 0x8af   :  { %v6433_v54 = vpop.f32.mrf.mxu0  ;;  %v6474_v53 = vpop.f32.mrf.mxu1 }
 0x8b0   :  { %v6434_v48 = vadd.f32 %v6433_v54, %v6199_v35  ;;  %v6475_v15 = vadd.f32 %v6474_v53, %v6207_v51 }
 0x8b1   :  { %v6435_v39 = vpop.f32.mrf.mxu0  ;;  %v6476_v52 = vpop.f32.mrf.mxu1 }
 0x8b2   :  { %v6486_v9 = vmul.f32 0.5, %v6434_v48  ;;  %v6436_v32 = vadd.f32 %v6435_v39, %v6203_v43  ;;  %v6477_v7 = vadd.f32 %v6476_v52, %v6211_v58 }
 0x8b3   :  { %v6437_v0 = vpop.f32.mrf.mxu0  ;;  %v6478_v60 = vpop.f32.mrf.mxu1 }
 0x8b4   :  { %8641 = vtanh.f32 %v6486_v9  ;;  %v6481_v47 = vmul.f32 0.5, %v6436_v32  ;;  %v6493_v38 = vmul.f32 0.5, %v6477_v7 }
 0x8b5   :  { %v8640_v55 = vpop.eup %8639  ;;  %v6438_v4 = vpop.f32.mrf.mxu0 }
 0x8b6   :  { %v6479_v13 = vpop.f32.mrf.mxu1  ;;  %v6147_v62 = vmul.f32 %v8640_v55, %v6145_v18  ;;  %8643 = vtanh.f32 %v6481_v47 }
 0x8b7   :  { %8645 = vtanh.f32 %v6475_v15 }
 0x8b8   :  { %6151 = vst [vmem:[#allocation11 + $0x30] sm:$0xff] %v6147_v62  ;;  %8647 = vtanh.f32 %v6493_v38  ;;  %v6567_v30 = vpack.c.bf16 %v6147_v62, %v6147_v62 }
 0x8c1   :  { %v8642_v44 = vpop.eup %8641 }
 0x8c2   :  { %v6488_v5 = vmul.f32 0.5, %v8642_v44 }
 0x8c3   :  { %v8644_v14 = vpop.eup %8643 }
 0x8c4   :  { %v6489_v59 = vadd.f32 0.5, %v6488_v5  ;;  %v6483_v42 = vmul.f32 0.5, %v8644_v14  ;;  %v8646_v63 = vpop.eup %8645 }
 0x8c5   :  { %v8648_v33 = vpop.eup %8647 }
 0x8c6   :  { %v6484_v17 = vadd.f32 0.5, %v6483_v42  ;;  %v6491_v2 = vmul.f32 %v8646_v63, %v6489_v59  ;;  %v6495_v21 = vmul.f32 0.5, %v8648_v33 }
 0x8c8   :  { %v6485_v61 = vmul.f32 %v6484_v17, %v10436_v10  ;;  %v6496_v23 = vadd.f32 0.5, %v6495_v21  ;;  %v7824_v10 = vld [vmem:[%s10589_s5 + $0x4] sm:$0xf]  ;;  %s8896_s5 = smov [#allocation12]  }
 0x8c9   :  { %v6574_v24 = vrot.slane %v7824_v10, %v10797_v1  ;;  %v6578_v26 = vrot.slane %v7824_v10, %v10798_v3  ;;  %v6582_v37 = vrot.slane %v7824_v10, %v10799_v8  ;;  %v6586_v1 = vrot.slane %v7824_v10, %v9120_v41  ;;  %s7032_s16 = sshll.u32 %s8896_s5, 4  ;;  %s7033_s16 = int_to_ptr.vmem [resolvable:$true] %s7032_s16 }
 0x8ca   :  { %v6492_v16 = vadd.f32 %v6491_v2, %v6485_v61  ;;  %s8817_s21 = scalar_lea.vmem %s7033_s16, 256  ;;  %p8822_p12 = scmp.lt.s32.totalorder %s7033_s16, %s7033_s16 }
 0x8cb   :  { %p8818_p11 = scmp.ne.s32.totalorder %s7033_s16, %s8817_s21  ;;  %p8823_p13 = scmp.lt.s32.totalorder %s8817_s21, %s8817_s21 }
 0x8cc   :  { %8649 = vtanh.f32 %v6492_v16  ;;  %6500 = vst [vmem:[#allocation14] sm:$0xff] %v6492_v16 }
 0x8cd   :  { %p8824_p0 = por %p8823_p13, %p8822_p12 }
 0x8cf   :  { %p8825_p1 = pnand %p8824_p0, %p8818_p11 }
 0x8d9   :  { %v8650_v12 = vpop.eup %8649 }
 0x8da   :  { %v6498_v6 = vmul.f32 %v8650_v12, %v6496_v23 }
 0x8dc   :  { %v6568_v29 = vpack.c.bf16 %v6498_v6, %v6498_v6  ;;  %6499 = vst [vmem:[#allocation12] sm:$0xff] %v6498_v6 }
 0x8de   :  { %6943 = vmatprep.mubr.bf16.mxu0 %v6568_v29  ;;  %6984 = vmatprep.mubr.bf16.mxu1 %v6568_v29 }
 0x8df   :  { %6944 = vmatmul.mubr.bf16.vlgmr.msra.gmra.mxu0 %v6567_v30  ;;  %6985 = vmatmul.mubr.bf16.vlgmr.msra.gmra.mxu1 %v6567_v30 }
 0x99f   :  { %v6945_v19 = vpop.f32.mrf.mxu0  ;;  %v6986_v31 = vpop.f32.mrf.mxu1 }
 0x9a0   :  { %v6946_v27 = vadd.f32 %v6945_v19, %v6574_v24  ;;  %v6987_v50 = vadd.f32 %v6986_v31, %v6582_v37 }
 0x9a1   :  { %v6947_v36 = vpop.f32.mrf.mxu0  ;;  %v6988_v22 = vpop.f32.mrf.mxu1 }
 0x9a2   :  { %v6998_v11 = vmul.f32 0.5, %v6946_v27  ;;  %v6948_v46 = vadd.f32 %v6947_v36, %v6578_v26  ;;  %v6989_v3 = vadd.f32 %v6988_v22, %v6586_v1 }
 0x9a3   :  { %v6949_v57 = vpop.f32.mrf.mxu0  ;;  %v6990_v20 = vpop.f32.mrf.mxu1 }
 0x9a4   :  { %8651 = vtanh.f32 %v6998_v11  ;;  %v6993_v25 = vmul.f32 0.5, %v6948_v46  ;;  %v7005_v34 = vmul.f32 0.5, %v6989_v3 }
 0x9a5   :  { %v6950_v40 = vpop.f32.mrf.mxu0  ;;  %v6991_v45 = vpop.f32.mrf.mxu1 }
 0x9a6   :  { %8653 = vtanh.f32 %v6993_v25 }
 0x9a7   :  { %8655 = vtanh.f32 %v6987_v50 }
 0x9a8   :  { %8657 = vtanh.f32 %v7005_v34 }
 0x9b1   :  { %v8652_v35 = vpop.eup %8651 }
 0x9b2   :  { %v7000_v28 = vmul.f32 0.5, %v8652_v35 }
 0x9b3   :  { %v8654_v43 = vpop.eup %8653 }
 0x9b4   :  { %v7001_v54 = vadd.f32 0.5, %v7000_v28  ;;  %v6995_v53 = vmul.f32 0.5, %v8654_v43  ;;  %v8656_v56 = vpop.eup %8655 }
 0x9b5   :  { %v8658_v9 = vpop.eup %8657 }
 0x9b6   :  { %v6996_v8 = vadd.f32 0.5, %v6995_v53  ;;  %v7003_v39 = vmul.f32 %v8656_v56, %v7001_v54  ;;  %v7007_v51 = vmul.f32 0.5, %v8658_v9 }
 0x9b8   :  { %v6997_v48 = vmul.f32 %v6996_v8, %v10547_v49  ;;  %v7008_v41 = vadd.f32 0.5, %v7007_v51 }
 0x9ba   :  { %v7004_v52 = vadd.f32 %v7003_v39, %v6997_v48 }
 0x9bc   :  { %8659 = vtanh.f32 %v7004_v52  ;;  %7012 = vst [vmem:[#allocation14 + $0x8] sm:$0xff] %v7004_v52 }
 0x9c9   :  { %v8660_v32 = vpop.eup %8659 }
 0x9ca   :  { %v7010_v0 = vmul.f32 %v8660_v32, %v7008_v41 }
 0x9cc   :  { %7014 = vst [vmem:[#allocation11 + $0x38] sm:$0xff] %v7010_v0  ;;  %7011 = vst [vmem:[#allocation12 + $0x8] sm:$0xff] %v7010_v0 }
 0x9cd   :  { %8828 = shalt.err (!%p8825_p1)
}
 0x9ce   :  { %7038 = dma.vmem_to_hbm [thread:$0]  %s7033_s16, 256, %s10591_s7, [#allocation13], %s8889_s10, %s8889_s10, %s8890_s11  }
 0x9cf   :  { %s8837_s23 = scalar_lea.vmem %s7021_s18, 1024  ;;  %p8842_p3 = scmp.lt.s32.totalorder %s7021_s18, %s7021_s18 }
 0x9d0   :  { %p8838_p2 = scmp.ne.s32.totalorder %s7021_s18, %s8837_s23  ;;  %p8843_p4 = scmp.lt.s32.totalorder %s8837_s23, %s8837_s23 }
 0x9d2   :  { %p8844_p5 = por %p8843_p4, %p8842_p3 }
 0x9d4   :  { %p8845_p6 = pnand %p8844_p5, %p8838_p2 }
 0x9d6   :  { %8848 = shalt.err (!%p8845_p6)
}
 0x9d7   :  { %7026 = dma.vmem_to_hbm [thread:$0]  %s7021_s18, 1024, %s10590_s6, [#allocation4], %s8889_s10, %s8889_s10, %s8890_s11  }
 0x9d8   :  { %s8857_s25 = scalar_lea.vmem %s7045_s20, 256  ;;  %p8862_p8 = scmp.lt.s32.totalorder %s7045_s20, %s7045_s20 }
 0x9d9   :  { %p8858_p7 = scmp.ne.s32.totalorder %s7045_s20, %s8857_s25  ;;  %p8863_p9 = scmp.lt.s32.totalorder %s8857_s25, %s8857_s25 }
 0x9db   :  { %p8864_p10 = por %p8863_p9, %p8862_p8 }
 0x9dd   :  { %p8865_p11 = pnand %p8864_p10, %p8858_p7 }
 0x9df   :  { %8868 = shalt.err (!%p8865_p11)
}
 0x9e0   :  { %7050 = dma.vmem_to_hbm [thread:$0]  %s7045_s20, 256, %s10592_s8, [#allocation13], %s8889_s10, %s8889_s10, %s8890_s11  }
 0x9e1   :  { %8883 = dma.done.wait [#allocation4], 1024  }
 0x9e2   :  { %8884 = vsyncadd [#allocation4], 4294966272 }
 0x9e3   :  { %8885 = dma.done.wait [#allocation13], 512  }
 0x9e4   :  { %8886 = vsyncadd [#allocation13], 4294966784 }
 0x9e5   :  { %7060 = vsyncpa [#allocation3], 1 }
 0x9e6   :  { %7061 = vsyncpa [#allocation6], 1 }
 0x9e7   :  { %7062 = vsyncpa [#allocation9], 1 }
 0x9e8   :  { %7063 = vsyncpa [#allocation4], 1 }
 0x9e9   :  { %7064 = vsyncpa [#allocation13], 1 }

</bundles_post_ra>
